<compile_context>
chip_gen: v5e
topology: v5e:2x2
jax: 0.10.0
libtpu: 0.0.40
codegen_flags: <defaults>
</compile_context>

<pallas_src>
import functools

import jax
import jax.numpy as jnp
from jax import lax
from jax.experimental import pallas as pl
from jax.experimental.pallas import tpu as pltpu

FEAT_DIM = 512   # OSNet backbone output feature dim (input of self.fc)
EMB_DIM = 256    # embedding_dim
ACC_W = 128      # lane-padded accumulator width (>= any batch tile, keeps
                 # every accumulator op / transpose (8,128)-aligned)


def _osnet_reid_kernel(x_ref, w_stem_ref, b_stem_ref, fc_w_ref, fc_b_ref,
                       out_ref, acc_ref, *, bt, inv_hw, pad_pixels):
    t = pl.program_id(1)

    @pl.when(t == 0)
    def _init():
        acc_ref[...] = jnp.zeros_like(acc_ref)

    # (1, 128) lane-index row used to scatter a partial sum into column `bi`.
    lane_ids = lax.broadcasted_iota(jnp.int32, (1, ACC_W), 1)

    def _accumulate(bi):
        xb = x_ref[bi]                                           # (C_pad, thw)
        # stem 1x1 conv on the MXU: (512, C_pad) @ (C_pad, thw)
        h = jnp.dot(w_stem_ref[...], xb,
                    preferred_element_type=jnp.float32)          # (512, thw)
        h = jnp.maximum(h + b_stem_ref[...], 0.0)                # bias + ReLU (VPU)
        colsum = jnp.sum(h, axis=1, keepdims=True)               # (512, 1) partial GAP
        # one full-width accumulator update (no dynamic-lane / masked column RMW)
        acc_ref[...] += jnp.where(lane_ids == bi, colsum, 0.0)

    if bt == 1:
        _accumulate(0)
    else:
        def _body(bi, carry):
            _accumulate(bi)
            return carry
        lax.fori_loop(0, bt, _body, 0)   # bounds live ranges to one (512, thw) h

    @pl.when(t == pl.num_programs(1) - 1)
    def _finish():
        feat = acc_ref[...]                                      # (512, 128)
        if pad_pixels:
            # zero-padded pixels each contributed relu(bias): exact correction
            feat = feat - float(pad_pixels) * jnp.maximum(b_stem_ref[...], 0.0)
        feat = feat * inv_hw                                     # global average pool
        # fc = nn.Linear(512, 256)
        y = jnp.dot(fc_w_ref[...], feat,
                    preferred_element_type=jnp.float32) + fc_b_ref[...]   # (256, 128)
        # F.normalize(p=2, dim=1): 1/max(||y||,1e-12) == rsqrt(max(||y||^2,1e-24))
        n2 = jnp.sum(y * y, axis=0, keepdims=True)               # (1, 128)
        yn = y * lax.rsqrt(jnp.maximum(n2, 1e-24))
        # fully (8,128)-aligned transpose, then lane-dense (bt, 256) store
        out_ref[0] = jnp.transpose(yn)[:bt, :]


def _round_up(x, m):
    return ((x + m - 1) // m) * m


def _pick_hw_tile(hw, target=1024):
    """Pixel-axis tile: multiple of 128, capped so the (512, thw) intermediate
    stays ~2 MiB (fits v5e's 16 MiB scoped VMEM and v7x's 64 MiB budget)."""
    return min(target, _round_up(hw, 128))


def _pick_batch_tile(b, max_bt=8):
    """Largest divisor of B <= max_bt, kept <= B//2 so the 'parallel' batch
    grid axis has >= 2 steps and can shard across v7x's two TensorCores."""
    if b <= 1:
        return 1
    cap = max(1, min(max_bt, b // 2))
    return max(d for d in range(1, cap + 1) if b % d == 0)


def osnet_reid_forward(x_nchw, params):
    w_stem, b_stem, fc_w, fc_b = params
    B, C, H, W = x_nchw.shape
    HW = H * W

    thw = _pick_hw_tile(HW)
    hw_pad = _round_up(HW, thw)
    pad_pixels = hw_pad - HW
    n_t = hw_pad // thw

    c_pad = _round_up(max(C, 1), 8)

    bt = _pick_batch_tile(B)
    n_b = B // bt

    # NCHW -> (B, C, HW) is a free reshape (channel-major, HW lane-dense).
    # Zero-pad channels to a sublane multiple and pixels to a tile multiple.
    x_flat = x_nchw.reshape(B, C, HW).astype(jnp.float32)
    x_flat = jnp.pad(x_flat, ((0, 0), (0, c_pad - C), (0, pad_pixels)))

    w_stem_p = jnp.pad(w_stem.astype(jnp.float32), ((0, 0), (0, c_pad - C)))
    b_stem = b_stem.astype(jnp.float32)
    fc_w = fc_w.astype(jnp.float32)
    fc_b = fc_b.astype(jnp.float32)

    kernel = functools.partial(_osnet_reid_kernel, bt=bt, inv_hw=1.0 / HW,
                               pad_pixels=pad_pixels)

    out = pl.pallas_call(
        kernel,
        out_shape=jax.ShapeDtypeStruct((n_b, bt, EMB_DIM), jnp.float32),
        grid=(n_b, n_t),
        in_specs=[
            # pixel tile: bt batch elems x all (padded) channels x thw lanes
            pl.BlockSpec((bt, c_pad, thw), lambda bb, t: (bb, 0, t)),
            # weights / biases: constant block index -> stay VMEM-resident
            pl.BlockSpec((FEAT_DIM, c_pad), lambda bb, t: (0, 0)),
            pl.BlockSpec((FEAT_DIM, 1), lambda bb, t: (0, 0)),
            pl.BlockSpec((EMB_DIM, FEAT_DIM), lambda bb, t: (0, 0)),
            pl.BlockSpec((EMB_DIM, 1), lambda bb, t: (0, 0)),
        ],
        out_specs=pl.BlockSpec((1, bt, EMB_DIM), lambda bb, t: (bb, 0, 0)),
        scratch_shapes=[pltpu.VMEM((FEAT_DIM, ACC_W), jnp.float32)],
        compiler_params=pltpu.CompilerParams(
            dimension_semantics=("parallel", "arbitrary")),
    )(x_flat, w_stem_p, b_stem, fc_w, fc_b)

    # (B//bt, bt, 256) rows are already lane-dense; this reshape is free.
    return out.reshape(B, EMB_DIM)


def init_params(key, c_in):
    k1, k2, k3, k4 = jax.random.split(key, 4)
    # stem 1x1 conv weight stored (out_ch, in_ch), like PyTorch Conv2d
    w_stem = jax.random.normal(k1, (FEAT_DIM, c_in), jnp.float32) * 0.05
    b_stem = jax.random.normal(k2, (FEAT_DIM, 1), jnp.float32) * 0.01
    # fc weight stored PyTorch nn.Linear-style: (out=256, in=512)
    fc_w = jax.random.normal(k3, (EMB_DIM, FEAT_DIM), jnp.float32) / jnp.sqrt(float(FEAT_DIM))
    fc_b = jax.random.normal(k4, (EMB_DIM, 1), jnp.float32) * 0.01
    return w_stem, b_stem, fc_w, fc_b


def reference_forward(x_nchw, params):
    # Pure-JAX reference with identical math, for correctness checking.
    w_stem, b_stem, fc_w, fc_b = params
    B, C, H, W = x_nchw.shape
    x = x_nchw.reshape(B, C, H * W).astype(jnp.float32)              # (B, C, HW)
    h = jnp.einsum('fc,bcp->bfp', w_stem, x) + b_stem[None]          # (B, 512, HW)
    h = jnp.maximum(h, 0.0)
    feat = jnp.mean(h, axis=2)                                        # GAP -> (B, 512)
    y = feat @ fc_w.T + fc_b[:, 0][None]                              # (B, 256)
    norm = jnp.sqrt(jnp.sum(y * y, axis=1, keepdims=True))
    return y / jnp.maximum(norm, 1e-12)


if __name__ == "__main__":
    key = jax.random.PRNGKey(0)
    k_x, k_p = jax.random.split(key)

    B, C, H, W = 2, 3, 16, 16          # small RGB crops (OSNet takes 3-channel input)
    x = jax.random.normal(k_x, (B, C, H, W), jnp.float32)
    params = init_params(k_p, C)

    out = jax.block_until_ready(osnet_reid_forward(x, params))
    ref = reference_forward(x, params)

    assert out.shape == (B, EMB_DIM)
    # f32 matmuls may take bf16 MXU passes at default precision (both in the
    # kernel and in the XLA reference), so compare at a matching tolerance.
    assert jnp.allclose(out, ref, atol=3e-3, rtol=3e-3), "Pallas kernel mismatch vs reference"
    # embeddings should be (approximately) unit-norm along dim=1
    assert jnp.allclose(jnp.linalg.norm(out, axis=1), 1.0, atol=1e-3)

    print("KERNEL_OK")
</pallas_src>

<mosaic_0001>
module attributes {stable_mosaic.version = 11 : i64} {
  func.func @_osnet_reid_kernel(%arg0: i32, %arg1: i32, %arg2: memref<1x8x256xf32, #tpu.memory_space<vmem>>, %arg3: memref<512x8xf32, #tpu.memory_space<vmem>>, %arg4: memref<512x1xf32, #tpu.memory_space<vmem>>, %arg5: memref<256x512xf32, #tpu.memory_space<vmem>>, %arg6: memref<256x1xf32, #tpu.memory_space<vmem>>, %arg7: memref<1x1x256xf32, #tpu.memory_space<vmem>>, %arg8: memref<512x128xf32, #tpu.memory_space<vmem>>) attributes {dimension_semantics = [#tpu.dimension_semantics<parallel>, #tpu.dimension_semantics<arbitrary>], iteration_bounds = array<i64: 2, 1>, scalar_prefetch = 0 : i64, scratch_operands = 1 : i64, tpu.core_type = #tpu.core_type<tc>, window_params = [{transform_indices = @transform_0, window_bounds = array<i64: 1, 8, 256>}, {pipeline_mode = #tpu.pipeline_mode<synchronous>, transform_indices = @transform_1, window_bounds = array<i64: 512, 8>}, {pipeline_mode = #tpu.pipeline_mode<synchronous>, transform_indices = @transform_2, window_bounds = array<i64: 512, 1>}, {pipeline_mode = #tpu.pipeline_mode<synchronous>, transform_indices = @transform_3, window_bounds = array<i64: 256, 512>}, {pipeline_mode = #tpu.pipeline_mode<synchronous>, transform_indices = @transform_4, window_bounds = array<i64: 256, 1>}, {transform_indices = @transform_5, window_bounds = array<i64: 1, 1, 256>}]} {
    %c0_i32 = arith.constant 0 : i32
    %0 = arith.cmpi eq, %arg1, %c0_i32 : i32
    %1 = arith.extui %0 : i1 to i32
    %c0_i32_0 = arith.constant 0 : i32
    %2 = arith.cmpi ne, %1, %c0_i32_0 : i32
    scf.if %2 {
      %cst_17 = arith.constant 0.000000e+00 : f32
      %29 = vector.broadcast %cst_17 : f32 to vector<512x128xf32>
      %c0_18 = arith.constant 0 : index
      %c0_19 = arith.constant 0 : index
      %30 = vector.load %arg8[%c0_18, %c0_19] : memref<512x128xf32, #tpu.memory_space<vmem>>, vector<512x128xf32>
      tpu.vector_store %arg8[%c0_18, %c0_19], %29 {strides = array<i32>} : memref<512x128xf32, #tpu.memory_space<vmem>>, vector<512x128xf32>,
    } else {
    }
    %3 = tpu.iota {dimensions = array<i32: 1>} : vector<1x128xi32>
    %c0 = arith.constant 0 : index
    %c0_1 = arith.constant 0 : index
    %c0_2 = arith.constant 0 : index
    %4 = vector.load %arg2[%c0, %c0_1, %c0_2] : memref<1x8x256xf32, #tpu.memory_space<vmem>>, vector<1x8x256xf32>
    %5 = vector.shape_cast %4 : vector<1x8x256xf32> to vector<8x256xf32>
    %c0_3 = arith.constant 0 : index
    %c0_4 = arith.constant 0 : index
    %6 = vector.load %arg3[%c0_3, %c0_4] : memref<512x8xf32, #tpu.memory_space<vmem>>, vector<512x8xf32>
    %cst = arith.constant dense<0.000000e+00> : vector<512x256xf32>
    %7 = tpu.matmul %6, %5, %cst {dimension_numbers = #tpu.dot_dimension_numbers<[1], [0], [0], [1], [0, 0, 1, 1], [], []>} : vector<512x8xf32>, vector<8x256xf32>, vector<512x256xf32> -> vector<512x256xf32>
    %c0_5 = arith.constant 0 : index
    %c0_6 = arith.constant 0 : index
    %8 = vector.load %arg4[%c0_5, %c0_6] : memref<512x1xf32, #tpu.memory_space<vmem>>, vector<512x1xf32>
    %9 = vector.broadcast %8 : vector<512x1xf32> to vector<512x256xf32>
    %10 = arith.addf %7, %9 : vector<512x256xf32>
    %cst_7 = arith.constant 0.000000e+00 : f32
    %11 = vector.broadcast %cst_7 : f32 to vector<512x256xf32>
    %12 = arith.maximumf %10, %11 : vector<512x256xf32>
    %cst_8 = arith.constant dense<0.000000e+00> : vector<512xf32>
    %13 = vector.multi_reduction <add>, %12, %cst_8 [1] : vector<512x256xf32> to vector<512xf32>
    %14 = vector.shape_cast %13 : vector<512xf32> to vector<512x1xf32>
    %c0_9 = arith.constant 0 : index
    %c0_10 = arith.constant 0 : index
    %15 = vector.load %arg8[%c0_9, %c0_10] : memref<512x128xf32, #tpu.memory_space<vmem>>, vector<512x128xf32>
    %c0_i32_11 = arith.constant 0 : i32
    %16 = vector.broadcast %c0_i32_11 : i32 to vector<1x128xi32>
    %17 = arith.cmpi eq, %3, %16 : vector<1x128xi32>
    %cst_12 = arith.constant 0.000000e+00 : f32
    %18 = vector.shape_cast %17 : vector<1x128xi1> to vector<1x128xi1>
    %19 = vector.broadcast %18 : vector<1x128xi1> to vector<512x128xi1>
    %20 = vector.shape_cast %14 : vector<512x1xf32> to vector<512x1xf32>
    %21 = vector.broadcast %20 : vector<512x1xf32> to vector<512x128xf32>
    %22 = vector.broadcast %cst_12 : f32 to vector<512x128xf32>
    %23 = arith.select %19, %21, %22 : vector<512x128xi1>, vector<512x128xf32>
    %24 = arith.addf %15, %23 : vector<512x128xf32>
    %c0_13 = arith.constant 0 : index
    %c0_14 = arith.constant 0 : index
    %25 = vector.load %arg8[%c0_13, %c0_14] : memref<512x128xf32, #tpu.memory_space<vmem>>, vector<512x128xf32>
    tpu.vector_store %arg8[%c0_13, %c0_14], %24 {strides = array<i32>} : memref<512x128xf32, #tpu.memory_space<vmem>>, vector<512x128xf32>,
    %c0_i32_15 = arith.constant 0 : i32
    %26 = arith.cmpi eq, %arg1, %c0_i32_15 : i32
    %27 = arith.extui %26 : i1 to i32
    %c0_i32_16 = arith.constant 0 : i32
    %28 = arith.cmpi ne, %27, %c0_i32_16 : i32
    scf.if %28 {
      %c0_17 = arith.constant 0 : index
      %c0_18 = arith.constant 0 : index
      %29 = vector.load %arg8[%c0_17, %c0_18] : memref<512x128xf32, #tpu.memory_space<vmem>>, vector<512x128xf32>
      %cst_19 = arith.constant 3.906250e-03 : f32
      %30 = vector.broadcast %cst_19 : f32 to vector<512x128xf32>
      %31 = arith.mulf %29, %30 : vector<512x128xf32>
      %c0_20 = arith.constant 0 : index
      %c0_21 = arith.constant 0 : index
      %32 = vector.load %arg5[%c0_20, %c0_21] : memref<256x512xf32, #tpu.memory_space<vmem>>, vector<256x512xf32>
      %cst_22 = arith.constant dense<0.000000e+00> : vector<256x128xf32>
      %33 = tpu.matmul %32, %31, %cst_22 {dimension_numbers = #tpu.dot_dimension_numbers<[1], [0], [0], [1], [0, 0, 1, 1], [], []>} : vector<256x512xf32>, vector<512x128xf32>, vector<256x128xf32> -> vector<256x128xf32>
      %c0_23 = arith.constant 0 : index
      %c0_24 = arith.constant 0 : index
      %34 = vector.load %arg6[%c0_23, %c0_24] : memref<256x1xf32, #tpu.memory_space<vmem>>, vector<256x1xf32>
      %35 = vector.broadcast %34 : vector<256x1xf32> to vector<256x128xf32>
      %36 = arith.addf %33, %35 : vector<256x128xf32>
      %37 = arith.mulf %36, %36 : vector<256x128xf32>
      %cst_25 = arith.constant dense<0.000000e+00> : vector<128xf32>
      %38 = vector.multi_reduction <add>, %37, %cst_25 [0] : vector<256x128xf32> to vector<128xf32>
      %39 = vector.shape_cast %38 : vector<128xf32> to vector<1x128xf32>
      %cst_26 = arith.constant 1.000000e-24 : f32
      %40 = vector.broadcast %cst_26 : f32 to vector<1x128xf32>
      %41 = arith.maximumf %39, %40 : vector<1x128xf32>
      %42 = math.rsqrt %41 : vector<1x128xf32>
      %43 = vector.broadcast %42 : vector<1x128xf32> to vector<256x128xf32>
      %44 = arith.mulf %36, %43 : vector<256x128xf32>
      %45 = tpu.transpose %44, [1, 0] : vector<256x128xf32> -> vector<128x256xf32>
      %46 = vector.extract_strided_slice %45 {offsets = [0, 0], sizes = [1, 256], strides = [1, 1]} : vector<128x256xf32> to vector<1x256xf32>
      %c0_27 = arith.constant 0 : index
      %c0_28 = arith.constant 0 : index
      %c0_29 = arith.constant 0 : index
      %47 = vector.load %arg7[%c0_27, %c0_28, %c0_29] : memref<1x1x256xf32, #tpu.memory_space<vmem>>, vector<1x1x256xf32>
      %48 = vector.shape_cast %47 : vector<1x1x256xf32> to vector<1x256xf32>
      %49 = vector.shape_cast %46 : vector<1x256xf32> to vector<1x1x256xf32>
      tpu.vector_store %arg7[%c0_27, %c0_28, %c0_29], %49 {strides = array<i32>} : memref<1x1x256xf32, #tpu.memory_space<vmem>>, vector<1x1x256xf32>,
    } else {
    }
    return
  }
  func.func @transform_0(%arg0: i32, %arg1: i32) -> (i32, i32, i32) {
    %c0_i32 = arith.constant 0 : i32
    %c0_i32_0 = arith.constant 0 : i32
    return %arg0, %c0_i32, %arg1 : i32, i32, i32
  }
  func.func @transform_1(%arg0: i32, %arg1: i32) -> (i32, i32) {
    %c0_i32 = arith.constant 0 : i32
    %c0_i32_0 = arith.constant 0 : i32
    %c0_i32_1 = arith.constant 0 : i32
    return %c0_i32, %c0_i32_0 : i32, i32
  }
  func.func @transform_2(%arg0: i32, %arg1: i32) -> (i32, i32) {
    %c0_i32 = arith.constant 0 : i32
    %c0_i32_0 = arith.constant 0 : i32
    %c0_i32_1 = arith.constant 0 : i32
    return %c0_i32, %c0_i32_0 : i32, i32
  }
  func.func @transform_3(%arg0: i32, %arg1: i32) -> (i32, i32) {
    %c0_i32 = arith.constant 0 : i32
    %c0_i32_0 = arith.constant 0 : i32
    %c0_i32_1 = arith.constant 0 : i32
    return %c0_i32, %c0_i32_0 : i32, i32
  }
  func.func @transform_4(%arg0: i32, %arg1: i32) -> (i32, i32) {
    %c0_i32 = arith.constant 0 : i32
    %c0_i32_0 = arith.constant 0 : i32
    %c0_i32_1 = arith.constant 0 : i32
    return %c0_i32, %c0_i32_0 : i32, i32
  }
  func.func @transform_5(%arg0: i32, %arg1: i32) -> (i32, i32, i32) {
    %c0_i32 = arith.constant 0 : i32
    %c0_i32_0 = arith.constant 0 : i32
    %c0_i32_1 = arith.constant 0 : i32
    return %arg0, %c0_i32, %c0_i32_0 : i32, i32, i32
  }
}

</mosaic_0001>

<bundles_post_ra>
// kernel: tpu_custom_call.1
= control target key start
LH: loop header
LB: loop body
LE: loop exit
PB: predicated region body
PF: predicated region fallthrough
CT: control target
= control target key end

     0   :  { %10 = vsyncpa [#allocation4], 0  ;;  %s5521_s0 = inlined_call_operand.vmem [shape: f32[2,8,256], index: 0, kind: input, shape index: {}]   ;;  %s5522_s1 = inlined_call_operand.vmem [shape: f32[512,8], index: 1, kind: input, shape index: {}]   ;;  %s5523_s2 = inlined_call_operand.vmem [shape: f32[512,1], index: 2, kind: input, shape index: {}]   ;;  %s5524_s3 = inlined_call_operand.vmem [shape: f32[256,512], index: 3, kind: input, shape index: {}]   ;;  %s5525_s4 = inlined_call_operand.vmem [shape: f32[256,1], index: 4, kind: input, shape index: {}]   ;;  %s5526_s5 = inlined_call_operand.hbm [shape: f32[2,1,256], index: 5, kind: output, shape index: {}]  }
   0x1   :  { %12 = vsyncpa [#allocation4 + $0x1], 0  ;;  %s3485_s18 = smov 0   ;;  %s3487_s19 = smov 0  }
   0x2   :  { %s3489_s20 = smov 0   ;;  %s3491_s21 = smov 0  }
   0x3   :  { %s3493_s22 = smov 0   ;;  %s3495_s23 = smov 0  }
   0x4 LB: > { %s3140_s24 = sadd.s32 4294967295, %s3452_s23   ;;  %s3141_s25 = sadd.s32 4294967294, %s3452_s23   ;;  %s3452_s23 = sphi %s3495_s23, %s18_s23   ;;  %s3448_s22 = sphi %s3493_s22, %s5567_s22   ;;  %s3444_s21 = sphi %s3491_s21, %s5566_s21   ;;  %s3440_s20 = sphi %s3489_s20, %s5565_s20   ;;  %s3436_s19 = sphi %s3487_s19, %s5564_s19   ;;  %s3432_s18 = sphi %s3485_s18, %s5563_s18  }
   0x5   : > { %s30_s26 = sadd.s32 1, %s3448_s22  ;;  %s149_s27 = sadd.s32 1, %s3440_s20 }
   0x6   : > { %p32_p0 = scmp.ge.s32.totalorder %s30_s26, 2  ;;  %p159_p1 = scmp.ne.s32.totalorder %s3440_s20, %s3436_s19 }
   0x7   : > { %p160_p2 = scmp.eq.s32.totalorder %s3140_s24, 1  ;;  %p165_p3 = scmp.ne.s32.totalorder %s3436_s19, %s3432_s18 }
   0x8   : > { %s5569_s26 = smov (%p32_p0, %s30_s26), 0  ;;  %p166_p5 = scmp.eq.s32.totalorder %s3141_s25, 1 }
   0x9   : > { %p3525_p4 = por %p160_p2, %p159_p1  ;;  %s146_s29 = ssub.s32 %s3448_s22, %s5569_s26 }
   0xa   : > { %p3144_p6 = scmp.ge.s32.totalorder %s3452_s23, 1  ;;  %p147_p7 = scmp.eq.s32.totalorder %s146_s29, 0 }
   0xb   : > { %p3532_p8 = por %p166_p5, %p165_p3  ;;  %p209_p9 = scmp.lt.s32.totalorder %s3452_s23, 3 }
   0xc   : > { %s3538_s6 = scalar_select %p147_p7, %s3440_s20, %s149_s27  }
   0xd   : > { %p210_p10 = pnand %p3144_p6, %p209_p9 }
   0xf   : > { %213 = sbr.rel (%p210_p10) target bundleno = 1425 (0x591), region = 40 }
  0x14   : > { %p242_p11 = scmp.lt.s32.totalorder %s3444_s21, 1  ;;  %v389_v0 = vld [vmem:[%s5523_s2 + $0x10] sm:$0xff]  ;;  %v3454_v1 = vmov 0   ;;  %v387_v2 = vld [vmem:[%s5523_s2] sm:$0xff]  ;;  %vm771_vm0 = vcmask 64512   ;;  %v390_v6 = vld [vmem:[%s5523_s2 + $0x18] sm:$0xff] }
  0x15   : > { %3370 = vset.pattern.permute.xlu1 %v3454_v1  ;;  %3369 = vset.pattern.permute.xlu0 %v3454_v1  ;;  %v323_v3 = vld [vmem:[%s5522_s1] sm:$0xff]  ;;  %v388_v7 = vld [vmem:[%s5523_s2 + $0x8] sm:$0xff]  ;;  %v402_v9 = vld [vmem:[%s5523_s2 + $0x78] sm:$0xff]  ;;  %s238_s24 = sand.u32 1, %s3436_s19   ;;  %s3277_s27 = sshll.u32 %s3444_s21, 1  ;;  %vm3043_vm5 = vcmask 1040384  }
  0x16   : > { %s243_s11 = scalar_select %p242_p11, %s3444_s21, 1  ;;  %463 = vperm.xlu1 %3370, %v389_v0   ;;  %453 = vperm.xlu0 %3369, %v387_v2   ;;  %v324_v8 = vld [vmem:[%s5522_s1 + $0x8] sm:$0xff]  ;;  %v325_v10 = vld [vmem:[%s5522_s1 + $0x10] sm:$0xff]  ;;  %v391_v12 = vld [vmem:[%s5523_s2 + $0x20] sm:$0xff] }
  0x17   : > { %3371 = vset.pattern.permute.xlu2 %v3454_v1  ;;  %v400_v11 = vld [vmem:[%s5523_s2 + $0x68] sm:$0xff]  ;;  %v393_v13 = vld [vmem:[%s5523_s2 + $0x30] sm:$0xff]  ;;  %v326_v14 = vld [vmem:[%s5522_s1 + $0x18] sm:$0xff]  ;;  %s3145_s25 = sshll.u32 %s238_s24, 1  ;;  %s3062_s8 = scalar_lea.hbm %s5526_s5, %s3277_s27 }
  0x18   : > { %s3280_s12 = sshll.u32 %s243_s11, 4  ;;  %473 = vperm.xlu2 %3371, %v391_v12   ;;  %v416_v15 = vld [vmem:[%s5523_s2 + $0xe8] sm:$0xff]  ;;  %v418_v17 = vld [vmem:[%s5523_s2 + $0xf8] sm:$0xff]  ;;  %v327_v18 = vld [vmem:[%s5522_s1 + $0x20] sm:$0xff]  ;;  %s240_s9 = scalar_lea.vmem [#allocation3], %s3145_s25 }
  0x19   : > { %s249_s15 = scalar_lea.vmem %s5521_s0, %s3280_s12  ;;  %v392_v16 = vld [vmem:[%s5523_s2 + $0x28] sm:$0xff]  ;;  %v397_v19 = vld [vmem:[%s5523_s2 + $0x50] sm:$0xff]  ;;  %v399_v21 = vld [vmem:[%s5523_s2 + $0x60] sm:$0xff]  ;;  %s3064_s10 = sshll.u32 %s240_s9, 4  ;;  %s3065_s10 = int_to_ptr.vmem [resolvable:$true] %s3064_s10 }
  0x1a   : > { %v321_v4 = vld [vmem:[%s249_s15] sm:$0xff]  ;;  %v322_v5 = vld [vmem:[%s249_s15 + $0x8] sm:$0xff]  ;;  %v401_v20 = vld [vmem:[%s5523_s2 + $0x70] sm:$0xff]  ;;  %s3066_s11 = sshll.u32 %s3062_s8, 4  ;;  %s3052_s12 = scalar_lea.sflag [#allocation4], %s238_s24  ;;  %s3067_s11 = int_to_ptr.hbm [resolvable:$true] %s3066_s11 }
  0x1b   : > { %979 = vmatpush.msra.mxu0 %v321_v4  ;;  %1188 = vmatpush.msra.mxu1 %v322_v5  ;;  %v328_v22 = vld [vmem:[%s5522_s1 + $0x28] sm:$0xff]  ;;  %v413_v23 = vld [vmem:[%s5523_s2 + $0xd0] sm:$0xff]  ;;  %v415_v25 = vld [vmem:[%s5523_s2 + $0xe0] sm:$0xff]  ;;  %s3388_s21 = sshra.s32 %s3067_s11, 4  ;;  %s3394_s16 = scalar_lea.hbm %s5526_s5, 4  ;;  %s3389_s21 = int_to_ptr.hbm [resolvable:$true] %s3388_s21 }
  0x1c   : > { %3148 = vmatmul.msk.f32.vlgmr.msra.gmra.mxu0 %vm771_vm0, %v323_v3  ;;  %3212 = vmatmul.msk.f32.vlgmr.msra.gmra.mxu1 %vm771_vm0, %v323_v3  ;;  %v417_v24 = vld [vmem:[%s5523_s2 + $0xf0] sm:$0xff]  ;;  %v394_v27 = vld [vmem:[%s5523_s2 + $0x38] sm:$0xff]  ;;  %v396_v29 = vld [vmem:[%s5523_s2 + $0x48] sm:$0xff]  ;;  %s3390_s13 = scalar_lea.hbm %s3389_s21, 2  ;;  %p3395_p1 = scmp.lt.s32.totalorder %s3389_s21, %s5526_s5 }
  0x1d   : > { %v329_v26 = vld [vmem:[%s5522_s1 + $0x30] sm:$0xff]  ;;  %v398_v28 = vld [vmem:[%s5523_s2 + $0x58] sm:$0xff]  ;;  %v331_v32 = vld [vmem:[%s5522_s1 + $0x40] sm:$0xff]  ;;  %p3391_p12 = scmp.ne.s32.totalorder %s3389_s21, %s3390_s13  ;;  %p3396_p2 = scmp.lt.s32.totalorder %s3394_s16, %s3390_s13 }
  0x1e   : > { %468 = vperm.xlu1 %3370, %v390_v6   ;;  %458 = vperm.xlu0 %3369, %v388_v7   ;;  %v330_v30 = vld [vmem:[%s5522_s1 + $0x38] sm:$0xff]  ;;  %v395_v33 = vld [vmem:[%s5523_s2 + $0x40] sm:$0xff]  ;;  %v332_v34 = vld [vmem:[%s5522_s1 + $0x48] sm:$0xff] }
  0x1f   : > { %v414_v31 = vld [vmem:[%s5523_s2 + $0xd8] sm:$0xff]  ;;  %v333_v35 = vld [vmem:[%s5522_s1 + $0x50] sm:$0xff]  ;;  %v412_v36 = vld [vmem:[%s5523_s2 + $0xc8] sm:$0xff]  ;;  %p3392_p13 = pnand %p3391_p12, %p3525_p4  ;;  %p3397_p3 = por %p3396_p2, %p3395_p1 }
  0x20   : > { %478 = vperm.xlu2 %3371, %v392_v16   ;;  %v411_v37 = vld [vmem:[%s5523_s2 + $0xc0] sm:$0xff]  ;;  %v334_v38 = vld [vmem:[%s5522_s1 + $0x58] sm:$0xff]  ;;  %v408_v40 = vld [vmem:[%s5523_s2 + $0xa8] sm:$0xff] }
  0x21   : > { %v410_v39 = vld [vmem:[%s5523_s2 + $0xb8] sm:$0xff]  ;;  %v409_v41 = vld [vmem:[%s5523_s2 + $0xb0] sm:$0xff]  ;;  %v335_v42 = vld [vmem:[%s5522_s1 + $0x60] sm:$0xff]  ;;  %p3393_p0 = pneg %p3392_p13 }
  0x22   : > { %v407_v43 = vld [vmem:[%s5523_s2 + $0xa0] sm:$0xff]  ;;  %v405_v44 = vld [vmem:[%s5523_s2 + $0x90] sm:$0xff]  ;;  %v406_v45 = vld [vmem:[%s5523_s2 + $0x98] sm:$0xff] }
  0x23   : > { %v336_v46 = vld [vmem:[%s5522_s1 + $0x68] sm:$0xff]  ;;  %v403_v48 = vld [vmem:[%s5523_s2 + $0x80] sm:$0xff]  ;;  %v337_v50 = vld [vmem:[%s5522_s1 + $0x70] sm:$0xff]  ;;  %p3398_p5 = pnand %p3397_p3, %p3393_p0 }
  0x24   : > { %3149 = vmatmul.msk.f32.gmra.mxu0 %vm771_vm0, %v324_v8  ;;  %3213 = vmatmul.msk.f32.gmra.mxu1 %vm771_vm0, %v324_v8  ;;  %v404_v47 = vld [vmem:[%s5523_s2 + $0x88] sm:$0xff]  ;;  %v338_v51 = vld [vmem:[%s5522_s1 + $0x78] sm:$0xff]  ;;  %v339_v55 = vld [vmem:[%s5522_s1 + $0x80] sm:$0xff] }
  0x25   : > { %v340_v60 = vld [vmem:[%s5522_s1 + $0x88] sm:$0xff]  ;;  %v341_v2 = vld [vmem:[%s5522_s1 + $0x90] sm:$0xff]  ;;  %v342_v8 = vld [vmem:[%s5522_s1 + $0x98] sm:$0xff] }
  0x26   : > { %528 = vperm.xlu1 %3370, %v402_v9   ;;  %483 = vperm.xlu0 %3369, %v393_v13   ;;  %v343_v13 = vld [vmem:[%s5522_s1 + $0xa0] sm:$0xff] }
  0x28   : > { %523 = vperm.xlu2 %3371, %v401_v20  }
  0x2c   : > { %3150 = vmatmul.msk.f32.gmra.mxu0 %vm771_vm0, %v325_v10  ;;  %3214 = vmatmul.msk.f32.gmra.mxu1 %vm771_vm0, %v325_v10 }
  0x2e   : > { %518 = vperm.xlu1 %3370, %v400_v11   ;;  %608 = vperm.xlu0 %3369, %v418_v17  }
  0x30   : > { %603 = vperm.xlu2 %3371, %v417_v24  }
  0x34   : > { %3151 = vmatmul.msk.f32.gmra.mxu0 %vm771_vm0, %v326_v14  ;;  %3215 = vmatmul.msk.f32.gmra.mxu1 %vm771_vm0, %v326_v14 }
  0x36   : > { %598 = vperm.xlu1 %3370, %v416_v15   ;;  %513 = vperm.xlu0 %3369, %v399_v21  }
  0x38   : > { %508 = vperm.xlu2 %3371, %v398_v28   ;;  %v345_v28 = vld [vmem:[%s5522_s1 + $0xb0] sm:$0xff] }
  0x3c   : > { %3152 = vmatmul.msk.f32.gmra.mxu0 %vm771_vm0, %v327_v18  ;;  %3216 = vmatmul.msk.f32.gmra.mxu1 %vm771_vm0, %v327_v18  ;;  %v344_v18 = vld [vmem:[%s5522_s1 + $0xa8] sm:$0xff] }
  0x3e   : > { %503 = vperm.xlu1 %3370, %v397_v19   ;;  %593 = vperm.xlu0 %3369, %v415_v25  }
  0x40   : > { %588 = vperm.xlu2 %3371, %v414_v31  }
  0x44   : > { %3153 = vmatmul.msk.f32.gmra.mxu0 %vm771_vm0, %v328_v22  ;;  %3217 = vmatmul.msk.f32.gmra.mxu1 %vm771_vm0, %v328_v22 }
  0x46   : > { %583 = vperm.xlu1 %3370, %v413_v23   ;;  %498 = vperm.xlu0 %3369, %v396_v29  }
  0x48   : > { %493 = vperm.xlu2 %3371, %v395_v33  }
  0x4c   : > { %3154 = vmatmul.msk.f32.gmra.mxu0 %vm771_vm0, %v329_v26  ;;  %3218 = vmatmul.msk.f32.gmra.mxu1 %vm771_vm0, %v329_v26 }
  0x4e   : > { %488 = vperm.xlu1 %3370, %v394_v27   ;;  %578 = vperm.xlu0 %3369, %v412_v36  }
  0x50   : > { %573 = vperm.xlu2 %3371, %v411_v37  }
  0x54   : > { %3155 = vmatmul.msk.f32.gmra.mxu0 %vm771_vm0, %v330_v30  ;;  %3219 = vmatmul.msk.f32.gmra.mxu1 %vm771_vm0, %v330_v30 }
  0x56   : > { %568 = vperm.xlu0 %3369, %v410_v39   ;;  %563 = vperm.xlu1 %3370, %v409_v41   ;;  %v346_v39 = vld [vmem:[%s5522_s1 + $0xb8] sm:$0xff] }
  0x58   : > { %558 = vperm.xlu2 %3371, %v408_v40  }
  0x5c   : > { %3156 = vmatmul.msk.f32.gmra.mxu0 %vm771_vm0, %v331_v32  ;;  %3220 = vmatmul.msk.f32.gmra.mxu1 %vm771_vm0, %v331_v32 }
  0x5e   : > { %553 = vperm.xlu0 %3369, %v407_v43   ;;  %548 = vperm.xlu1 %3370, %v406_v45  }
  0x60   : > { %543 = vperm.xlu2 %3371, %v405_v44  }
  0x64   : > { %3157 = vmatmul.msk.f32.gmra.mxu0 %vm771_vm0, %v332_v34  ;;  %3221 = vmatmul.msk.f32.gmra.mxu1 %vm771_vm0, %v332_v34 }
  0x66   : > { %538 = vperm.xlu0 %3369, %v404_v47   ;;  %533 = vperm.xlu1 %3370, %v403_v48  }
  0x6c   : > { %3158 = vmatmul.msk.f32.gmra.mxu0 %vm771_vm0, %v333_v35  ;;  %3222 = vmatmul.msk.f32.gmra.mxu1 %vm771_vm0, %v333_v35 }
  0x72   : > { %v3732_v56 = vpop.permute.xlu2 %473 }
  0x74   : > { %3159 = vmatmul.msk.f32.gmra.mxu0 %vm771_vm0, %v334_v38  ;;  %3223 = vmatmul.msk.f32.gmra.mxu1 %vm771_vm0, %v334_v38 }
  0x7a   : > { %v479_v62 = vpop.permute.xlu2 %478 }
  0x7c   : > { %3160 = vmatmul.msk.f32.gmra.mxu0 %vm771_vm0, %v335_v42  ;;  %3224 = vmatmul.msk.f32.gmra.mxu1 %vm771_vm0, %v335_v42 }
  0x82   : > { %v3762_v4 = vpop.permute.xlu2 %523 }
  0x84   : > { %3161 = vmatmul.msk.f32.gmra.mxu0 %vm771_vm0, %v336_v46  ;;  %3225 = vmatmul.msk.f32.gmra.mxu1 %vm771_vm0, %v336_v46 }
  0x88   : > { %v3711_v49 = vpop.permute.xlu1 %463  ;;  %v3745_v61 = vpop.permute.xlu0 %453 }
  0x8a   : > { %v3775_v10 = vpop.permute.xlu2 %603 }
  0x8c   : > { %3162 = vmatmul.msk.f32.gmra.mxu0 %vm771_vm0, %v337_v50  ;;  %3226 = vmatmul.msk.f32.gmra.mxu1 %vm771_vm0, %v337_v50  ;;  %v347_v50 = vld [vmem:[%s5522_s1 + $0xc0] sm:$0xff] }
  0x90   : > { %v3721_v52 = vpop.permute.xlu1 %468  ;;  %v3760_v3 = vpop.permute.xlu0 %458 }
  0x92   : > { %v3793_v21 = vpop.permute.xlu2 %508 }
  0x94   : > { %3163 = vmatmul.msk.f32.gmra.mxu0 %vm771_vm0, %v338_v51  ;;  %3227 = vmatmul.msk.f32.gmra.mxu1 %vm771_vm0, %v338_v51 }
  0x98   : > { %v3736_v57 = vpop.permute.xlu1 %528  ;;  %v484_v9 = vpop.permute.xlu0 %483 }
  0x99   : > { %v3725_v53 = vpop.f32.mrf.mxu0  ;;  %v3727_v54 = vpop.f32.mrf.mxu1 }
  0x9a   : > { %v3806_v34 = vpop.permute.xlu2 %588 }
  0x9c   : > { %3164 = vmatmul.msk.f32.gmra.mxu0 %vm771_vm0, %v339_v55  ;;  %3228 = vmatmul.msk.f32.gmra.mxu1 %vm771_vm0, %v339_v55 }
  0xa0   : > { %v3749_v63 = vpop.permute.xlu1 %518  ;;  %v3788_v15 = vpop.permute.xlu0 %608 }
  0xa1   : > { %v3738_v58 = vpop.f32.mrf.mxu0  ;;  %v3740_v59 = vpop.f32.mrf.mxu1 }
  0xa2   : > { %v494_v46 = vpop.permute.xlu2 %493 }
  0xa4   : > { %3165 = vmatmul.msk.f32.gmra.mxu0 %vm771_vm0, %v340_v60  ;;  %3229 = vmatmul.msk.f32.gmra.mxu1 %vm771_vm0, %v340_v60 }
  0xa8   : > { %v3764_v5 = vpop.permute.xlu1 %598  ;;  %v3802_v31 = vpop.permute.xlu0 %513 }
  0xa9   : > { %v3751_v0 = vpop.f32.mrf.mxu0  ;;  %v3753_v1 = vpop.f32.mrf.mxu1 }
  0xac   : > { %3166 = vmatmul.msk.f32.gmra.mxu0 %vm771_vm0, %v341_v2  ;;  %3230 = vmatmul.msk.f32.gmra.mxu1 %vm771_vm0, %v341_v2 }
  0xb0   : > { %v3784_v14 = vpop.permute.xlu1 %503  ;;  %v3813_v44 = vpop.permute.xlu0 %593 }
  0xb1   : > { %v3766_v6 = vpop.f32.mrf.mxu0  ;;  %v3768_v7 = vpop.f32.mrf.mxu1 }
  0xb4   : > { %3167 = vmatmul.msk.f32.gmra.mxu0 %vm771_vm0, %v342_v8  ;;  %3231 = vmatmul.msk.f32.gmra.mxu1 %vm771_vm0, %v342_v8 }
  0xb8   : > { %v3797_v24 = vpop.permute.xlu1 %583  ;;  %v499_v8 = vpop.permute.xlu0 %498 }
  0xb9   : > { %v3777_v11 = vpop.f32.mrf.mxu0  ;;  %v3779_v12 = vpop.f32.mrf.mxu1 }
  0xbc   : > { %3168 = vmatmul.msk.f32.gmra.mxu0 %vm771_vm0, %v343_v13  ;;  %3232 = vmatmul.msk.f32.gmra.mxu1 %vm771_vm0, %v343_v13 }
  0xc0   : > { %v489_v36 = vpop.permute.xlu1 %488 }
  0xc1   : > { %v996_v16 = vpop.f32.mrf.mxu0  ;;  %v1205_v17 = vpop.f32.mrf.mxu1 }
  0xc2   : > { %v997_v19 = vadd.f32 %v996_v16, %v479_v62  ;;  %v1206_v20 = vadd.f32 %v1205_v17, %v479_v62  ;;  %v348_v16 = vld [vmem:[%s5522_s1 + $0xc8] sm:$0xff] }
  0xc4   : > { %v1392_v22 = vmax.f32 %v997_v19, 0.0  ;;  %v1393_v23 = vmax.f32 %v1206_v20, 0.0  ;;  %3169 = vmatmul.msk.f32.gmra.mxu0 %vm771_vm0, %v344_v18  ;;  %3233 = vmatmul.msk.f32.gmra.mxu1 %vm771_vm0, %v344_v18 }
  0xc6   : > { %v1525_v25 = vadd.f32 %v1393_v23, %v1392_v22 }
  0xc8   : > { %1526 = vadd.xlane.f32.xlu2 %v1525_v25 }
  0xc9   : > { %v999_v26 = vpop.f32.mrf.mxu0  ;;  %v1208_v27 = vpop.f32.mrf.mxu1 }
  0xca   : > { %v1000_v29 = vadd.f32 %v999_v26, %v484_v9  ;;  %v1209_v30 = vadd.f32 %v1208_v27, %v484_v9  ;;  %v349_v26 = vld [vmem:[%s5522_s1 + $0xd0] sm:$0xff] }
  0xcc   : > { %v1394_v32 = vmax.f32 %v1000_v29, 0.0  ;;  %v1395_v33 = vmax.f32 %v1209_v30, 0.0  ;;  %3170 = vmatmul.msk.f32.gmra.mxu0 %vm771_vm0, %v345_v28  ;;  %3234 = vmatmul.msk.f32.gmra.mxu1 %vm771_vm0, %v345_v28 }
  0xce   : > { %v1528_v35 = vadd.f32 %v1395_v33, %v1394_v32 }
  0xd0   : > { %1529 = vadd.xlane.f32.xlu0 %v1528_v35 }
  0xd1   : > { %v1002_v37 = vpop.f32.mrf.mxu0  ;;  %v1211_v38 = vpop.f32.mrf.mxu1 }
  0xd2   : > { %v1003_v40 = vadd.f32 %v1002_v37, %v489_v36  ;;  %v1212_v41 = vadd.f32 %v1211_v38, %v489_v36  ;;  %v350_v36 = vld [vmem:[%s5522_s1 + $0xd8] sm:$0xff] }
  0xd4   : > { %v1396_v42 = vmax.f32 %v1003_v40, 0.0  ;;  %v1397_v43 = vmax.f32 %v1212_v41, 0.0  ;;  %3171 = vmatmul.msk.f32.gmra.mxu0 %vm771_vm0, %v346_v39  ;;  %3235 = vmatmul.msk.f32.gmra.mxu1 %vm771_vm0, %v346_v39 }
  0xd6   : > { %v1531_v45 = vadd.f32 %v1397_v43, %v1396_v42  ;;  %v351_v43 = vld [vmem:[%s5522_s1 + $0xe0] sm:$0xff] }
  0xd8   : > { %1532 = vadd.xlane.f32.xlu1 %v1531_v45 }
  0xd9   : > { %v1005_v47 = vpop.f32.mrf.mxu0  ;;  %v1214_v48 = vpop.f32.mrf.mxu1 }
  0xda   : > { %v1006_v51 = vadd.f32 %v1005_v47, %v494_v46  ;;  %v1215_v55 = vadd.f32 %v1214_v48, %v494_v46 }
  0xdc   : > { %v1398_v60 = vmax.f32 %v1006_v51, 0.0  ;;  %v1399_v62 = vmax.f32 %v1215_v55, 0.0  ;;  %3172 = vmatmul.msk.f32.gmra.mxu0 %vm771_vm0, %v347_v50  ;;  %3236 = vmatmul.msk.f32.gmra.mxu1 %vm771_vm0, %v347_v50  ;;  %v352_v55 = vld [vmem:[%s5522_s1 + $0xe8] sm:$0xff] }
  0xde   : > { %v1534_v2 = vadd.f32 %v1399_v62, %v1398_v60 }
  0xe0   : > { %1535 = vadd.xlane.f32.xlu2 %v1534_v2 }
  0xe1   : > { %v1008_v9 = vpop.f32.mrf.mxu0  ;;  %v1217_v13 = vpop.f32.mrf.mxu1 }
  0xe2   : > { %v1009_v17 = vadd.f32 %v1008_v9, %v499_v8  ;;  %v1218_v18 = vadd.f32 %v1217_v13, %v499_v8 }
  0xe4   : > { %v1400_v19 = vmax.f32 %v1009_v17, 0.0  ;;  %v1401_v20 = vmax.f32 %v1218_v18, 0.0  ;;  %3173 = vmatmul.msk.f32.gmra.mxu0 %vm771_vm0, %v348_v16  ;;  %3237 = vmatmul.msk.f32.gmra.mxu1 %vm771_vm0, %v348_v16  ;;  %v353_v16 = vld [vmem:[%s5522_s1 + $0xf0] sm:$0xff] }
  0xe6   : > { %v1537_v22 = vadd.f32 %v1401_v20, %v1400_v19 }
  0xe8   : > { %1538 = vadd.xlane.f32.xlu0 %v1537_v22 }
  0xe9   : > { %v1011_v23 = vpop.f32.mrf.mxu0  ;;  %v1220_v25 = vpop.f32.mrf.mxu1 }
  0xea   : > { %v1012_v27 = vadd.f32 %v1011_v23, %v3784_v14  ;;  %v1221_v28 = vadd.f32 %v1220_v25, %v3784_v14  ;;  %v354_v25 = vld [vmem:[%s5522_s1 + $0xf8] sm:$0xff] }
  0xec   : > { %v1402_v29 = vmax.f32 %v1012_v27, 0.0  ;;  %v1403_v30 = vmax.f32 %v1221_v28, 0.0  ;;  %3174 = vmatmul.msk.f32.gmra.mxu0 %vm771_vm0, %v349_v26  ;;  %3238 = vmatmul.msk.f32.gmra.mxu1 %vm771_vm0, %v349_v26 }
  0xee   : > { %v1540_v32 = vadd.f32 %v1403_v30, %v1402_v29 }
  0xf0   : > { %1541 = vadd.xlane.f32.xlu1 %v1540_v32 }
  0xf1   : > { %v1014_v33 = vpop.f32.mrf.mxu0  ;;  %v1223_v35 = vpop.f32.mrf.mxu1 }
  0xf2   : > { %v1015_v37 = vadd.f32 %v1014_v33, %v3793_v21  ;;  %v1224_v38 = vadd.f32 %v1223_v35, %v3793_v21  ;;  %v355_v33 = vld [vmem:[%s5522_s1 + $0x100] sm:$0xff] }
  0xf4   : > { %v1404_v39 = vmax.f32 %v1015_v37, 0.0  ;;  %v1405_v14 = vmax.f32 %v1224_v38, 0.0  ;;  %3175 = vmatmul.msk.f32.gmra.mxu0 %vm771_vm0, %v350_v36  ;;  %3239 = vmatmul.msk.f32.gmra.mxu1 %vm771_vm0, %v350_v36  ;;  %v356_v36 = vld [vmem:[%s5522_s1 + $0x108] sm:$0xff] }
  0xf6   : > { %v1543_v40 = vadd.f32 %v1405_v14, %v1404_v39  ;;  %v357_v39 = vld [vmem:[%s5522_s1 + $0x110] sm:$0xff] }
  0xf8   : > { %1544 = vadd.xlane.f32.xlu2 %v1543_v40 }
  0xf9   : > { %v1017_v41 = vpop.f32.mrf.mxu0  ;;  %v1226_v42 = vpop.f32.mrf.mxu1 }
  0xfa   : > { %v1018_v45 = vadd.f32 %v1017_v41, %v3802_v31  ;;  %v1227_v46 = vadd.f32 %v1226_v42, %v3802_v31  ;;  %v358_v41 = vld [vmem:[%s5522_s1 + $0x118] sm:$0xff] }
  0xfc   : > { %v1406_v47 = vmax.f32 %v1018_v45, 0.0  ;;  %v1407_v21 = vmax.f32 %v1227_v46, 0.0  ;;  %3176 = vmatmul.msk.f32.gmra.mxu0 %vm771_vm0, %v351_v43  ;;  %3240 = vmatmul.msk.f32.gmra.mxu1 %vm771_vm0, %v351_v43  ;;  %v359_v45 = vld [vmem:[%s5522_s1 + $0x120] sm:$0xff] }
  0xfe   : > { %v1546_v48 = vadd.f32 %v1407_v21, %v1406_v47  ;;  %v360_v21 = vld [vmem:[%s5522_s1 + $0x128] sm:$0xff] }
 0x100   : > { %1547 = vadd.xlane.f32.xlu0 %v1546_v48  ;;  %v579_v48 = vpop.permute.xlu0 %578 }
 0x101   : > { %v1020_v50 = vpop.f32.mrf.mxu0  ;;  %v1229_v51 = vpop.f32.mrf.mxu1 }
 0x102   : > { %v1021_v60 = vadd.f32 %v1020_v50, %v3749_v63  ;;  %v1230_v62 = vadd.f32 %v1229_v51, %v3749_v63  ;;  %v564_v50 = vpop.permute.xlu1 %563 }
 0x104   : > { %v1408_v2 = vmax.f32 %v1021_v60, 0.0  ;;  %v1409_v31 = vmax.f32 %v1230_v62, 0.0  ;;  %3177 = vmatmul.msk.f32.gmra.mxu0 %vm771_vm0, %v352_v55  ;;  %3241 = vmatmul.msk.f32.gmra.mxu1 %vm771_vm0, %v352_v55  ;;  %v361_v60 = vld [vmem:[%s5522_s1 + $0x130] sm:$0xff] }
 0x106   : > { %v1549_v8 = vadd.f32 %v1409_v31, %v1408_v2 }
 0x108   : > { %1550 = vadd.xlane.f32.xlu2 %v1549_v8 }
 0x109   : > { %v1023_v9 = vpop.f32.mrf.mxu0  ;;  %v1232_v13 = vpop.f32.mrf.mxu1 }
 0x10a   : > { %v1024_v17 = vadd.f32 %v1023_v9, %v3762_v4  ;;  %v1233_v18 = vadd.f32 %v1232_v13, %v3762_v4  ;;  %v574_v9 = vpop.permute.xlu2 %573 }
 0x10c   : > { %v1410_v19 = vmax.f32 %v1024_v17, 0.0  ;;  %v1411_v63 = vmax.f32 %v1233_v18, 0.0  ;;  %3178 = vmatmul.msk.f32.gmra.mxu0 %vm771_vm0, %v353_v16  ;;  %3242 = vmatmul.msk.f32.gmra.mxu1 %vm771_vm0, %v353_v16  ;;  %v569_v16 = vpop.permute.xlu0 %568 }
 0x10e   : > { %v1552_v20 = vadd.f32 %v1411_v63, %v1410_v19  ;;  %v362_v19 = vld [vmem:[%s5522_s1 + $0x138] sm:$0xff] }
 0x110   : > { %1553 = vadd.xlane.f32.xlu0 %v1552_v20 }
 0x111   : > { %v1026_v22 = vpop.f32.mrf.mxu0  ;;  %v1235_v23 = vpop.f32.mrf.mxu1 }
 0x112   : > { %v1027_v26 = vadd.f32 %v1026_v22, %v3736_v57  ;;  %v1236_v27 = vadd.f32 %v1235_v23, %v3736_v57 }
 0x114   : > { %v1412_v28 = vmax.f32 %v1027_v26, 0.0  ;;  %v1413_v4 = vmax.f32 %v1236_v27, 0.0  ;;  %3179 = vmatmul.msk.f32.gmra.mxu0 %vm771_vm0, %v354_v25  ;;  %3243 = vmatmul.msk.f32.gmra.mxu1 %vm771_vm0, %v354_v25  ;;  %v3931_v26 = vpop.permute.xlu2 %558 }
 0x116   : > { %v1555_v29 = vadd.f32 %v1413_v4, %v1412_v28  ;;  %v363_v4 = vld [vmem:[%s5522_s1 + $0x140] sm:$0xff] }
 0x118   : > { %1556 = vadd.xlane.f32.xlu2 %v1555_v29 }
 0x119   : > { %v3867_v30 = vpop.f32.mrf.mxu0  ;;  %v3869_v32 = vpop.f32.mrf.mxu1 }
 0x11c   : > { %3180 = vmatmul.msk.f32.gmra.mxu0 %vm771_vm0, %v355_v33  ;;  %3244 = vmatmul.msk.f32.gmra.mxu1 %vm771_vm0, %v355_v33 }
 0x121   : > { %v3876_v57 = vpop.f32.mrf.mxu0  ;;  %v3878_v35 = vpop.f32.mrf.mxu1 }
 0x124   : > { %3181 = vmatmul.msk.f32.gmra.mxu0 %vm771_vm0, %v356_v36  ;;  %3245 = vmatmul.msk.f32.gmra.mxu1 %vm771_vm0, %v356_v36 }
 0x129   : > { %v3885_v37 = vpop.f32.mrf.mxu0  ;;  %v3887_v38 = vpop.f32.mrf.mxu1 }
 0x12c   : > { %3182 = vmatmul.msk.f32.gmra.mxu0 %vm771_vm0, %v357_v39  ;;  %3246 = vmatmul.msk.f32.gmra.mxu1 %vm771_vm0, %v357_v39 }
 0x131   : > { %v3894_v14 = vpop.f32.mrf.mxu0  ;;  %v3896_v40 = vpop.f32.mrf.mxu1 }
 0x134   : > { %3183 = vmatmul.msk.f32.gmra.mxu0 %vm771_vm0, %v358_v41  ;;  %3247 = vmatmul.msk.f32.gmra.mxu1 %vm771_vm0, %v358_v41  ;;  %v3938_v41 = vpop.permute.xlu0 %553 }
 0x139   : > { %v3903_v42 = vpop.f32.mrf.mxu0  ;;  %v3905_v43 = vpop.f32.mrf.mxu1 }
 0x13c   : > { %3184 = vmatmul.msk.f32.gmra.mxu0 %vm771_vm0, %v359_v45  ;;  %3248 = vmatmul.msk.f32.gmra.mxu1 %vm771_vm0, %v359_v45 }
 0x141   : > { %v3912_v46 = vpop.f32.mrf.mxu0  ;;  %v3914_v47 = vpop.f32.mrf.mxu1 }
 0x144   : > { %3185 = vmatmul.msk.f32.gmra.mxu0 %vm771_vm0, %v360_v21  ;;  %3249 = vmatmul.msk.f32.gmra.mxu1 %vm771_vm0, %v360_v21 }
 0x149   : > { %v1047_v51 = vpop.f32.mrf.mxu0  ;;  %v1256_v55 = vpop.f32.mrf.mxu1 }
 0x14a   : > { %v1048_v62 = vadd.f32 %v1047_v51, %v564_v50  ;;  %v1257_v2 = vadd.f32 %v1256_v55, %v564_v50  ;;  %v364_v51 = vld [vmem:[%s5522_s1 + $0x148] sm:$0xff] }
 0x14c   : > { %v1426_v31 = vmax.f32 %v1048_v62, 0.0  ;;  %v1427_v8 = vmax.f32 %v1257_v2, 0.0  ;;  %3186 = vmatmul.msk.f32.gmra.mxu0 %vm771_vm0, %v361_v60  ;;  %3250 = vmatmul.msk.f32.gmra.mxu1 %vm771_vm0, %v361_v60  ;;  %v3943_v62 = vpop.permute.xlu2 %543 }
 0x14e   : > { %v1576_v13 = vadd.f32 %v1427_v8, %v1426_v31 }
 0x150   : > { %1577 = vadd.xlane.f32.xlu0 %v1576_v13 }
 0x151   : > { %v1050_v17 = vpop.f32.mrf.mxu0  ;;  %v1259_v18 = vpop.f32.mrf.mxu1 }
 0x152   : > { %v1051_v63 = vadd.f32 %v1050_v17, %v569_v16  ;;  %v1260_v20 = vadd.f32 %v1259_v18, %v569_v16  ;;  %v365_v17 = vld [vmem:[%s5522_s1 + $0x150] sm:$0xff] }
 0x154   : > { %v1428_v22 = vmax.f32 %v1051_v63, 0.0  ;;  %v1429_v23 = vmax.f32 %v1260_v20, 0.0  ;;  %3187 = vmatmul.msk.f32.gmra.mxu0 %vm771_vm0, %v362_v19  ;;  %3251 = vmatmul.msk.f32.gmra.mxu1 %vm771_vm0, %v362_v19  ;;  %v3954_v19 = vpop.xlane.xlu2 %1526 }
 0x156   : > { %v1579_v25 = vadd.f32 %v1429_v23, %v1428_v22 }
 0x158   : > { %1580 = vadd.xlane.f32.xlu1 %v1579_v25 }
 0x159   : > { %v1053_v27 = vpop.f32.mrf.mxu0  ;;  %v1262_v28 = vpop.f32.mrf.mxu1 }
 0x15a   : > { %v1054_v29 = vadd.f32 %v1053_v27, %v574_v9  ;;  %v1263_v33 = vadd.f32 %v1262_v28, %v574_v9  ;;  %v3947_v9 = vpop.permute.xlu0 %538  ;;  %v366_v28 = vld [vmem:[%s5522_s1 + $0x158] sm:$0xff] }
 0x15c   : > { %v1430_v36 = vmax.f32 %v1054_v29, 0.0  ;;  %v1431_v39 = vmax.f32 %v1263_v33, 0.0  ;;  %3188 = vmatmul.msk.f32.gmra.mxu0 %vm771_vm0, %v363_v4  ;;  %3252 = vmatmul.msk.f32.gmra.mxu1 %vm771_vm0, %v363_v4  ;;  %v3965_v29 = vpop.xlane.xlu2 %1535 }
 0x15e   : > { %v1582_v45 = vadd.f32 %v1431_v39, %v1430_v36  ;;  %v549_v39 = vpop.permute.xlu1 %548 }
 0x160   : > { %1583 = vadd.xlane.f32.xlu2 %v1582_v45 }
 0x161   : > { %v1056_v21 = vpop.f32.mrf.mxu0  ;;  %v1265_v50 = vpop.f32.mrf.mxu1 }
 0x162   : > { %v1057_v55 = vadd.f32 %v1056_v21, %v579_v48  ;;  %v1266_v60 = vadd.f32 %v1265_v50, %v579_v48  ;;  %v3958_v23 = vpop.xlane.xlu0 %1529 }
 0x164   : > { %v1432_v2 = vmax.f32 %v1057_v55, 0.0  ;;  %v1433_v31 = vmax.f32 %v1266_v60, 0.0  ;;  %3189 = vmatmul.msk.f32.gmra.mxu0 %vm771_vm0, %v364_v51  ;;  %3253 = vmatmul.msk.f32.gmra.mxu1 %vm771_vm0, %v364_v51  ;;  %v367_v55 = vld [vmem:[%s5522_s1 + $0x160] sm:$0xff] }
 0x166   : > { %v1585_v8 = vadd.f32 %v1433_v31, %v1432_v2 }
 0x168   : > { %1586 = vadd.xlane.f32.xlu0 %v1585_v8 }
 0x169   : > { %v1059_v13 = vpop.f32.mrf.mxu0  ;;  %v1268_v16 = vpop.f32.mrf.mxu1 }
 0x16a   : > { %v1060_v48 = vadd.f32 %v1059_v13, %v3797_v24  ;;  %v1269_v18 = vadd.f32 %v1268_v16, %v3797_v24  ;;  %v3969_v21 = vpop.xlane.xlu0 %1538  ;;  %v991_v13 = vadd.f32 %v3766_v6, %v3721_v52  ;;  %v1200_v16 = vadd.f32 %v3768_v7, %v3721_v52 }
 0x16b   : > { %v3976_v2 = vpop.xlane.xlu2 %1544 }
 0x16c   : > { %v1434_v63 = vmax.f32 %v1060_v48, 0.0  ;;  %v1435_v20 = vmax.f32 %v1269_v18, 0.0  ;;  %3190 = vmatmul.msk.f32.gmra.mxu0 %vm771_vm0, %v365_v17  ;;  %3254 = vmatmul.msk.f32.gmra.mxu1 %vm771_vm0, %v365_v17  ;;  %v3984_v48 = vpop.permute.xlu1 %533 }
 0x16e   : > { %v1588_v22 = vadd.f32 %v1435_v20, %v1434_v63  ;;  %v368_v20 = vld [vmem:[%s5522_s1 + $0x168] sm:$0xff] }
 0x170   : > { %1589 = vadd.xlane.f32.xlu1 %v1588_v22  ;;  %v1388_v22 = vmax.f32 %v991_v13, 0.0 }
 0x171   : > { %v1062_v25 = vpop.f32.mrf.mxu0  ;;  %v1271_v27 = vpop.f32.mrf.mxu1 }
 0x172   : > { %v1063_v24 = vadd.f32 %v1062_v25, %v3806_v34  ;;  %v1272_v4 = vadd.f32 %v1271_v27, %v3806_v34  ;;  %v1389_v25 = vmax.f32 %v1200_v16, 0.0 }
 0x173   : > { %v1548_v18 = vpop.xlane.xlu0 %1547 }
 0x174   : > { %v1436_v33 = vmax.f32 %v1063_v24, 0.0  ;;  %v1437_v36 = vmax.f32 %v1272_v4, 0.0  ;;  %3191 = vmatmul.msk.f32.gmra.mxu0 %vm771_vm0, %v366_v28  ;;  %3255 = vmatmul.msk.f32.gmra.mxu1 %vm771_vm0, %v366_v28  ;;  %v5527_v28 = vlaneseq  ;;  %v1039_v4 = vadd.f32 %v3894_v14, %v549_v39 }
 0x176   : > { %v1591_v45 = vadd.f32 %v1437_v36, %v1436_v33  ;;  %v1248_v33 = vadd.f32 %v3896_v40, %v549_v39 }
 0x178   : > { %1592 = vadd.xlane.f32.xlu2 %v1591_v45  ;;  %v1519_v45 = vadd.f32 %v1389_v25, %v1388_v22  ;;  %v1421_v14 = vmax.f32 %v1248_v33, 0.0 }
 0x179   : > { %v1065_v50 = vpop.f32.mrf.mxu0  ;;  %v1274_v51 = vpop.f32.mrf.mxu1 }
 0x17a   : > { %v1066_v34 = vadd.f32 %v1065_v50, %v3813_v44  ;;  %v1275_v60 = vadd.f32 %v1274_v51, %v3813_v44  ;;  %v3996_v50 = vand.u32 127, %v5527_v28  ;;  %v3998_v51 = vpop.xlane.xlu1 %1532 }
 0x17b   : > { %v1551_v24 = vpop.xlane.xlu2 %1550 }
 0x17c   : > { %v1438_v31 = vmax.f32 %v1066_v34, 0.0  ;;  %v1439_v8 = vmax.f32 %v1275_v60, 0.0  ;;  %3192 = vmatmul.msk.f32.gmra.mxu0 %vm771_vm0, %v367_v55  ;;  %3256 = vmatmul.msk.f32.gmra.mxu1 %vm771_vm0, %v367_v55  ;;  %5532 = vst [vmem:[#allocation6_spill] sm:$0xff] %v3996_v50  ;;  %v369_v60 = vld [vmem:[%s5522_s1 + $0x170] sm:$0xff]  ;;  %vm1766_vm1 = vcmp.eq.s32.totalorder %v3996_v50, 0 }
 0x17d   : > { %v1782_v22 = vsel %vm1766_vm1, %v1551_v24, 0.0 }
 0x17e   : > { %v1594_v17 = vadd.f32 %v1439_v8, %v1438_v31  ;;  %v1420_v31 = vmax.f32 %v1039_v4, 0.0 }
 0x180   : > { %1595 = vadd.xlane.f32.xlu0 %v1594_v17 }
 0x181   : > { %v1068_v44 = vpop.f32.mrf.mxu0  ;;  %v1277_v63 = vpop.f32.mrf.mxu1 }
 0x182   : > { %v1069_v27 = vadd.f32 %v1068_v44, %v3764_v5  ;;  %v1278_v6 = vadd.f32 %v1277_v63, %v3764_v5  ;;  %v1045_v63 = vadd.f32 %v3912_v46, %v3931_v26  ;;  %v1542_v4 = vpop.xlane.xlu1 %1541  ;;  %v1781_v46 = vsel %vm1766_vm1, %v1548_v18, 0.0 }
 0x183   : > { %v1554_v5 = vpop.xlane.xlu0 %1553 }
 0x184   : > { %v1440_v52 = vmax.f32 %v1069_v27, 0.0  ;;  %v1441_v7 = vmax.f32 %v1278_v6, 0.0  ;;  %3193 = vmatmul.msk.f32.gmra.mxu0 %vm771_vm0, %v368_v20  ;;  %3257 = vmatmul.msk.f32.gmra.mxu1 %vm771_vm0, %v368_v20  ;;  %v1783_v13 = vsel %vm1766_vm1, %v1554_v5, 0.0  ;;  %v1567_v27 = vadd.f32 %v1421_v14, %v1420_v31 }
 0x185   : > { %v982_v6 = vadd.f32 %v3725_v53, %v3745_v61  ;;  %v370_v53 = vld [vmem:[%s5522_s1 + $0x178] sm:$0xff] }
 0x186   : > { %v1597_v36 = vadd.f32 %v1441_v7, %v1440_v52  ;;  %v1191_v52 = vadd.f32 %v3727_v54, %v3745_v61  ;;  %v2042_v7 = vmul.f32 0.00390625, %v1783_v13  ;;  %v1780_v61 = vsel %vm1766_vm1, %v3976_v2, 0.0 }
 0x187   : > { %v994_v2 = vadd.f32 %v3777_v11, %v3732_v56  ;;  %v2039_v14 = vmul.f32 0.00390625, %v1780_v61  ;;  %v988_v13 = vadd.f32 %v3751_v0, %v3711_v49 }
 0x188   : > { %1598 = vadd.xlane.f32.xlu1 %v1597_v36  ;;  %1520 = vadd.xlane.f32.xlu0 %v1519_v45  ;;  %v1382_v45 = vmax.f32 %v982_v6, 0.0  ;;  %v1383_v5 = vmax.f32 %v1191_v52, 0.0  ;;  %v1774_v6 = vsel %vm1766_vm1, %v3954_v19, 0.0  ;;  %v372_v19 = vld [vmem:[%s5522_s1 + $0x188] sm:$0xff] }
 0x189   : > { %v1071_v55 = vpop.f32.mrf.mxu0  ;;  %v1280_v34 = vpop.f32.mrf.mxu1  ;;  %v1390_v0 = vmax.f32 %v994_v2, 0.0  ;;  %v374_v2 = vld [vmem:[%s5522_s1 + $0x198] sm:$0xff] }
 0x18a   : > { %v1072_v40 = vadd.f32 %v1071_v55, %v3775_v10  ;;  %v1281_v39 = vadd.f32 %v1280_v34, %v3775_v10  ;;  %v1254_v10 = vadd.f32 %v3914_v47, %v3931_v26  ;;  %v1424_v47 = vmax.f32 %v1045_v63, 0.0 }
 0x18b   : > { %v1557_v8 = vpop.xlane.xlu2 %1556  ;;  %v2041_v26 = vmul.f32 0.00390625, %v1782_v22  ;;  %v2040_v55 = vmul.f32 0.00390625, %v1781_v46  ;;  %v1779_v34 = vsel %vm1766_vm1, %v1542_v4, 0.0  ;;  %v1510_v11 = vadd.f32 %v1383_v5, %v1382_v45 }
 0x18c   : > { %v1442_v16 = vmax.f32 %v1072_v40, 0.0  ;;  %v1443_v17 = vmax.f32 %v1281_v39, 0.0  ;;  %v1784_v44 = vsel %vm1766_vm1, %v1557_v8, 0.0  ;;  %3194 = vmatmul.msk.f32.gmra.mxu0 %vm771_vm0, %v369_v60  ;;  %3258 = vmatmul.msk.f32.gmra.mxu1 %vm771_vm0, %v369_v60  ;;  %v1425_v54 = vmax.f32 %v1254_v10, 0.0 }
 0x18d   : > { %v2043_v20 = vmul.f32 0.00390625, %v1784_v44  ;;  %v1778_v40 = vsel %vm1766_vm1, %v3969_v21, 0.0  ;;  %v1776_v63 = vsel %vm1766_vm1, %v3998_v51, 0.0  ;;  %v1775_v22 = vsel %vm1766_vm1, %v3958_v23, 0.0 }
 0x18e   : > { %v1600_v25 = vadd.f32 %v1443_v17, %v1442_v16  ;;  %v1573_v8 = vadd.f32 %v1425_v54, %v1424_v47  ;;  %v1197_v16 = vadd.f32 %v3753_v1, %v3711_v49  ;;  %v2038_v17 = vmul.f32 0.00390625, %v1779_v34  ;;  %v371_v49 = vld [vmem:[%s5522_s1 + $0x180] sm:$0xff] }
 0x18f   : > { %2412 = vmatpush.msrb.mxu0 %v2043_v20  ;;  %3281 = vmatpush.msra.mxu2 %v2043_v20  ;;  %v1251_v51 = vadd.f32 %v3905_v43, %v3938_v41  ;;  %v1036_v23 = vadd.f32 %v3885_v37, %v3943_v62  ;;  %v2034_v4 = vmul.f32 0.00390625, %v1775_v22  ;;  %v1239_v54 = vadd.f32 %v3869_v32, %v3984_v48  ;;  %v378_v22 = vld [vmem:[%s5522_s1 + $0x1b8] sm:$0xff] }
 0x190   : > { %1601 = vadd.xlane.f32.xlu2 %v1600_v25  ;;  %1568 = vadd.xlane.f32.xlu0 %v1567_v27  ;;  %v1387_v20 = vmax.f32 %v1197_v16, 0.0  ;;  %v2035_v25 = vmul.f32 0.00390625, %v1776_v63  ;;  %v1042_v27 = vadd.f32 %v3903_v42, %v3938_v41  ;;  %v2033_v42 = vmul.f32 0.00390625, %v1774_v6  ;;  %v448_v63 = vld [vmem:[%s5523_s2 + $0x1e8] sm:$0xff] }
 0x191   : > { %v1074_v24 = vpop.f32.mrf.mxu0  ;;  %v1283_v33 = vpop.f32.mrf.mxu1  ;;  %2413 = vmatpush.msrb.mxu0 %v2042_v7  ;;  %3282 = vmatpush.msra.mxu2 %v2042_v7  ;;  %v1245_v7 = vadd.f32 %v3887_v38, %v3943_v62  ;;  %v1423_v47 = vmax.f32 %v1251_v51, 0.0  ;;  %v1418_v38 = vmax.f32 %v1036_v23, 0.0  ;;  %v1415_v5 = vmax.f32 %v1239_v54, 0.0  ;;  %v449_v51 = vld [vmem:[%s5523_s2 + $0x1f0] sm:$0xff]  ;;  %v379_v23 = vld [vmem:[%s5522_s1 + $0x1c0] sm:$0xff]  ;;  %v422_v54 = vld [vmem:[%s5523_s2 + $0x118] sm:$0xff] }
 0x192   : > { %v1075_v36 = vadd.f32 %v1074_v24, %v3788_v15  ;;  %v1284_v18 = vadd.f32 %v1283_v33, %v3788_v15  ;;  %v1203_v15 = vadd.f32 %v3779_v12, %v3732_v56  ;;  %v1777_v56 = vsel %vm1766_vm1, %v3965_v29, 0.0 }
 0x193   : > { %2414 = vmatpush.msrb.mxu0 %v2041_v26  ;;  %3283 = vmatpush.msra.mxu2 %v2041_v26  ;;  %v2037_v12 = vmul.f32 0.00390625, %v1778_v40  ;;  %v1386_v29 = vmax.f32 %v988_v13, 0.0  ;;  %v2036_v10 = vmul.f32 0.00390625, %v1777_v56  ;;  %v1422_v37 = vmax.f32 %v1042_v27, 0.0  ;;  %v450_v56 = vld [vmem:[%s5523_s2 + $0x1f8] sm:$0xff]  ;;  %v429_v27 = vld [vmem:[%s5523_s2 + $0x150] sm:$0xff] }
 0x194   : > { %v1444_v60 = vmax.f32 %v1075_v36, 0.0  ;;  %v1445_v31 = vmax.f32 %v1284_v18, 0.0  ;;  %3195 = vmatmul.msk.f32.gmra.mxu0 %vm771_vm0, %v370_v53  ;;  %3259 = vmatmul.msk.f32.gmra.mxu1 %vm771_vm0, %v370_v53  ;;  %v1391_v1 = vmax.f32 %v1203_v15, 0.0  ;;  %v1419_v62 = vmax.f32 %v1245_v7, 0.0  ;;  %v425_v7 = vld [vmem:[%s5523_s2 + $0x130] sm:$0xff] }
 0x195   : > { %2415 = vmatpush.msrb.mxu0 %v2040_v55  ;;  %3284 = vmatpush.msra.mxu2 %v2040_v55  ;;  %v1516_v46 = vadd.f32 %v1387_v20, %v1386_v29  ;;  %v985_v26 = vadd.f32 %v3738_v58, %v3760_v3  ;;  %v1194_v24 = vadd.f32 %v3740_v59, %v3760_v3  ;;  %v373_v58 = vld [vmem:[%s5522_s1 + $0x190] sm:$0xff]  ;;  %v434_v3 = vld [vmem:[%s5523_s2 + $0x178] sm:$0xff] }
 0x196   : > { %v1603_v39 = vadd.f32 %v1445_v31, %v1444_v60  ;;  %v1522_v52 = vadd.f32 %v1391_v1, %v1390_v0  ;;  %v1570_v33 = vadd.f32 %v1423_v47, %v1422_v37  ;;  %v1030_v53 = vadd.f32 %v3867_v30, %v3984_v48  ;;  %v377_v0 = vld [vmem:[%s5522_s1 + $0x1b0] sm:$0xff]  ;;  %v428_v1 = vld [vmem:[%s5523_s2 + $0x148] sm:$0xff] }
 0x197   : > { %2416 = vmatpush.msrb.mxu0 %v2039_v14  ;;  %3285 = vmatpush.msra.mxu2 %v2039_v14  ;;  %v1564_v61 = vadd.f32 %v1419_v62, %v1418_v38  ;;  %v1384_v45 = vmax.f32 %v985_v26, 0.0  ;;  %v1385_v59 = vmax.f32 %v1194_v24, 0.0  ;;  %v1033_v32 = vadd.f32 %v3876_v57, %v3947_v9  ;;  %v432_v57 = vld [vmem:[%s5523_s2 + $0x168] sm:$0xff]  ;;  %v433_v29 = vld [vmem:[%s5523_s2 + $0x170] sm:$0xff]  ;;  %v426_v38 = vld [vmem:[%s5523_s2 + $0x138] sm:$0xff] }
 0x198   : > { %1604 = vadd.xlane.f32.xlu1 %v1603_v39  ;;  %1574 = vadd.xlane.f32.xlu2 %v1573_v8  ;;  %v1414_v30 = vmax.f32 %v1030_v53, 0.0  ;;  %v1242_v48 = vadd.f32 %v3878_v35, %v3947_v9  ;;  %v375_v39 = vld [vmem:[%s5522_s1 + $0x1a0] sm:$0xff]  ;;  %v380_v37 = vld [vmem:[%s5522_s1 + $0x1c8] sm:$0xff]  ;;  %v441_v47 = vld [vmem:[%s5523_s2 + $0x1b0] sm:$0xff] }
 0x199   : > { %1511 = vadd.xlane.f32.xlu0 %v1510_v11  ;;  %v4050_v21 = vpop.f32.mrf.mxu0  ;;  %v4052_v44 = vpop.f32.mrf.mxu1  ;;  %2417 = vmatpush.msrb.mxu0 %v2038_v17  ;;  %v1513_v55 = vadd.f32 %v1385_v59, %v1384_v45  ;;  %v1416_v14 = vmax.f32 %v1033_v32, 0.0  ;;  %v431_v8 = vld [vmem:[%s5523_s2 + $0x160] sm:$0xff]  ;;  %v446_v62 = vld [vmem:[%s5523_s2 + $0x1d8] sm:$0xff]  ;;  %v381_v53 = vld [vmem:[%s5522_s1 + $0x1d0] sm:$0xff] }
 0x19a   : > { %3286 = vmatpush.msra.mxu2 %v2038_v17  ;;  %v1558_v34 = vadd.f32 %v1415_v5, %v1414_v30  ;;  %v1417_v15 = vmax.f32 %v1242_v48, 0.0  ;;  %v376_v17 = vld [vmem:[%s5522_s1 + $0x1a8] sm:$0xff]  ;;  %v447_v11 = vld [vmem:[%s5523_s2 + $0x1e0] sm:$0xff]  ;;  %v382_v30 = vld [vmem:[%s5522_s1 + $0x1d8] sm:$0xff] }
 0x19b   : > { %2418 = vmatpush.msrb.mxu0 %v2037_v12  ;;  %v438_v32 = vld [vmem:[%s5523_s2 + $0x198] sm:$0xff] }
 0x19c   : > { %3287 = vmatpush.msra.mxu2 %v2037_v12  ;;  %3196 = vmatmul.msk.f32.gmra.mxu0 %vm771_vm0, %v371_v49  ;;  %v1561_v35 = vadd.f32 %v1417_v15, %v1416_v14 }
 0x19d   : > { %3260 = vmatmul.msk.f32.gmra.mxu1 %vm771_vm0, %v371_v49  ;;  %2419 = vmatpush.msrb.mxu0 %v2036_v10 }
 0x19e   : > { %3288 = vmatpush.msra.mxu2 %v2036_v10 }
 0x19f   : > { %2420 = vmatpush.msrb.mxu0 %v2035_v25 }
 0x1a0   : > { %3289 = vmatpush.msra.mxu2 %v2035_v25  ;;  %1523 = vadd.xlane.f32.xlu1 %v1522_v52  ;;  %v444_v25 = vld [vmem:[%s5523_s2 + $0x1c8] sm:$0xff] }
 0x1a1   : > { %1517 = vadd.xlane.f32.xlu2 %v1516_v46  ;;  %v4076_v43 = vpop.f32.mrf.mxu0  ;;  %v4078_v41 = vpop.f32.mrf.mxu1  ;;  %2421 = vmatpush.msrb.mxu0 %v2034_v4  ;;  %v430_v46 = vld [vmem:[%s5523_s2 + $0x158] sm:$0xff] }
 0x1a2   : > { %3290 = vmatpush.msra.mxu2 %v2034_v4  ;;  %v445_v4 = vld [vmem:[%s5523_s2 + $0x1d0] sm:$0xff] }
 0x1a3   : > { %2422 = vmatpush.msrb.mxu0 %v2033_v42 }
 0x1a4   : > { %3291 = vmatpush.msra.mxu2 %v2033_v42  ;;  %3197 = vmatmul.msk.f32.gmra.mxu0 %vm771_vm0, %v372_v19 }
 0x1a5   : > { %3261 = vmatmul.msk.f32.gmra.mxu1 %vm771_vm0, %v372_v19 }
 0x1a8   : > { %1571 = vadd.xlane.f32.xlu1 %v1570_v33 }
 0x1a9   : > { %1565 = vadd.xlane.f32.xlu2 %v1564_v61  ;;  %v4093_v36 = vpop.f32.mrf.mxu0  ;;  %v4095_v18 = vpop.f32.mrf.mxu1  ;;  %v442_v61 = vld [vmem:[%s5523_s2 + $0x1b8] sm:$0xff] }
 0x1ac   : > { %3198 = vmatmul.msk.f32.gmra.mxu0 %vm771_vm0, %v373_v58 }
 0x1ad   : > { %3262 = vmatmul.msk.f32.gmra.mxu1 %vm771_vm0, %v373_v58  ;;  %688 = vperm.xlu0 %3369, %v434_v3   ;;  %v427_v58 = vld [vmem:[%s5523_s2 + $0x140] sm:$0xff] }
 0x1b0   : > { %1514 = vadd.xlane.f32.xlu1 %v1513_v55  ;;  %v423_v55 = vld [vmem:[%s5523_s2 + $0x120] sm:$0xff] }
 0x1b1   : > { %1559 = vadd.xlane.f32.xlu2 %v1558_v34  ;;  %v4109_v60 = vpop.f32.mrf.mxu0  ;;  %v4111_v31 = vpop.f32.mrf.mxu1  ;;  %v443_v34 = vld [vmem:[%s5523_s2 + $0x1c0] sm:$0xff] }
 0x1b4   : > { %3199 = vmatmul.msk.f32.gmra.mxu0 %vm771_vm0, %v374_v2 }
 0x1b5   : > { %3263 = vmatmul.msk.f32.gmra.mxu1 %vm771_vm0, %v374_v2  ;;  %678 = vperm.xlu0 %3369, %v432_v57   ;;  %v383_v57 = vld [vmem:[%s5522_s1 + $0x1e0] sm:$0xff] }
 0x1b8   : > { %1562 = vadd.xlane.f32.xlu1 %v1561_v35 }
 0x1b9   : > { %v4121_v9 = vpop.f32.mrf.mxu0  ;;  %v4123_v40 = vpop.f32.mrf.mxu1 }
 0x1bc   : > { %3200 = vmatmul.msk.f32.gmra.mxu0 %vm771_vm0, %v375_v39 }
 0x1bd   : > { %3264 = vmatmul.msk.f32.gmra.mxu1 %vm771_vm0, %v375_v39  ;;  %673 = vperm.xlu0 %3369, %v431_v8   ;;  %v419_v39 = vld [vmem:[%s5523_s2 + $0x100] sm:$0xff] }
 0x1c1   : > { %v4133_v13 = vpop.f32.mrf.mxu0  ;;  %v4135_v16 = vpop.f32.mrf.mxu1 }
 0x1c3   : > { %v4220_v26 = vpop.xlane.xlu0 %1577 }
 0x1c4   : > { %3201 = vmatmul.msk.f32.gmra.mxu0 %vm771_vm0, %v376_v17 }
 0x1c5   : > { %3265 = vmatmul.msk.f32.gmra.mxu1 %vm771_vm0, %v376_v17  ;;  %753 = vperm.xlu0 %3369, %v447_v11   ;;  %v439_v17 = vld [vmem:[%s5523_s2 + $0x1a0] sm:$0xff]  ;;  %v424_v11 = vld [vmem:[%s5523_s2 + $0x128] sm:$0xff] }
 0x1c9   : > { %768 = vperm.xlu2 %3371, %v450_v56   ;;  %v4148_v12 = vpop.f32.mrf.mxu0  ;;  %v4150_v49 = vpop.f32.mrf.mxu1 }
 0x1cb   : > { %v4249_v5 = vpop.xlane.xlu1 %1580 }
 0x1cc   : > { %3202 = vmatmul.msk.f32.gmra.mxu0 %vm771_vm0, %v377_v0 }
 0x1cd   : > { %3266 = vmatmul.msk.f32.gmra.mxu1 %vm771_vm0, %v377_v0  ;;  %658 = vperm.xlu0 %3369, %v428_v1   ;;  %v384_v1 = vld [vmem:[%s5522_s1 + $0x1e8] sm:$0xff] }
 0x1d1   : > { %758 = vperm.xlu2 %3371, %v448_v63   ;;  %v4166_v20 = vpop.f32.mrf.mxu0  ;;  %v4168_v10 = vpop.f32.mrf.mxu1  ;;  %683 = vperm.xlu1 %3370, %v433_v29  }
 0x1d3   : > { %v4254_v48 = vpop.xlane.xlu2 %1583 }
 0x1d4   : > { %3203 = vmatmul.msk.f32.gmra.mxu0 %vm771_vm0, %v378_v22 }
 0x1d5   : > { %3267 = vmatmul.msk.f32.gmra.mxu1 %vm771_vm0, %v378_v22  ;;  %738 = vperm.xlu0 %3369, %v444_v25   ;;  %v420_v25 = vld [vmem:[%s5523_s2 + $0x108] sm:$0xff] }
 0x1d9   : > { %663 = vperm.xlu2 %3371, %v429_v27   ;;  %v4184_v6 = vpop.f32.mrf.mxu0  ;;  %v4186_v52 = vpop.f32.mrf.mxu1  ;;  %763 = vperm.xlu1 %3370, %v449_v51   ;;  %v440_v27 = vld [vmem:[%s5523_s2 + $0x1a8] sm:$0xff] }
 0x1db   : > { %v4240_v45 = vpop.xlane.xlu0 %1586 }
 0x1dc   : > { %3204 = vmatmul.msk.f32.gmra.mxu0 %vm771_vm0, %v379_v23 }
 0x1dd   : > { %3268 = vmatmul.msk.f32.gmra.mxu1 %vm771_vm0, %v379_v23  ;;  %643 = vperm.xlu0 %3369, %v425_v7   ;;  %v385_v7 = vld [vmem:[%s5522_s1 + $0x1f0] sm:$0xff] }
 0x1e1   : > { %743 = vperm.xlu2 %3371, %v445_v4   ;;  %v4202_v42 = vpop.f32.mrf.mxu0  ;;  %v4204_v19 = vpop.f32.mrf.mxu1  ;;  %668 = vperm.xlu1 %3370, %v430_v46  }
 0x1e3   : > { %v1590_v35 = vpop.xlane.xlu1 %1589 }
 0x1e4   : > { %3205 = vmatmul.msk.f32.gmra.mxu0 %vm771_vm0, %v380_v37 }
 0x1e5   : > { %3269 = vmatmul.msk.f32.gmra.mxu1 %vm771_vm0, %v380_v37  ;;  %723 = vperm.xlu0 %3369, %v441_v47  }
 0x1e9   : > { %648 = vperm.xlu2 %3371, %v426_v38   ;;  %v4222_v24 = vpop.f32.mrf.mxu0  ;;  %v4224_v33 = vpop.f32.mrf.mxu1  ;;  %748 = vperm.xlu1 %3370, %v446_v62  }
 0x1eb   : > { %v1593_v8 = vpop.xlane.xlu2 %1592 }
 0x1ec   : > { %3206 = vmatmul.msk.f32.gmra.mxu0 %vm771_vm0, %v381_v53 }
 0x1ed   : > { %3270 = vmatmul.msk.f32.gmra.mxu1 %vm771_vm0, %v381_v53  ;;  %628 = vperm.xlu0 %3369, %v422_v54   ;;  %v436_v54 = vld [vmem:[%s5523_s2 + $0x188] sm:$0xff] }
 0x1f1   : > { %728 = vperm.xlu2 %3371, %v442_v61   ;;  %v4242_v59 = vpop.f32.mrf.mxu0  ;;  %v4244_v3 = vpop.f32.mrf.mxu1  ;;  %653 = vperm.xlu1 %3370, %v427_v58   ;;  %v421_v58 = vld [vmem:[%s5523_s2 + $0x110] sm:$0xff] }
 0x1f3   : > { %v1596_v2 = vpop.xlane.xlu0 %1595 }
 0x1f4   : > { %3207 = vmatmul.msk.f32.gmra.mxu0 %vm771_vm0, %v382_v30 }
 0x1f5   : > { %3271 = vmatmul.msk.f32.gmra.mxu1 %vm771_vm0, %v382_v30  ;;  %708 = vperm.xlu0 %3369, %v438_v32   ;;  %v1797_v30 = vsel %vm1766_vm1, %v1596_v2, 0.0 }
 0x1f9   : > { %633 = vperm.xlu2 %3371, %v423_v55   ;;  %v4264_v14 = vpop.f32.mrf.mxu0  ;;  %v4266_v15 = vpop.f32.mrf.mxu1  ;;  %733 = vperm.xlu1 %3370, %v443_v34  }
 0x1fb   : > { %v1599_v63 = vpop.xlane.xlu1 %1598  ;;  %v1521_v29 = vpop.xlane.xlu0 %1520 }
 0x1fc   : > { %3208 = vmatmul.msk.f32.gmra.mxu0 %vm771_vm0, %v383_v57  ;;  %v1798_v53 = vsel %vm1766_vm1, %v1599_v63, 0.0  ;;  %v1772_v2 = vsel %vm1766_vm1, %v1521_v29, 0.0  ;;  %v1794_v29 = vsel %vm1766_vm1, %v4240_v45, 0.0 }
 0x1fd   : > { %3272 = vmatmul.msk.f32.gmra.mxu1 %vm771_vm0, %v383_v57  ;;  %613 = vperm.xlu0 %3369, %v419_v39   ;;  %v2057_v32 = vmul.f32 0.00390625, %v1798_v53  ;;  %v386_v57 = vld [vmem:[%s5522_s1 + $0x1f8] sm:$0xff]  ;;  %v1796_v39 = vsel %vm1766_vm1, %v1593_v8, 0.0  ;;  %v2053_v45 = vmul.f32 0.00390625, %v1794_v29 }
 0x1fe   : > { %v2055_v8 = vmul.f32 0.00390625, %v1796_v39 }
 0x201   : > { %713 = vperm.xlu2 %3371, %v439_v17   ;;  %v4282_v56 = vpop.f32.mrf.mxu0  ;;  %v4284_v0 = vpop.f32.mrf.mxu1  ;;  %638 = vperm.xlu1 %3370, %v424_v11   ;;  %v2056_v11 = vmul.f32 0.00390625, %v1797_v30 }
 0x203   : > { %v1602_v22 = vpop.xlane.xlu2 %1601  ;;  %v4311_v38 = vpop.xlane.xlu0 %1568 }
 0x204   : > { %3209 = vmatmul.msk.f32.gmra.mxu0 %vm771_vm0, %v384_v1  ;;  %v1799_v37 = vsel %vm1766_vm1, %v1602_v22, 0.0  ;;  %v1795_v22 = vsel %vm1766_vm1, %v1590_v35, 0.0  ;;  %v437_v35 = vld [vmem:[%s5523_s2 + $0x190] sm:$0xff] }
 0x205   : > { %3273 = vmatmul.msk.f32.gmra.mxu1 %vm771_vm0, %v384_v1  ;;  %v2058_v61 = vmul.f32 0.00390625, %v1799_v37  ;;  %v2054_v37 = vmul.f32 0.00390625, %v1795_v22 }
 0x209   : > { %618 = vperm.xlu2 %3371, %v420_v25   ;;  %v4297_v51 = vpop.f32.mrf.mxu0  ;;  %v4299_v23 = vpop.f32.mrf.mxu1  ;;  %718 = vperm.xlu1 %3370, %v440_v27  }
 0x20b   : > { %v1605_v4 = vpop.xlane.xlu1 %1604  ;;  %v4304_v46 = vpop.xlane.xlu2 %1574 }
 0x20c   : > { %v1800_v47 = vsel %vm1766_vm1, %v1605_v4, 0.0  ;;  %3210 = vmatmul.msk.f32.gmra.mxu0 %vm771_vm0, %v385_v7  ;;  %v1512_v4 = vpop.xlane.xlu0 %1511  ;;  %v1790_v39 = vsel %vm1766_vm1, %v4304_v46, 0.0  ;;  %v1788_v46 = vsel %vm1766_vm1, %v4311_v38, 0.0 }
 0x20d   : > { %v2059_v62 = vmul.f32 0.00390625, %v1800_v47  ;;  %3274 = vmatmul.msk.f32.gmra.mxu1 %vm771_vm0, %v385_v7  ;;  %v2031_v7 = vmul.f32 0.00390625, %v1772_v2  ;;  %v1793_v47 = vsel %vm1766_vm1, %v4254_v48, 0.0  ;;  %v2049_v22 = vmul.f32 0.00390625, %v1790_v39 }
 0x20e   : > { %v2052_v30 = vmul.f32 0.00390625, %v1793_v47 }
 0x20f   : > { %2525 = vmatpush.msrb.mxu1 %v2059_v62  ;;  %3297 = vmatpush.msra.mxu3 %v2059_v62 }
 0x211   : > { %698 = vperm.xlu2 %3371, %v436_v54   ;;  %v1122_v55 = vpop.f32.mrf.mxu0  ;;  %v1331_v34 = vpop.f32.mrf.mxu1  ;;  %2526 = vmatpush.msrb.mxu1 %v2058_v61 }
 0x212   : > { %3298 = vmatpush.msra.mxu3 %v2058_v61  ;;  %623 = vperm.xlu1 %3370, %v421_v58   ;;  %v1792_v61 = vsel %vm1766_vm1, %v4249_v5, 0.0 }
 0x213   : > { %2527 = vmatpush.msrb.mxu1 %v2057_v32  ;;  %v1524_v17 = vpop.xlane.xlu1 %1523 }
 0x214   : > { %3299 = vmatpush.msra.mxu3 %v2057_v32  ;;  %v1773_v1 = vsel %vm1766_vm1, %v1524_v17, 0.0  ;;  %v1518_v63 = vpop.xlane.xlu2 %1517  ;;  %3211 = vmatmul.msk.f32.gmra.mxu0 %vm771_vm0, %v386_v57  ;;  %v1791_v32 = vsel %vm1766_vm1, %v4220_v26, 0.0 }
 0x215   : > { %v2032_v25 = vmul.f32 0.00390625, %v1773_v1  ;;  %3275 = vmatmul.msk.f32.gmra.mxu1 %vm771_vm0, %v386_v57  ;;  %v1771_v27 = vsel %vm1766_vm1, %v1518_v63, 0.0  ;;  %v2051_v57 = vmul.f32 0.00390625, %v1792_v61  ;;  %v2050_v17 = vmul.f32 0.00390625, %v1791_v32  ;;  %v435_v1 = vld [vmem:[%s5523_s2 + $0x180] sm:$0xff] }
 0x216   : > { %2528 = vmatpush.msrb.mxu1 %v2056_v11  ;;  %3300 = vmatpush.msra.mxu3 %v2056_v11  ;;  %v2030_v62 = vmul.f32 0.00390625, %v1771_v27  ;;  %v2096_v32 = vld [vmem:[%s5524_s3 + $0x20] sm:$0xff] }
 0x217   : > { %2423 = vmatpush.msrb.mxu0 %v2032_v25  ;;  %3292 = vmatpush.msra.mxu2 %v2032_v25 }
 0x218   : > { %2529 = vmatpush.msrb.mxu1 %v2055_v8  ;;  %3301 = vmatpush.msra.mxu3 %v2055_v8 }
 0x219   : > { %v4348_v53 = vpop.f32.mrf.mxu0  ;;  %2424 = vmatpush.msrb.mxu0 %v2031_v7  ;;  %3293 = vmatpush.msra.mxu2 %v2031_v7 }
 0x21a   : > { %v4350_v54 = vpop.f32.mrf.mxu1  ;;  %2530 = vmatpush.msrb.mxu1 %v2054_v37  ;;  %3302 = vmatpush.msra.mxu3 %v2054_v37 }
 0x21b   : > { %5533 = vst [vmem:[#allocation7_spill] sm:$0xff] %v4350_v54  ;;  %703 = vperm.xlu1 %3370, %v437_v35   ;;  %v1572_v58 = vpop.xlane.xlu1 %1571  ;;  %2425 = vmatpush.msrb.mxu0 %v2030_v62 }
 0x21c   : > { %2531 = vmatpush.msrb.mxu1 %v2053_v45  ;;  %3303 = vmatpush.msra.mxu3 %v2053_v45  ;;  %v1566_v48 = vpop.xlane.xlu2 %1565  ;;  %v1789_v26 = vsel %vm1766_vm1, %v1572_v58, 0.0  ;;  %v2047_v45 = vmul.f32 0.00390625, %v1788_v46 }
 0x21d   : > { %3294 = vmatpush.msra.mxu2 %v2030_v62  ;;  %v2048_v29 = vmul.f32 0.00390625, %v1789_v26  ;;  %v1787_v47 = vsel %vm1766_vm1, %v1566_v48, 0.0 }
 0x21e   : > { %2532 = vmatpush.msrb.mxu1 %v2052_v30  ;;  %3304 = vmatpush.msra.mxu3 %v2052_v30 }
 0x21f   : > { %v689_v5 = vpop.permute.xlu0 %688 }
 0x220   : > { %v1123_v11 = vadd.f32 %v1122_v55, %v689_v5  ;;  %v1332_v2 = vadd.f32 %v1331_v34, %v689_v5  ;;  %2533 = vmatpush.msrb.mxu1 %v2051_v57  ;;  %3305 = vmatpush.msra.mxu3 %v2051_v57  ;;  %v1769_v34 = vsel %vm1766_vm1, %v1512_v4, 0.0  ;;  %v2046_v4 = vmul.f32 0.00390625, %v1787_v47 }
 0x221   : > { %v4366_v63 = vpop.f32.mrf.mxu0  ;;  %v2028_v38 = vmul.f32 0.00390625, %v1769_v34 }
 0x222   : > { %v1476_v25 = vmax.f32 %v1123_v11, 0.0  ;;  %v1477_v8 = vmax.f32 %v1332_v2, 0.0  ;;  %v4368_v27 = vpop.f32.mrf.mxu1  ;;  %2534 = vmatpush.msrb.mxu1 %v2050_v17  ;;  %3306 = vmatpush.msra.mxu3 %v2050_v17 }
 0x223   : > { %693 = vperm.xlu1 %3370, %v435_v1   ;;  %v1515_v55 = vpop.xlane.xlu1 %1514 }
 0x224   : > { %2535 = vmatpush.msrb.mxu1 %v2049_v22  ;;  %3307 = vmatpush.msra.mxu3 %v2049_v22  ;;  %v1560_v7 = vpop.xlane.xlu2 %1559  ;;  %v1770_v37 = vsel %vm1766_vm1, %v1515_v55, 0.0  ;;  %v4377_v35 = vadd.f32 %v1477_v8, %v1476_v25  ;;  %v2097_v25 = vld [vmem:[%s5524_s3 + $0x28] sm:$0xff]  ;;  %v2100_v55 = vld [vmem:[%s5524_s3 + $0x40] sm:$0xff] }
 0x225   : > { %v2029_v62 = vmul.f32 0.00390625, %v1770_v37 }
 0x226   : > { %2536 = vmatpush.msrb.mxu1 %v2048_v29  ;;  %3308 = vmatpush.msra.mxu3 %v2048_v29 }
 0x227   : > { %v679_v61 = vpop.permute.xlu0 %678  ;;  %2426 = vmatpush.msrb.mxu0 %v2029_v62  ;;  %3295 = vmatpush.msra.mxu2 %v2029_v62 }
 0x228   : > { %v1117_v58 = vadd.f32 %v4282_v56, %v679_v61  ;;  %v1326_v30 = vadd.f32 %v4284_v0, %v679_v61  ;;  %2537 = vmatpush.msrb.mxu1 %v2047_v45  ;;  %3309 = vmatpush.msra.mxu3 %v2047_v45  ;;  %v1785_v0 = vsel %vm1766_vm1, %v1560_v7, 0.0  ;;  %v2104_v45 = vld [vmem:[%s5524_s3 + $0x60] sm:$0xff] }
 0x229   : > { %v4386_v48 = vpop.f32.mrf.mxu0  ;;  %2427 = vmatpush.msrb.mxu0 %v2028_v38  ;;  %3296 = vmatpush.msra.mxu2 %v2028_v38  ;;  %v2044_v26 = vmul.f32 0.00390625, %v1785_v0 }
 0x22a   : > { %v1472_v57 = vmax.f32 %v1117_v58, 0.0  ;;  %v1473_v39 = vmax.f32 %v1326_v30, 0.0  ;;  %v4388_v5 = vpop.f32.mrf.mxu1  ;;  %2538 = vmatpush.msrb.mxu1 %v2046_v4  ;;  %3310 = vmatpush.msra.mxu3 %v2046_v4  ;;  %v2105_v30 = vld [vmem:[%s5524_s3 + $0x68] sm:$0xff] }
 0x22b   : > { %2431 = vmatmul.f32.vlgmr.msra.gmra.mxu2 %v2096_v32  ;;  %v1563_v56 = vpop.xlane.xlu1 %1562  ;;  %v2108_v32 = vld [vmem:[%s5524_s3 + $0x80] sm:$0xff] }
 0x22c   : > { %v4392_v17 = vpop.permute.xlu2 %768  ;;  %v1786_v11 = vsel %vm1766_vm1, %v1563_v56, 0.0  ;;  %v4396_v2 = vadd.f32 %v1473_v39, %v1472_v57 }
 0x22d   : > { %v2045_v1 = vmul.f32 0.00390625, %v1786_v11 }
 0x22f   : > { %v674_v22 = vpop.permute.xlu0 %673  ;;  %2539 = vmatpush.msrb.mxu1 %v2045_v1  ;;  %3311 = vmatpush.msra.mxu3 %v2045_v1 }
 0x230   : > { %v1114_v8 = vadd.f32 %v4264_v14, %v674_v22  ;;  %v1323_v46 = vadd.f32 %v4266_v15, %v674_v22  ;;  %v2101_v15 = vld [vmem:[%s5524_s3 + $0x48] sm:$0xff] }
 0x231   : > { %v4406_v34 = vpop.f32.mrf.mxu0  ;;  %2540 = vmatpush.msrb.mxu1 %v2044_v26  ;;  %3312 = vmatpush.msra.mxu3 %v2044_v26 }
 0x232   : > { %v1470_v29 = vmax.f32 %v1114_v8, 0.0  ;;  %v1471_v7 = vmax.f32 %v1323_v46, 0.0  ;;  %v4408_v37 = vpop.f32.mrf.mxu1  ;;  %2544 = vmatmul.f32.vlgmr.msra.gmra.mxu3 %v2097_v25  ;;  %v2109_v8 = vld [vmem:[%s5524_s3 + $0x88] sm:$0xff]  ;;  %v2112_v46 = vld [vmem:[%s5524_s3 + $0xa0] sm:$0xff] }
 0x233   : > { %2434 = vmatmul.f32.gmra.mxu2 %v2100_v55 }
 0x234   : > { %v4410_v47 = vpop.permute.xlu2 %758  ;;  %v4412_v62 = vadd.f32 %v1471_v7, %v1470_v29 }
 0x237   : > { %v4414_v14 = vpop.permute.xlu0 %753 }
 0x239   : > { %v4422_v38 = vpop.f32.mrf.mxu0 }
 0x23a   : > { %v4424_v61 = vpop.f32.mrf.mxu1  ;;  %2547 = vmatmul.f32.gmra.mxu3 %v2101_v15 }
 0x23b   : > { %2437 = vmatmul.f32.gmra.mxu2 %v2104_v45 }
 0x23c   : > { %v664_v4 = vpop.permute.xlu2 %663 }
 0x23f   : > { %v659_v58 = vpop.permute.xlu0 %658 }
 0x241   : > { %v4432_v57 = vpop.f32.mrf.mxu0 }
 0x242   : > { %v4434_v39 = vpop.f32.mrf.mxu1  ;;  %2550 = vmatmul.f32.gmra.mxu3 %v2105_v30 }
 0x243   : > { %2440 = vmatmul.f32.gmra.mxu2 %v2108_v32  ;;  %v684_v56 = vpop.permute.xlu1 %683 }
 0x244   : > { %v4436_v0 = vpop.permute.xlu2 %743  ;;  %v1120_v11 = vadd.f32 %v4297_v51, %v684_v56  ;;  %v1329_v1 = vadd.f32 %v4299_v23, %v684_v56 }
 0x246   : > { %v1474_v26 = vmax.f32 %v1120_v11, 0.0  ;;  %v1475_v22 = vmax.f32 %v1329_v1, 0.0  ;;  %v2113_v11 = vld [vmem:[%s5524_s3 + $0xa8] sm:$0xff] }
 0x247   : > { %v4440_v25 = vpop.permute.xlu0 %738 }
 0x248   : > { %v4448_v55 = vadd.f32 %v1475_v22, %v1474_v26  ;;  %v2116_v22 = vld [vmem:[%s5524_s3 + $0xc0] sm:$0xff] }
 0x249   : > { %v1143_v29 = vpop.f32.mrf.mxu0 }
 0x24a   : > { %v1352_v7 = vpop.f32.mrf.mxu1  ;;  %2553 = vmatmul.f32.gmra.mxu3 %v2109_v8  ;;  %v1108_v8 = vadd.f32 %v4222_v24, %v664_v4 }
 0x24b   : > { %2443 = vmatmul.f32.gmra.mxu2 %v2112_v46  ;;  %v4450_v51 = vpop.permute.xlu1 %763 }
 0x24c   : > { %v649_v23 = vpop.permute.xlu2 %648  ;;  %v1466_v54 = vmax.f32 %v1108_v8, 0.0 }
 0x24d   : > { %v1099_v15 = vadd.f32 %v4166_v20, %v649_v23  ;;  %v1308_v45 = vadd.f32 %v4168_v10, %v649_v23  ;;  %v1317_v20 = vadd.f32 %v4224_v33, %v664_v4  ;;  %v2117_v4 = vld [vmem:[%s5524_s3 + $0xc8] sm:$0xff] }
 0x24f   : > { %v1460_v30 = vmax.f32 %v1099_v15, 0.0  ;;  %v1461_v32 = vmax.f32 %v1308_v45, 0.0  ;;  %v644_v56 = vpop.permute.xlu0 %643  ;;  %v1467_v24 = vmax.f32 %v1317_v20, 0.0 }
 0x250   : > { %v1096_v1 = vadd.f32 %v4148_v12, %v644_v56  ;;  %v1305_v26 = vadd.f32 %v4150_v49, %v644_v56  ;;  %v1105_v12 = vadd.f32 %v4202_v42, %v659_v58  ;;  %v1314_v49 = vadd.f32 %v4204_v19, %v659_v58  ;;  %v2120_v42 = vld [vmem:[%s5524_s3 + $0xe0] sm:$0xff] }
 0x251   : > { %v1146_v10 = vpop.f32.mrf.mxu0  ;;  %v1627_v46 = vadd.f32 %v1461_v32, %v1460_v30  ;;  %v1636_v19 = vadd.f32 %v1467_v24, %v1466_v54  ;;  %v2121_v54 = vld [vmem:[%s5524_s3 + $0xe8] sm:$0xff] }
 0x252   : > { %v1458_v23 = vmax.f32 %v1096_v1, 0.0  ;;  %v1459_v15 = vmax.f32 %v1305_v26, 0.0  ;;  %v1355_v45 = vpop.f32.mrf.mxu1  ;;  %2556 = vmatmul.f32.gmra.mxu3 %v2113_v11  ;;  %v1464_v30 = vmax.f32 %v1105_v12, 0.0  ;;  %v1465_v32 = vmax.f32 %v1314_v49, 0.0 }
 0x253   : > { %1628 = vadd.xlane.f32.xlu0 %v1627_v46  ;;  %2446 = vmatmul.f32.gmra.mxu2 %v2116_v22  ;;  %v4464_v28 = vpop.permute.xlu1 %668 }
 0x254   : > { %v729_v56 = vpop.permute.xlu2 %728  ;;  %v1624_v50 = vadd.f32 %v1459_v15, %v1458_v23  ;;  %v2124_v23 = vld [vmem:[%s5524_s3 + $0x100] sm:$0xff] }
 0x256   : > { %1625 = vadd.xlane.f32.xlu1 %v1624_v50 }
 0x257   : > { %v724_v33 = vpop.permute.xlu0 %723 }
 0x258   : > { %v1144_v11 = vadd.f32 %v1143_v29, %v724_v33  ;;  %v1353_v1 = vadd.f32 %v1352_v7, %v724_v33  ;;  %v1633_v29 = vadd.f32 %v1465_v32, %v1464_v30 }
 0x259   : > { %v4474_v26 = vpop.f32.mrf.mxu0 }
 0x25a   : > { %v1490_v58 = vmax.f32 %v1144_v11, 0.0  ;;  %v1491_v22 = vmax.f32 %v1353_v1, 0.0  ;;  %v4476_v8 = vpop.f32.mrf.mxu1  ;;  %2559 = vmatmul.f32.gmra.mxu3 %v2117_v4 }
 0x25b   : > { %1637 = vadd.xlane.f32.xlu0 %v1636_v19  ;;  %2449 = vmatmul.f32.gmra.mxu2 %v2120_v42  ;;  %v4478_v50 = vpop.permute.xlu1 %748  ;;  %v2125_v19 = vld [vmem:[%s5524_s3 + $0x108] sm:$0xff] }
 0x25c   : > { %v4480_v20 = vpop.permute.xlu2 %633  ;;  %v4482_v7 = vadd.f32 %v1491_v22, %v1490_v58 }
 0x25e   : > { %1634 = vadd.xlane.f32.xlu1 %v1633_v29  ;;  %v1356_v29 = vadd.f32 %v1355_v45, %v729_v56  ;;  %v2132_v45 = vld [vmem:[%s5524_s3 + $0x140] sm:$0xff] }
 0x25f   : > { %v4484_v46 = vpop.permute.xlu0 %628 }
 0x261   : > { %v1152_v15 = vpop.f32.mrf.mxu0 }
 0x262   : > { %v1361_v12 = vpop.f32.mrf.mxu1  ;;  %2562 = vmatmul.f32.gmra.mxu3 %v2121_v54  ;;  %v1153_v24 = vadd.f32 %v1152_v15, %v4440_v25 }
 0x263   : > { %2452 = vmatmul.f32.gmra.mxu2 %v2124_v23  ;;  %1646 = vadd.xlane.f32.xlu0 %v4396_v2  ;;  %v654_v49 = vpop.permute.xlu1 %653  ;;  %v1362_v33 = vadd.f32 %v1361_v12, %v4440_v25 }
 0x264   : > { %v714_v4 = vpop.permute.xlu2 %713  ;;  %v1496_v2 = vmax.f32 %v1153_v24, 0.0 }
 0x265   : > { %v1138_v30 = vadd.f32 %v4422_v38, %v714_v4  ;;  %v1347_v32 = vadd.f32 %v4424_v61, %v714_v4  ;;  %v1497_v58 = vmax.f32 %v1362_v33, 0.0  ;;  %v2128_v38 = vld [vmem:[%s5524_s3 + $0x120] sm:$0xff]  ;;  %v1147_v61 = vadd.f32 %v1146_v10, %v729_v56  ;;  %v2129_v10 = vld [vmem:[%s5524_s3 + $0x128] sm:$0xff] }
 0x266   : > { %1643 = vadd.xlane.f32.xlu1 %v4412_v62  ;;  %v1493_v4 = vmax.f32 %v1356_v29, 0.0 }
 0x267   : > { %v1486_v11 = vmax.f32 %v1138_v30, 0.0  ;;  %v1487_v1 = vmax.f32 %v1347_v32, 0.0  ;;  %v709_v42 = vpop.permute.xlu0 %708  ;;  %v1492_v33 = vmax.f32 %v1147_v61, 0.0  ;;  %v1311_v61 = vadd.f32 %v4186_v52, %v654_v49 }
 0x268   : > { %v1135_v22 = vadd.f32 %v4406_v34, %v709_v42  ;;  %v1344_v25 = vadd.f32 %v4408_v37, %v709_v42  ;;  %v1681_v34 = vadd.f32 %v1497_v58, %v1496_v2 }
 0x269   : > { %v1155_v62 = vpop.f32.mrf.mxu0  ;;  %v4506_v54 = vadd.f32 %v1487_v1, %v1486_v11  ;;  %v1675_v32 = vadd.f32 %v1493_v4, %v1492_v33  ;;  %v1463_v33 = vmax.f32 %v1311_v61, 0.0 }
 0x26a   : > { %v1484_v23 = vmax.f32 %v1135_v22, 0.0  ;;  %v1485_v15 = vmax.f32 %v1344_v25, 0.0  ;;  %v1364_v12 = vpop.f32.mrf.mxu1  ;;  %2565 = vmatmul.f32.gmra.mxu3 %v2125_v19  ;;  %v1156_v56 = vadd.f32 %v1155_v62, %v4436_v0  ;;  %v2136_v62 = vld [vmem:[%s5524_s3 + $0x160] sm:$0xff] }
 0x26b   : > { %2455 = vmatmul.f32.gmra.mxu2 %v2128_v38  ;;  %1652 = vadd.xlane.f32.xlu0 %v4377_v35  ;;  %v4509_v24 = vpop.permute.xlu1 %733  ;;  %v1365_v35 = vadd.f32 %v1364_v12, %v4436_v0  ;;  %v1102_v38 = vadd.f32 %v4184_v6, %v654_v49  ;;  %v2133_v0 = vld [vmem:[%s5524_s3 + $0x148] sm:$0xff] }
 0x26c   : > { %v4511_v37 = vadd.f32 %v1485_v15, %v1484_v23  ;;  %v1498_v2 = vmax.f32 %v1156_v56, 0.0 }
 0x26d   : > { %v1499_v58 = vmax.f32 %v1365_v35, 0.0  ;;  %v1462_v12 = vmax.f32 %v1102_v38, 0.0  ;;  %v1090_v38 = vadd.f32 %v4121_v9, %v4480_v20 }
 0x26e   : > { %1682 = vadd.xlane.f32.xlu1 %v1681_v34 }
 0x26f   : > { %v1684_v23 = vadd.f32 %v1499_v58, %v1498_v2 }
 0x271   : > { %v4521_v30 = vpop.f32.mrf.mxu0 }
 0x272   : > { %v4523_v11 = vpop.f32.mrf.mxu1  ;;  %2568 = vmatmul.f32.gmra.mxu3 %v2129_v10 }
 0x273   : > { %2458 = vmatmul.f32.gmra.mxu2 %v2132_v45  ;;  %1676 = vadd.xlane.f32.xlu0 %v1675_v32  ;;  %v639_v1 = vpop.permute.xlu1 %638  ;;  %v2137_v32 = vld [vmem:[%s5524_s3 + $0x168] sm:$0xff] }
 0x274   : > { %v1093_v42 = vadd.f32 %v4133_v13, %v639_v1  ;;  %v1302_v19 = vadd.f32 %v4135_v16, %v639_v1  ;;  %v1320_v1 = vadd.f32 %v4244_v3, %v4464_v28 }
 0x276   : > { %v1456_v22 = vmax.f32 %v1093_v42, 0.0  ;;  %v1457_v25 = vmax.f32 %v1302_v19, 0.0  ;;  %v1630_v42 = vadd.f32 %v1463_v33, %v1462_v12  ;;  %v1359_v12 = vadd.f32 %v4476_v8, %v4509_v24  ;;  %v619_v33 = vpop.permute.xlu2 %618 }
 0x278   : > { %v1621_v29 = vadd.f32 %v1457_v25, %v1456_v22  ;;  %v1469_v25 = vmax.f32 %v1320_v1, 0.0  ;;  %v2152_v1 = vld [vmem:[%s5524_s3 + $0x1e0] sm:$0xff] }
 0x279   : > { %v1161_v13 = vpop.f32.mrf.mxu0 }
 0x27a   : > { %v1162_v16 = vadd.f32 %v1161_v13, %v4414_v14  ;;  %v1370_v15 = vpop.f32.mrf.mxu1  ;;  %2571 = vmatmul.f32.gmra.mxu3 %v2133_v0  ;;  %1622 = vadd.xlane.f32.xlu2 %v1621_v29  ;;  %v1299_v0 = vadd.f32 %v4123_v40, %v4480_v20  ;;  %v2141_v29 = vld [vmem:[%s5524_s3 + $0x188] sm:$0xff]  ;;  %v1150_v20 = vadd.f32 %v4474_v26, %v4509_v24 }
 0x27b   : > { %v1371_v6 = vadd.f32 %v1370_v15, %v4414_v14  ;;  %2461 = vmatmul.f32.gmra.mxu2 %v2136_v62  ;;  %1685 = vadd.xlane.f32.xlu0 %v1684_v23  ;;  %v719_v34 = vpop.permute.xlu1 %718  ;;  %v1111_v14 = vadd.f32 %v4242_v59, %v4464_v28  ;;  %v2145_v40 = vld [vmem:[%s5524_s3 + $0x1a8] sm:$0xff]  ;;  %v1081_v24 = vadd.f32 %v4076_v43, %v619_v33 }
 0x27c   : > { %v1502_v52 = vmax.f32 %v1162_v16, 0.0  ;;  %v1141_v49 = vadd.f32 %v4432_v57, %v719_v34  ;;  %v1350_v4 = vadd.f32 %v4434_v39, %v719_v34  ;;  %v2140_v57 = vld [vmem:[%s5524_s3 + $0x180] sm:$0xff]  ;;  %v1454_v16 = vmax.f32 %v1090_v38, 0.0 }
 0x27d   : > { %v1503_v10 = vmax.f32 %v1371_v6, 0.0  ;;  %v1468_v59 = vmax.f32 %v1111_v14, 0.0  ;;  %v1455_v9 = vmax.f32 %v1299_v0, 0.0  ;;  %v2148_v6 = vld [vmem:[%s5524_s3 + $0x1c0] sm:$0xff]  ;;  %v1494_v26 = vmax.f32 %v1150_v20, 0.0 }
 0x27e   : > { %v1488_v45 = vmax.f32 %v1141_v49, 0.0  ;;  %v1489_v56 = vmax.f32 %v1350_v4, 0.0  ;;  %v1159_v14 = vadd.f32 %v4521_v30, %v4478_v50  ;;  %v1448_v43 = vmax.f32 %v1081_v24, 0.0 }
 0x27f   : > { %v1690_v35 = vadd.f32 %v1503_v10, %v1502_v52  ;;  %v1639_v62 = vadd.f32 %v1469_v25, %v1468_v59  ;;  %v1618_v15 = vadd.f32 %v1455_v9, %v1454_v16  ;;  %v1495_v10 = vmax.f32 %v1359_v12, 0.0  ;;  %v2164_v12 = vld [vmem:[%s5524_s3 + $0x240] sm:$0xff] }
 0x280   : > { %v4549_v39 = vadd.f32 %v1489_v56, %v1488_v45  ;;  %v1290_v56 = vadd.f32 %v4078_v41, %v619_v33  ;;  %v1087_v30 = vadd.f32 %v4109_v60, %v4484_v46  ;;  %v2156_v60 = vld [vmem:[%s5524_s3 + $0x200] sm:$0xff] }
 0x281   : > { %1691 = vadd.xlane.f32.xlu1 %v1690_v35  ;;  %v1164_v19 = vpop.f32.mrf.mxu0 }
 0x282   : > { %v1165_v2 = vadd.f32 %v1164_v19, %v4410_v47  ;;  %v1373_v58 = vpop.f32.mrf.mxu1  ;;  %2574 = vmatmul.f32.gmra.mxu3 %v2137_v32  ;;  %1631 = vadd.xlane.f32.xlu2 %v1630_v42  ;;  %v2149_v32 = vld [vmem:[%s5524_s3 + $0x1c8] sm:$0xff]  ;;  %v1449_v41 = vmax.f32 %v1290_v56, 0.0  ;;  %v1500_v42 = vmax.f32 %v1159_v14, 0.0  ;;  %v699_v19 = vpop.permute.xlu2 %698 }
 0x283   : > { %v1374_v22 = vadd.f32 %v1373_v58, %v4410_v47  ;;  %2464 = vmatmul.f32.gmra.mxu2 %v2140_v57  ;;  %v2144_v47 = vld [vmem:[%s5524_s3 + $0x1a0] sm:$0xff]  ;;  %v2153_v58 = vld [vmem:[%s5524_s3 + $0x1e8] sm:$0xff] }
 0x284   : > { %v1504_v28 = vmax.f32 %v1165_v2, 0.0  ;;  %v1338_v2 = vadd.f32 %v4368_v27, %v699_v19  ;;  %v2169_v56 = vld [vmem:[%s5524_s3 + $0x268] sm:$0xff] }
 0x285   : > { %v1505_v3 = vmax.f32 %v1374_v22, 0.0 }
 0x287   : > { %v1693_v61 = vadd.f32 %v1505_v3, %v1504_v28 }
 0x289   : > { %1694 = vadd.xlane.f32.xlu0 %v1693_v61  ;;  %v1167_v13 = vpop.f32.mrf.mxu0  ;;  %v2092_v61 = vld [vmem:[%s5524_s3] sm:$0xff] }
 0x28a   : > { %v1376_v23 = vpop.f32.mrf.mxu1  ;;  %2577 = vmatmul.f32.gmra.mxu3 %v2141_v29  ;;  %1640 = vadd.xlane.f32.xlu2 %v1639_v62  ;;  %v1168_v22 = vadd.f32 %v1167_v13, %v4450_v51  ;;  %v2160_v29 = vld [vmem:[%s5524_s3 + $0x220] sm:$0xff]  ;;  %v2093_v62 = vld [vmem:[%s5524_s3 + $0x8] sm:$0xff]  ;;  %v614_v13 = vpop.permute.xlu0 %613 }
 0x28b   : > { %2467 = vmatmul.f32.gmra.mxu2 %v2144_v47  ;;  %v1377_v59 = vadd.f32 %v1376_v23, %v4450_v51  ;;  %v2157_v51 = vld [vmem:[%s5524_s3 + $0x208] sm:$0xff]  ;;  %2428 = vmatmul.f32.vlgmr.msrb.gmra.mxu0 %v2092_v61  ;;  %v624_v47 = vpop.permute.xlu1 %623  ;;  %v1078_v16 = vadd.f32 %v4050_v21, %v614_v13  ;;  %v1287_v9 = vadd.f32 %v4052_v44, %v614_v13 }
 0x28c   : > { %v1506_v28 = vmax.f32 %v1168_v22, 0.0  ;;  %2541 = vmatmul.f32.vlgmr.msrb.gmra.mxu1 %v2093_v62  ;;  %v1293_v20 = vadd.f32 %v4095_v18, %v624_v47  ;;  %v2220_v22 = vld [vmem:[%s5525_s4] sm:$0xff] }
 0x28d   : > { %v1507_v3 = vmax.f32 %v1377_v59, 0.0  ;;  %v1446_v21 = vmax.f32 %v1078_v16, 0.0  ;;  %v2177_v59 = vld [vmem:[%s5524_s3 + $0x2a8] sm:$0xff] }
 0x28e   : > { %v1451_v33 = vmax.f32 %v1293_v20, 0.0  ;;  %v2185_v16 = vld [vmem:[%s5524_s3 + $0x2e8] sm:$0xff] }
 0x291   : > { %1619 = vadd.xlane.f32.xlu0 %v1618_v15  ;;  %v1170_v34 = vpop.f32.mrf.mxu0  ;;  %v2161_v15 = vld [vmem:[%s5524_s3 + $0x228] sm:$0xff] }
 0x292   : > { %v1171_v52 = vadd.f32 %v1170_v34, %v4392_v17  ;;  %v1379_v49 = vpop.f32.mrf.mxu1  ;;  %2580 = vmatmul.f32.gmra.mxu3 %v2145_v40  ;;  %1649 = vadd.xlane.f32.xlu2 %v4448_v55  ;;  %v1678_v55 = vadd.f32 %v1495_v10, %v1494_v26  ;;  %v1084_v40 = vadd.f32 %v4093_v36, %v624_v47  ;;  %v2168_v26 = vld [vmem:[%s5524_s3 + $0x260] sm:$0xff]  ;;  %v2221_v10 = vld [vmem:[%s5525_s4 + $0x8] sm:$0xff]  ;;  %v2227_v47 = vld [vmem:[%s5525_s4 + $0x38] sm:$0xff] }
 0x293   : > { %v1380_v4 = vadd.f32 %v1379_v49, %v4392_v17  ;;  %2470 = vmatmul.f32.gmra.mxu2 %v2148_v6  ;;  %v1368_v17 = vadd.f32 %v4523_v11, %v4478_v50  ;;  %v1296_v50 = vadd.f32 %v4111_v31, %v4484_v46  ;;  %v1129_v11 = vadd.f32 %v4366_v63, %v699_v19  ;;  %v704_v44 = vpop.permute.xlu1 %703  ;;  %v2165_v49 = vld [vmem:[%s5524_s3 + $0x248] sm:$0xff] }
 0x294   : > { %v1508_v45 = vmax.f32 %v1171_v52, 0.0  ;;  %v1452_v31 = vmax.f32 %v1087_v30, 0.0  ;;  %v1481_v46 = vmax.f32 %v1338_v2, 0.0  ;;  %v1447_v6 = vmax.f32 %v1287_v9, 0.0  ;;  %v2173_v19 = vld [vmem:[%s5524_s3 + $0x288] sm:$0xff]  ;;  %v2222_v9 = vld [vmem:[%s5525_s4 + $0x10] sm:$0xff] }
 0x295   : > { %v1509_v8 = vmax.f32 %v1380_v4, 0.0  ;;  %v1501_v57 = vmax.f32 %v1368_v17, 0.0  ;;  %v1453_v63 = vmax.f32 %v1296_v50, 0.0  ;;  %v1480_v27 = vmax.f32 %v1129_v11, 0.0  ;;  %v2176_v50 = vld [vmem:[%s5524_s3 + $0x2a0] sm:$0xff]  ;;  %v2226_v11 = vld [vmem:[%s5525_s4 + $0x30] sm:$0xff] }
 0x296   : > { %v1450_v34 = vmax.f32 %v1084_v40, 0.0  ;;  %v1606_v18 = vadd.f32 %v1447_v6, %v1446_v21  ;;  %v1341_v4 = vadd.f32 %v4388_v5, %v704_v44  ;;  %v2235_v40 = vld [vmem:[%s5525_s4 + $0x78] sm:$0xff]  ;;  %v2230_v21 = vld [vmem:[%s5525_s4 + $0x50] sm:$0xff] }
 0x297   : > { %v1699_v35 = vadd.f32 %v1509_v8, %v1508_v45  ;;  %v1687_v25 = vadd.f32 %v1501_v57, %v1500_v42  ;;  %v1657_v38 = vadd.f32 %v1481_v46, %v1480_v27  ;;  %v1615_v0 = vadd.f32 %v1453_v63, %v1452_v31  ;;  %v2224_v46 = vld [vmem:[%s5525_s4 + $0x20] sm:$0xff] }
 0x298   : > { %v1483_v8 = vmax.f32 %v1341_v4, 0.0 }
 0x299   : > { %1667 = vadd.xlane.f32.xlu0 %v4506_v54  ;;  %1700 = vadd.xlane.f32.xlu1 %v1699_v35  ;;  %v1609_v54 = vadd.f32 %v1449_v41, %v1448_v43 }
 0x29a   : > { %2583 = vmatmul.f32.gmra.mxu3 %v2149_v32  ;;  %1679 = vadd.xlane.f32.xlu2 %v1678_v55  ;;  %v5534_v32 = vld [vmem:[#allocation7_spill] sm:$0xff]  ;;  %v2172_v55 = vld [vmem:[%s5524_s3 + $0x280] sm:$0xff] }
 0x29b   : > { %2473 = vmatmul.f32.gmra.mxu2 %v2152_v1  ;;  %v694_v24 = vpop.permute.xlu1 %693  ;;  %v2223_v1 = vld [vmem:[%s5525_s4 + $0x18] sm:$0xff] }
 0x29c   : > { %v1126_v35 = vadd.f32 %v4348_v53, %v694_v24  ;;  %v1335_v14 = vadd.f32 %v5534_v32, %v694_v24  ;;  %v2241_v24 = vld [vmem:[%s5525_s4 + $0xa8] sm:$0xff] }
 0x29e   : > { %v1478_v43 = vmax.f32 %v1126_v35, 0.0  ;;  %v1479_v41 = vmax.f32 %v1335_v14, 0.0  ;;  %v2236_v14 = vld [vmem:[%s5525_s4 + $0x80] sm:$0xff] }
 0x2a0   : > { %v1654_v30 = vadd.f32 %v1479_v41, %v1478_v43  ;;  %v2244_v41 = vld [vmem:[%s5525_s4 + $0xc0] sm:$0xff] }
 0x2a1   : > { %1610 = vadd.xlane.f32.xlu0 %v1609_v54  ;;  %1673 = vadd.xlane.f32.xlu1 %v4482_v7  ;;  %v1696_v7 = vadd.f32 %v1507_v3, %v1506_v28  ;;  %v2181_v28 = vld [vmem:[%s5524_s3 + $0x2c8] sm:$0xff]  ;;  %v2184_v3 = vld [vmem:[%s5524_s3 + $0x2e0] sm:$0xff] }
 0x2a2   : > { %2586 = vmatmul.f32.gmra.mxu3 %v2153_v58  ;;  %1688 = vadd.xlane.f32.xlu2 %v1687_v25  ;;  %v2180_v25 = vld [vmem:[%s5524_s3 + $0x2c0] sm:$0xff] }
 0x2a3   : > { %2476 = vmatmul.f32.gmra.mxu2 %v2156_v60  ;;  %v2229_v60 = vld [vmem:[%s5525_s4 + $0x48] sm:$0xff] }
 0x2a9   : > { %1658 = vadd.xlane.f32.xlu0 %v1657_v38  ;;  %1616 = vadd.xlane.f32.xlu1 %v1615_v0  ;;  %v2232_v38 = vld [vmem:[%s5525_s4 + $0x60] sm:$0xff] }
 0x2aa   : > { %2589 = vmatmul.f32.gmra.mxu3 %v2157_v51  ;;  %1697 = vadd.xlane.f32.xlu2 %v1696_v7 }
 0x2ab   : > { %2479 = vmatmul.f32.gmra.mxu2 %v2160_v29  ;;  %v2099_v29 = vld [vmem:[%s5524_s3 + $0x38] sm:$0xff] }
 0x2ae   : > { %v4616_v23 = vpop.f32.mrf.mxu2 }
 0x2b1   : > { %1664 = vadd.xlane.f32.xlu1 %v4511_v37  ;;  %v1132_v37 = vadd.f32 %v4386_v48, %v704_v44  ;;  %v2189_v44 = vld [vmem:[%s5524_s3 + $0x308] sm:$0xff] }
 0x2b2   : > { %2592 = vmatmul.f32.gmra.mxu3 %v2161_v15  ;;  %1670 = vadd.xlane.f32.xlu2 %v4549_v39  ;;  %v1612_v39 = vadd.f32 %v1451_v33, %v1450_v34  ;;  %v2188_v15 = vld [vmem:[%s5524_s3 + $0x300] sm:$0xff]  ;;  %v2225_v34 = vld [vmem:[%s5525_s4 + $0x28] sm:$0xff] }
 0x2b3   : > { %2482 = vmatmul.f32.gmra.mxu2 %v2164_v12  ;;  %v1482_v45 = vmax.f32 %v1132_v37, 0.0  ;;  %v2192_v33 = vld [vmem:[%s5524_s3 + $0x320] sm:$0xff] }
 0x2b5   : > { %v4630_v52 = vpop.f32.mrf.mxu3  ;;  %v1660_v17 = vadd.f32 %v1483_v8, %v1482_v45  ;;  %v2196_v45 = vld [vmem:[%s5524_s3 + $0x340] sm:$0xff] }
 0x2b6   : > { %v4632_v36 = vpop.f32.mrf.mxu2 }
 0x2b9   : > { %1607 = vadd.xlane.f32.xlu1 %v1606_v18  ;;  %v2238_v18 = vld [vmem:[%s5525_s4 + $0x90] sm:$0xff] }
 0x2ba   : > { %2595 = vmatmul.f32.gmra.mxu3 %v2165_v49  ;;  %1613 = vadd.xlane.f32.xlu2 %v1612_v39  ;;  %v2233_v39 = vld [vmem:[%s5525_s4 + $0x68] sm:$0xff] }
 0x2bb   : > { %2485 = vmatmul.f32.gmra.mxu2 %v2168_v26  ;;  %v2193_v26 = vld [vmem:[%s5524_s3 + $0x328] sm:$0xff] }
 0x2bd   : > { %2259 = vperm.xlu0 %3369, %v2221_v10   ;;  %v4645_v48 = vpop.f32.mrf.mxu3  ;;  %v2228_v10 = vld [vmem:[%s5525_s4 + $0x40] sm:$0xff] }
 0x2be   : > { %v4647_v5 = vpop.f32.mrf.mxu2 }
 0x2c2   : > { %2598 = vmatmul.f32.gmra.mxu3 %v2169_v56  ;;  %1661 = vadd.xlane.f32.xlu2 %v1660_v17  ;;  %v2197_v17 = vld [vmem:[%s5524_s3 + $0x348] sm:$0xff] }
 0x2c3   : > { %2488 = vmatmul.f32.gmra.mxu2 %v2172_v55  ;;  %v2231_v55 = vld [vmem:[%s5525_s4 + $0x58] sm:$0xff] }
 0x2c5   : > { %2269 = vperm.xlu0 %3369, %v2223_v1   ;;  %v4660_v42 = vpop.f32.mrf.mxu3  ;;  %v2200_v1 = vld [vmem:[%s5524_s3 + $0x360] sm:$0xff] }
 0x2c6   : > { %v4662_v53 = vpop.f32.mrf.mxu2  ;;  %v4664_v57 = vpop.xlane.xlu0 %1628 }
 0x2c9   : > { %v4711_v0 = vpop.xlane.xlu1 %1625 }
 0x2ca   : > { %2601 = vmatmul.f32.gmra.mxu3 %v2173_v19  ;;  %1655 = vadd.xlane.f32.xlu2 %v1654_v30 }
 0x2cb   : > { %2491 = vmatmul.f32.gmra.mxu2 %v2176_v50 }
 0x2cd   : > { %2284 = vperm.xlu0 %3369, %v2226_v11   ;;  %v4675_v2 = vpop.f32.mrf.mxu3 }
 0x2ce   : > { %v4677_v54 = vpop.f32.mrf.mxu2  ;;  %v4679_v58 = vpop.xlane.xlu0 %1637 }
 0x2d1   : > { %v4741_v6 = vpop.xlane.xlu1 %1634 }
 0x2d2   : > { %2254 = vperm.xlu1 %3370, %v2220_v22   ;;  %2604 = vmatmul.f32.gmra.mxu3 %v2177_v59  ;;  %v2239_v22 = vld [vmem:[%s5525_s4 + $0x98] sm:$0xff]  ;;  %v2201_v59 = vld [vmem:[%s5524_s3 + $0x368] sm:$0xff] }
 0x2d3   : > { %2494 = vmatmul.f32.gmra.mxu2 %v2180_v25  ;;  %v2234_v25 = vld [vmem:[%s5525_s4 + $0x70] sm:$0xff] }
 0x2d5   : > { %2299 = vperm.xlu0 %3369, %v2229_v60   ;;  %v4693_v31 = vpop.f32.mrf.mxu3  ;;  %v2204_v60 = vld [vmem:[%s5524_s3 + $0x380] sm:$0xff] }
 0x2d6   : > { %v4695_v63 = vpop.f32.mrf.mxu2  ;;  %v4697_v27 = vpop.xlane.xlu0 %1646 }
 0x2d9   : > { %v1644_v8 = vpop.xlane.xlu1 %1643 }
 0x2da   : > { %2274 = vperm.xlu1 %3370, %v2224_v46   ;;  %2607 = vmatmul.f32.gmra.mxu3 %v2181_v28  ;;  %v2247_v46 = vld [vmem:[%s5525_s4 + $0xd8] sm:$0xff] }
 0x2db   : > { %2497 = vmatmul.f32.gmra.mxu2 %v2184_v3 }
 0x2dd   : > { %2314 = vperm.xlu0 %3369, %v2232_v38   ;;  %v4713_v51 = vpop.f32.mrf.mxu3 }
 0x2de   : > { %v4715_v61 = vpop.f32.mrf.mxu2  ;;  %v1653_v7 = vpop.xlane.xlu0 %1652 }
 0x2df   : > { %v1816_v62 = vsel %vm1766_vm1, %v1653_v7, 0.0 }
 0x2e0   : > { %v2075_v13 = vmul.f32 0.00390625, %v1816_v62 }
 0x2e1   : > { %v4799_v19 = vpop.xlane.xlu1 %1682 }
 0x2e2   : > { %2289 = vperm.xlu1 %3370, %v2227_v47   ;;  %2638 = vmatpush.msrb.mxu2 %v2075_v13 }
 0x2e3   : > { %2610 = vmatmul.f32.gmra.mxu3 %v2185_v16  ;;  %2264 = vperm.xlu2 %3371, %v2222_v9   ;;  %v2242_v16 = vld [vmem:[%s5525_s4 + $0xb0] sm:$0xff]  ;;  %v1814_v9 = vsel %vm1766_vm1, %v4697_v27, 0.0 }
 0x2e4   : > { %2500 = vmatmul.f32.gmra.mxu2 %v2188_v15  ;;  %v2205_v15 = vld [vmem:[%s5524_s3 + $0x388] sm:$0xff]  ;;  %v2250_v27 = vld [vmem:[%s5525_s4 + $0xf0] sm:$0xff] }
 0x2e5   : > { %2329 = vperm.xlu0 %3369, %v2235_v40   ;;  %v4734_v20 = vpop.f32.mrf.mxu3  ;;  %v2237_v40 = vld [vmem:[%s5525_s4 + $0x88] sm:$0xff] }
 0x2e6   : > { %v4736_v12 = vpop.f32.mrf.mxu2  ;;  %v4794_v43 = vpop.xlane.xlu0 %1676 }
 0x2ea   : > { %2304 = vperm.xlu1 %3370, %v2230_v21   ;;  %v2208_v21 = vld [vmem:[%s5524_s3 + $0x3a0] sm:$0xff] }
 0x2eb   : > { %2613 = vmatmul.f32.gmra.mxu3 %v2189_v44  ;;  %2279 = vperm.xlu2 %3371, %v2225_v34   ;;  %v1813_v44 = vsel %vm1766_vm1, %v1644_v8, 0.0  ;;  %v2073_v34 = vmul.f32 0.00390625, %v1814_v9 }
 0x2ec   : > { %2503 = vmatmul.f32.gmra.mxu2 %v2192_v33 }
 0x2ed   : > { %2344 = vperm.xlu0 %3369, %v2238_v18   ;;  %v4755_v49 = vpop.f32.mrf.mxu3  ;;  %v4757_v37 = vpop.xlane.xlu2 %1622 }
 0x2ee   : > { %v4759_v4 = vpop.f32.mrf.mxu2  ;;  %v4820_v28 = vpop.xlane.xlu0 %1685 }
 0x2f2   : > { %2319 = vperm.xlu1 %3370, %v2233_v39  }
 0x2f3   : > { %2616 = vmatmul.f32.gmra.mxu3 %v2193_v26  ;;  %2294 = vperm.xlu2 %3371, %v2228_v10   ;;  %v2072_v26 = vmul.f32 0.00390625, %v1813_v44 }
 0x2f4   : > { %2506 = vmatmul.f32.gmra.mxu2 %v2196_v45  ;;  %v4822_v3 = vpop.xlane.xlu1 %1691 }
 0x2f5   : > { %2359 = vperm.xlu0 %3369, %v2241_v24   ;;  %v4776_v56 = vpop.f32.mrf.mxu3  ;;  %v4778_v35 = vpop.xlane.xlu2 %1631  ;;  %v1811_v24 = vsel %vm1766_vm1, %v4679_v58, 0.0  ;;  %v2240_v58 = vld [vmem:[%s5525_s4 + $0xa0] sm:$0xff] }
 0x2f6   : > { %v4780_v32 = vpop.f32.mrf.mxu2 }
 0x2fa   : > { %2334 = vperm.xlu1 %3370, %v2236_v14  }
 0x2fb   : > { %2619 = vmatmul.f32.gmra.mxu3 %v2197_v17  ;;  %2309 = vperm.xlu2 %3371, %v2231_v55  }
 0x2fc   : > { %2509 = vmatmul.f32.gmra.mxu2 %v2200_v1  ;;  %v4850_v33 = vpop.xlane.xlu0 %1694  ;;  %v2245_v1 = vld [vmem:[%s5525_s4 + $0xc8] sm:$0xff] }
 0x2fd   : > { %2374 = vperm.xlu0 %3369, %v2244_v41   ;;  %v4801_v30 = vpop.f32.mrf.mxu3  ;;  %v1641_v50 = vpop.xlane.xlu2 %1640  ;;  %v1810_v41 = vsel %vm1766_vm1, %v4741_v6, 0.0 }
 0x2fe   : > { %v4803_v11 = vpop.f32.mrf.mxu2  ;;  %v1812_v18 = vsel %vm1766_vm1, %v1641_v50, 0.0  ;;  %v2209_v50 = vld [vmem:[%s5524_s3 + $0x3a8] sm:$0xff]  ;;  %v2069_v6 = vmul.f32 0.00390625, %v1810_v41  ;;  %v1830_v41 = vsel %vm1766_vm1, %v4850_v33, 0.0  ;;  %v2246_v33 = vld [vmem:[%s5525_s4 + $0xd0] sm:$0xff] }
 0x2ff   : > { %v2071_v55 = vmul.f32 0.00390625, %v1812_v18 }
 0x302   : > { %2349 = vperm.xlu1 %3370, %v2239_v22   ;;  %v2070_v22 = vmul.f32 0.00390625, %v1811_v24 }
 0x303   : > { %2622 = vmatmul.f32.gmra.mxu3 %v2201_v59  ;;  %2324 = vperm.xlu2 %3371, %v2234_v25   ;;  %v2212_v59 = vld [vmem:[%s5524_s3 + $0x3c0] sm:$0xff]  ;;  %v1809_v25 = vsel %vm1766_vm1, %v4778_v35, 0.0  ;;  %v1807_v35 = vsel %vm1766_vm1, %v4711_v0, 0.0  ;;  %v2243_v0 = vld [vmem:[%s5525_s4 + $0xb8] sm:$0xff] }
 0x304   : > { %2512 = vmatmul.f32.gmra.mxu2 %v2204_v60  ;;  %v1808_v60 = vsel %vm1766_vm1, %v4664_v57, 0.0  ;;  %v2248_v57 = vld [vmem:[%s5525_s4 + $0xe0] sm:$0xff]  ;;  %v2066_v44 = vmul.f32 0.00390625, %v1807_v35 }
 0x305   : > { %2389 = vperm.xlu0 %3369, %v2247_v46   ;;  %v4824_v38 = vpop.f32.mrf.mxu3  ;;  %v1650_v7 = vpop.xlane.xlu2 %1649 }
 0x306   : > { %v1815_v62 = vsel %vm1766_vm1, %v1650_v7, 0.0  ;;  %v4828_v47 = vpop.f32.mrf.mxu2  ;;  %v2068_v7 = vmul.f32 0.00390625, %v1809_v25  ;;  %v1829_v25 = vsel %vm1766_vm1, %v4822_v3, 0.0  ;;  %v1827_v3 = vsel %vm1766_vm1, %v4820_v28, 0.0  ;;  %v2249_v28 = vld [vmem:[%s5525_s4 + $0xe8] sm:$0xff] }
 0x307   : > { %v2074_v13 = vmul.f32 0.00390625, %v1815_v62 }
 0x309   : > { %2639 = vmatpush.msrb.mxu2 %v2074_v13 }
 0x30a   : > { %2364 = vperm.xlu1 %3370, %v2242_v16   ;;  %v1620_v16 = vpop.xlane.xlu0 %1619 }
 0x30b   : > { %2625 = vmatmul.f32.gmra.mxu3 %v2205_v15  ;;  %2339 = vperm.xlu2 %3371, %v2237_v40   ;;  %v2067_v15 = vmul.f32 0.00390625, %v1808_v60  ;;  %v1806_v40 = vsel %vm1766_vm1, %v4757_v37, 0.0 }
 0x30c   : > { %2515 = vmatmul.f32.gmra.mxu2 %v2208_v21  ;;  %v1701_v39 = vpop.xlane.xlu1 %1700  ;;  %v2213_v21 = vld [vmem:[%s5524_s3 + $0x3c8] sm:$0xff]  ;;  %v2065_v18 = vmul.f32 0.00390625, %v1806_v40 }
 0x30d   : > { %v1832_v10 = vsel %vm1766_vm1, %v1701_v39, 0.0  ;;  %2640 = vmatpush.msrb.mxu2 %v2073_v34  ;;  %2404 = vperm.xlu0 %3369, %v2250_v27   ;;  %v4856_v45 = vpop.f32.mrf.mxu3  ;;  %v4858_v8 = vpop.xlane.xlu2 %1679  ;;  %v2216_v27 = vld [vmem:[%s5524_s3 + $0x3e0] sm:$0xff]  ;;  %v1805_v34 = vsel %vm1766_vm1, %v1620_v16, 0.0 }
 0x30e   : > { %v2091_v14 = vmul.f32 0.00390625, %v1832_v10  ;;  %v4863_v17 = vpop.f32.mrf.mxu2  ;;  %v2064_v39 = vmul.f32 0.00390625, %v1805_v34  ;;  %v1824_v34 = vsel %vm1766_vm1, %v4794_v43, 0.0 }
 0x30f   : > { %2641 = vmatpush.msrb.mxu2 %v2072_v26 }
 0x310   : > { %2751 = vmatpush.msrb.mxu3 %v2091_v14 }
 0x311   : > { %2642 = vmatpush.msrb.mxu2 %v2071_v55 }
 0x312   : > { %2379 = vperm.xlu1 %3370, %v2245_v1  }
 0x313   : > { %2643 = vmatpush.msrb.mxu2 %v2070_v22  ;;  %2628 = vmatmul.f32.gmra.mxu3 %v2209_v50  ;;  %v2251_v22 = vld [vmem:[%s5525_s4 + $0xf8] sm:$0xff] }
 0x314   : > { %2354 = vperm.xlu2 %3371, %v2240_v58   ;;  %2518 = vmatmul.f32.gmra.mxu2 %v2212_v59  ;;  %v4886_v46 = vpop.xlane.xlu1 %1673  ;;  %v1668_v58 = vpop.xlane.xlu0 %1667  ;;  %v2217_v59 = vld [vmem:[%s5524_s3 + $0x3e8] sm:$0xff] }
 0x315   : > { %2644 = vmatpush.msrb.mxu2 %v2069_v6  ;;  %v4888_v62 = vpop.f32.mrf.mxu3  ;;  %v1689_v13 = vpop.xlane.xlu2 %1688  ;;  %v2089_v6 = vmul.f32 0.00390625, %v1830_v41 }
 0x316   : > { %v4893_v9 = vpop.f32.mrf.mxu2  ;;  %v1828_v60 = vsel %vm1766_vm1, %v1689_v13, 0.0  ;;  %v1826_v13 = vsel %vm1766_vm1, %v4799_v19, 0.0 }
 0x317   : > { %2645 = vmatpush.msrb.mxu2 %v2068_v7  ;;  %v2088_v7 = vmul.f32 0.00390625, %v1829_v25 }
 0x319   : > { %2646 = vmatpush.msrb.mxu2 %v2067_v15 }
 0x31a   : > { %2394 = vperm.xlu1 %3370, %v2248_v57   ;;  %v2087_v57 = vmul.f32 0.00390625, %v1828_v60  ;;  %v2094_v60 = vld [vmem:[%s5524_s3 + $0x10] sm:$0xff] }
 0x31b   : > { %2647 = vmatpush.msrb.mxu2 %v2066_v44  ;;  %2631 = vmatmul.f32.gmra.mxu3 %v2213_v21  ;;  %v2086_v21 = vmul.f32 0.00390625, %v1827_v3  ;;  %v1825_v44 = vsel %vm1766_vm1, %v4858_v8, 0.0 }
 0x31c   : > { %2369 = vperm.xlu2 %3371, %v2243_v0   ;;  %2521 = vmatmul.f32.gmra.mxu2 %v2216_v27  ;;  %v1617_v37 = vpop.xlane.xlu1 %1616  ;;  %v2085_v0 = vmul.f32 0.00390625, %v1826_v13  ;;  %v1611_v27 = vpop.xlane.xlu0 %1610 }
 0x31d   : > { %v1804_v26 = vsel %vm1766_vm1, %v1617_v37, 0.0  ;;  %2648 = vmatpush.msrb.mxu2 %v2065_v18  ;;  %v4914_v10 = vpop.f32.mrf.mxu3  ;;  %v1698_v24 = vpop.xlane.xlu2 %1697  ;;  %v2084_v18 = vmul.f32 0.00390625, %v1825_v44  ;;  %v1823_v37 = vsel %vm1766_vm1, %v4886_v46, 0.0 }
 0x31e   : > { %v2063_v14 = vmul.f32 0.00390625, %v1804_v26  ;;  %v1831_v55 = vsel %vm1766_vm1, %v1698_v24, 0.0  ;;  %v4918_v1 = vpop.f32.mrf.mxu2  ;;  %v2083_v26 = vmul.f32 0.00390625, %v1824_v34  ;;  %v1802_v24 = vsel %vm1766_vm1, %v1611_v27, 0.0 }
 0x31f   : > { %v2090_v50 = vmul.f32 0.00390625, %v1831_v55  ;;  %2649 = vmatpush.msrb.mxu2 %v2064_v39 }
 0x321   : > { %2650 = vmatpush.msrb.mxu2 %v2063_v14  ;;  %2752 = vmatpush.msrb.mxu3 %v2090_v50  ;;  %v2082_v50 = vmul.f32 0.00390625, %v1823_v37 }
 0x322   : > { %2409 = vperm.xlu1 %3370, %v2251_v22   ;;  %v1821_v22 = vsel %vm1766_vm1, %v1668_v58, 0.0 }
 0x323   : > { %2634 = vmatmul.f32.gmra.mxu3 %v2217_v59  ;;  %v2061_v59 = vmul.f32 0.00390625, %v1802_v24 }
 0x324   : > { %2384 = vperm.xlu2 %3371, %v2246_v33   ;;  %v1665_v35 = vpop.xlane.xlu1 %1664  ;;  %2753 = vmatpush.msrb.mxu3 %v2089_v6  ;;  %v1659_v3 = vpop.xlane.xlu0 %1658 }
 0x325   : > { %v4940_v16 = vpop.f32.mrf.mxu3  ;;  %v1671_v15 = vpop.xlane.xlu2 %1670  ;;  %v1820_v33 = vsel %vm1766_vm1, %v1665_v35, 0.0  ;;  %v1818_v35 = vsel %vm1766_vm1, %v1659_v3, 0.0 }
 0x326   : > { %v4942_v40 = vpop.f32.mrf.mxu2  ;;  %2754 = vmatpush.msrb.mxu3 %v2088_v7  ;;  %v1822_v43 = vsel %vm1766_vm1, %v1671_v15, 0.0  ;;  %v2080_v7 = vmul.f32 0.00390625, %v1821_v22  ;;  %v2079_v58 = vmul.f32 0.00390625, %v1820_v33  ;;  %v2110_v22 = vld [vmem:[%s5524_s3 + $0x90] sm:$0xff] }
 0x327   : > { %v2081_v25 = vmul.f32 0.00390625, %v1822_v43  ;;  %v2106_v43 = vld [vmem:[%s5524_s3 + $0x70] sm:$0xff] }
 0x328   : > { %2755 = vmatpush.msrb.mxu3 %v2087_v57 }
 0x32a   : > { %2756 = vmatpush.msrb.mxu3 %v2086_v21 }
 0x32c   : > { %2399 = vperm.xlu2 %3371, %v2249_v28   ;;  %v1608_v19 = vpop.xlane.xlu1 %1607  ;;  %2757 = vmatpush.msrb.mxu3 %v2085_v0  ;;  %v2077_v28 = vmul.f32 0.00390625, %v1818_v35  ;;  %v2098_v0 = vld [vmem:[%s5524_s3 + $0x30] sm:$0xff] }
 0x32d   : > { %v4959_v8 = vpop.f32.mrf.mxu3  ;;  %v1614_v39 = vpop.xlane.xlu2 %1613  ;;  %v1801_v46 = vsel %vm1766_vm1, %v1608_v19, 0.0  ;;  %v2122_v35 = vld [vmem:[%s5524_s3 + $0xf0] sm:$0xff] }
 0x32e   : > { %v1803_v14 = vsel %vm1766_vm1, %v1614_v39, 0.0  ;;  %v4965_v55 = vpop.f32.mrf.mxu2  ;;  %2758 = vmatpush.msrb.mxu3 %v2084_v18  ;;  %v2060_v6 = vmul.f32 0.00390625, %v1801_v46  ;;  %v2095_v39 = vld [vmem:[%s5524_s3 + $0x18] sm:$0xff] }
 0x32f   : > { %v2062_v41 = vmul.f32 0.00390625, %v1803_v14  ;;  %v2103_v46 = vld [vmem:[%s5524_s3 + $0x58] sm:$0xff] }
 0x330   : > { %2759 = vmatpush.msrb.mxu3 %v2083_v26  ;;  %v2102_v26 = vld [vmem:[%s5524_s3 + $0x50] sm:$0xff] }
 0x331   : > { %2651 = vmatpush.msrb.mxu2 %v2062_v41 }
 0x332   : > { %2760 = vmatpush.msrb.mxu3 %v2082_v50 }
 0x333   : > { %2652 = vmatpush.msrb.mxu2 %v2061_v59 }
 0x334   : > { %2761 = vmatpush.msrb.mxu3 %v2081_v25  ;;  %v2107_v25 = vld [vmem:[%s5524_s3 + $0x78] sm:$0xff] }
 0x335   : > { %v4978_v15 = vpop.f32.mrf.mxu3  ;;  %v1662_v57 = vpop.xlane.xlu2 %1661  ;;  %2653 = vmatpush.msrb.mxu2 %v2060_v6  ;;  %v2114_v6 = vld [vmem:[%s5524_s3 + $0xb0] sm:$0xff] }
 0x336   : > { %v1819_v13 = vsel %vm1766_vm1, %v1662_v57, 0.0  ;;  %v4982_v21 = vpop.f32.mrf.mxu2  ;;  %2762 = vmatpush.msrb.mxu3 %v2080_v7  ;;  %2654 = vmatmul.f32.vlgmr.msrb.gmra.mxu2 %v2094_v60  ;;  %v2111_v60 = vld [vmem:[%s5524_s3 + $0x98] sm:$0xff]  ;;  %v2118_v57 = vld [vmem:[%s5524_s3 + $0xd0] sm:$0xff] }
 0x337   : > { %v2078_v44 = vmul.f32 0.00390625, %v1819_v13 }
 0x338   : > { %2763 = vmatpush.msrb.mxu3 %v2079_v58  ;;  %v2115_v58 = vld [vmem:[%s5524_s3 + $0xb8] sm:$0xff] }
 0x33a   : > { %2764 = vmatpush.msrb.mxu3 %v2078_v44 }
 0x33c   : > { %2765 = vmatpush.msrb.mxu3 %v2077_v28  ;;  %v2119_v28 = vld [vmem:[%s5524_s3 + $0xd8] sm:$0xff] }
 0x33d   : > { %v4989_v27 = vpop.f32.mrf.mxu3  ;;  %v1656_v34 = vpop.xlane.xlu2 %1655 }
 0x33e   : > { %v1817_v18 = vsel %vm1766_vm1, %v1656_v34, 0.0  ;;  %v4993_v19 = vpop.f32.mrf.mxu2  ;;  %2657 = vmatmul.f32.gmra.mxu2 %v2098_v0  ;;  %v2126_v0 = vld [vmem:[%s5524_s3 + $0x110] sm:$0xff] }
 0x33f   : > { %v2076_v37 = vmul.f32 0.00390625, %v1817_v18 }
 0x341   : > { %2766 = vmatpush.msrb.mxu3 %v2076_v37  ;;  %v2123_v37 = vld [vmem:[%s5524_s3 + $0xf8] sm:$0xff] }
 0x342   : > { %2767 = vmatmul.f32.vlgmr.msrb.gmra.mxu3 %v2095_v39  ;;  %v2130_v39 = vld [vmem:[%s5524_s3 + $0x130] sm:$0xff] }
 0x345   : > { %v5001_v24 = vpop.f32.mrf.mxu3 }
 0x346   : > { %v5003_v14 = vpop.f32.mrf.mxu2  ;;  %2660 = vmatmul.f32.gmra.mxu2 %v2102_v26 }
 0x34a   : > { %2770 = vmatmul.f32.gmra.mxu3 %v2099_v29  ;;  %v2127_v29 = vld [vmem:[%s5524_s3 + $0x118] sm:$0xff] }
 0x34d   : > { %v5013_v50 = vpop.f32.mrf.mxu3 }
 0x34e   : > { %v5011_v41 = vpop.f32.mrf.mxu2  ;;  %2663 = vmatmul.f32.gmra.mxu2 %v2106_v43 }
 0x352   : > { %2773 = vmatmul.f32.gmra.mxu3 %v2103_v46  ;;  %v2134_v46 = vld [vmem:[%s5524_s3 + $0x150] sm:$0xff] }
 0x355   : > { %v5026_v33 = vpop.f32.mrf.mxu3 }
 0x356   : > { %2666 = vmatmul.f32.gmra.mxu2 %v2110_v22  ;;  %v5021_v59 = vpop.f32.mrf.mxu2  ;;  %v2131_v22 = vld [vmem:[%s5524_s3 + $0x138] sm:$0xff] }
 0x35a   : > { %2776 = vmatmul.f32.gmra.mxu3 %v2107_v25 }
 0x35d   : > { %v5036_v3 = vpop.f32.mrf.mxu3 }
 0x35e   : > { %2669 = vmatmul.f32.gmra.mxu2 %v2114_v6  ;;  %v5034_v7 = vpop.f32.mrf.mxu2 }
 0x362   : > { %2779 = vmatmul.f32.gmra.mxu3 %v2111_v60  ;;  %v2138_v60 = vld [vmem:[%s5524_s3 + $0x170] sm:$0xff] }
 0x366   : > { %2672 = vmatmul.f32.gmra.mxu2 %v2118_v57  ;;  %v5049_v44 = vpop.f32.mrf.mxu3  ;;  %v2135_v57 = vld [vmem:[%s5524_s3 + $0x158] sm:$0xff] }
 0x367   : > { %v5044_v13 = vpop.f32.mrf.mxu2 }
 0x36a   : > { %2782 = vmatmul.f32.gmra.mxu3 %v2115_v58 }
 0x36e   : > { %2675 = vmatmul.f32.gmra.mxu2 %v2122_v35  ;;  %v5059_v18 = vpop.f32.mrf.mxu3  ;;  %v2142_v35 = vld [vmem:[%s5524_s3 + $0x190] sm:$0xff] }
 0x36f   : > { %v5057_v34 = vpop.f32.mrf.mxu2  ;;  %5536 = vst [vmem:[#allocation7_spill] sm:$0xff] %v5059_v18 }
 0x372   : > { %2785 = vmatmul.f32.gmra.mxu3 %v2119_v28 }
 0x376   : > { %2678 = vmatmul.f32.gmra.mxu2 %v2126_v0  ;;  %v5072_v43 = vpop.f32.mrf.mxu3  ;;  %v2139_v0 = vld [vmem:[%s5524_s3 + $0x178] sm:$0xff] }
 0x377   : > { %v5067_v26 = vpop.f32.mrf.mxu2  ;;  %5537 = vst [vmem:[#allocation6_spill] sm:$0xff] %v5072_v43 }
 0x37a   : > { %2788 = vmatmul.f32.gmra.mxu3 %v2123_v37  ;;  %v2146_v37 = vld [vmem:[%s5524_s3 + $0x1b0] sm:$0xff] }
 0x37e   : > { %2681 = vmatmul.f32.gmra.mxu2 %v2130_v39  ;;  %v5082_v6 = vpop.f32.mrf.mxu3 }
 0x37f   : > { %v5080_v25 = vpop.f32.mrf.mxu2  ;;  %5539 = vst [vmem:[#allocation9_spill] sm:$0xff] %v5082_v6 }
 0x380   : > { %5538 = vst [vmem:[#allocation8_spill] sm:$0xff] %v5080_v25 }
 0x382   : > { %2791 = vmatmul.f32.gmra.mxu3 %v2127_v29 }
 0x386   : > { %2684 = vmatmul.f32.gmra.mxu2 %v2134_v46  ;;  %v5095_v28 = vpop.f32.mrf.mxu3  ;;  %v2143_v46 = vld [vmem:[%s5524_s3 + $0x198] sm:$0xff] }
 0x387   : > { %v5090_v58 = vpop.f32.mrf.mxu2  ;;  %5541 = vst [vmem:[#allocation11_spill] sm:$0xff] %v5095_v28 }
 0x388   : > { %5540 = vst [vmem:[#allocation10_spill] sm:$0xff] %v5090_v58  ;;  %v2260_v58 = vpop.permute.xlu0 %2259 }
 0x389   : > { %v2433_v18 = vadd.f32 %v4616_v23, %v2260_v58 }
 0x38a   : > { %2794 = vmatmul.f32.gmra.mxu3 %v2131_v22  ;;  %v2150_v22 = vld [vmem:[%s5524_s3 + $0x1d0] sm:$0xff] }
 0x38e   : > { %2687 = vmatmul.f32.gmra.mxu2 %v2138_v60  ;;  %v5105_v29 = vpop.f32.mrf.mxu3 }
 0x38f   : > { %v5103_v39 = vpop.f32.mrf.mxu2  ;;  %5543 = vst [vmem:[#allocation13_spill] sm:$0xff] %v5105_v29  ;;  %v2542_v29 = vpop.f32.mrf.mxu1 }
 0x390   : > { %5542 = vst [vmem:[#allocation12_spill] sm:$0xff] %v5103_v39  ;;  %v2255_v39 = vpop.permute.xlu1 %2254 }
 0x392   : > { %2797 = vmatmul.f32.gmra.mxu3 %v2135_v57  ;;  %v2147_v57 = vld [vmem:[%s5524_s3 + $0x1b8] sm:$0xff] }
 0x396   : > { %2690 = vmatmul.f32.gmra.mxu2 %v2142_v35  ;;  %v5118_v35 = vpop.f32.mrf.mxu3 }
 0x397   : > { %v5113_v60 = vpop.f32.mrf.mxu2  ;;  %5545 = vst [vmem:[#allocation15_spill] sm:$0xff] %v5118_v35 }
 0x398   : > { %5544 = vst [vmem:[#allocation14_spill] sm:$0xff] %v5113_v60  ;;  %v2158_v60 = vld [vmem:[%s5524_s3 + $0x210] sm:$0xff] }
 0x39a   : > { %2800 = vmatmul.f32.gmra.mxu3 %v2139_v0  ;;  %v2154_v0 = vld [vmem:[%s5524_s3 + $0x1f0] sm:$0xff] }
 0x39e   : > { %2693 = vmatmul.f32.gmra.mxu2 %v2146_v37  ;;  %v2151_v37 = vld [vmem:[%s5524_s3 + $0x1d8] sm:$0xff] }
 0x3a2   : > { %2803 = vmatmul.f32.gmra.mxu3 %v2143_v46  ;;  %v5126_v46 = vpop.f32.mrf.mxu2 }
 0x3a3   : > { %5546 = vst [vmem:[#allocation16_spill] sm:$0xff] %v5126_v46  ;;  %v2162_v46 = vld [vmem:[%s5524_s3 + $0x230] sm:$0xff] }
 0x3a6   : > { %2696 = vmatmul.f32.gmra.mxu2 %v2150_v22  ;;  %v5128_v22 = vpop.f32.mrf.mxu3 }
 0x3a7   : > { %5547 = vst [vmem:[#allocation17_spill] sm:$0xff] %v5128_v22 }
 0x3aa   : > { %2806 = vmatmul.f32.gmra.mxu3 %v2147_v57  ;;  %v2155_v57 = vld [vmem:[%s5524_s3 + $0x1f8] sm:$0xff] }
 0x3ae   : > { %2699 = vmatmul.f32.gmra.mxu2 %v2154_v0  ;;  %v2429_v0 = vpop.f32.mrf.mxu0 }
 0x3af   : > { %v2430_v22 = vadd.f32 %v2429_v0, %v2255_v39  ;;  %v2163_v39 = vld [vmem:[%s5524_s3 + $0x238] sm:$0xff]  ;;  %v2170_v0 = vld [vmem:[%s5524_s3 + $0x270] sm:$0xff] }
 0x3b1   : > { %v2543_v6 = vadd.f32 %v2542_v29, %v2430_v22  ;;  %v2546_v29 = vadd.f32 %v4630_v52, %v2433_v18  ;;  %v2265_v22 = vpop.permute.xlu2 %2264  ;;  %v2270_v18 = vpop.permute.xlu0 %2269 }
 0x3b2   : > { %2809 = vmatmul.f32.gmra.mxu3 %v2151_v37  ;;  %v5139_v37 = vpop.f32.mrf.mxu3  ;;  %v2436_v23 = vadd.f32 %v4632_v36, %v2265_v22  ;;  %v2439_v36 = vadd.f32 %v4647_v5, %v2270_v18 }
 0x3b3   : > { %5548 = vst [vmem:[#allocation18_spill] sm:$0xff] %v5139_v37 }
 0x3b4   : > { %v2549_v52 = vadd.f32 %v4645_v48, %v2436_v23  ;;  %v2552_v48 = vadd.f32 %v4660_v42, %v2439_v36  ;;  %v2179_v36 = vld [vmem:[%s5524_s3 + $0x2b8] sm:$0xff] }
 0x3b6   : > { %2702 = vmatmul.f32.gmra.mxu2 %v2158_v60  ;;  %v2159_v60 = vld [vmem:[%s5524_s3 + $0x218] sm:$0xff] }
 0x3b9   : > { %v2655_v35 = vpop.f32.mrf.mxu2  ;;  %v2280_v18 = vpop.permute.xlu2 %2279 }
 0x3ba   : > { %2812 = vmatmul.f32.gmra.mxu3 %v2155_v57  ;;  %v2166_v57 = vld [vmem:[%s5524_s3 + $0x250] sm:$0xff]  ;;  %v2656_v25 = vadd.f32 %v2655_v35, %v2543_v6 }
 0x3be   : > { %2705 = vmatmul.f32.gmra.mxu2 %v2162_v46 }
 0x3c1   : > { %v2658_v28 = vpop.f32.mrf.mxu2 }
 0x3c2   : > { %2815 = vmatmul.f32.gmra.mxu3 %v2159_v60  ;;  %v2659_v6 = vadd.f32 %v2658_v28, %v2546_v29  ;;  %v2174_v60 = vld [vmem:[%s5524_s3 + $0x290] sm:$0xff]  ;;  %v2171_v29 = vld [vmem:[%s5524_s3 + $0x278] sm:$0xff] }
 0x3c5   : > { %v2768_v43 = vpop.f32.mrf.mxu3 }
 0x3c6   : > { %v5148_v37 = vadd.f32 %v2768_v43, %v2656_v25  ;;  %2708 = vmatmul.f32.gmra.mxu2 %v2166_v57  ;;  %v2167_v25 = vld [vmem:[%s5524_s3 + $0x258] sm:$0xff] }
 0x3c9   : > { %v2661_v46 = vpop.f32.mrf.mxu2 }
 0x3ca   : > { %2818 = vmatmul.f32.gmra.mxu3 %v2163_v39  ;;  %v2662_v28 = vadd.f32 %v2661_v46, %v2549_v52 }
 0x3cd   : > { %v2771_v35 = vpop.f32.mrf.mxu3 }
 0x3ce   : > { %v5158_v43 = vadd.f32 %v2771_v35, %v2659_v6  ;;  %2711 = vmatmul.f32.gmra.mxu2 %v2170_v0  ;;  %v2275_v0 = vpop.permute.xlu1 %2274  ;;  %v2178_v6 = vld [vmem:[%s5524_s3 + $0x2b0] sm:$0xff] }
 0x3cf   : > { %v2442_v5 = vadd.f32 %v4662_v53, %v2275_v0  ;;  %v2445_v53 = vadd.f32 %v4677_v54, %v2280_v18  ;;  %v2186_v0 = vld [vmem:[%s5524_s3 + $0x2f0] sm:$0xff] }
 0x3d1   : > { %v2664_v58 = vpop.f32.mrf.mxu2  ;;  %v2555_v42 = vadd.f32 %v4675_v2, %v2442_v5  ;;  %v2558_v2 = vadd.f32 %v4693_v31, %v2445_v53  ;;  %v2295_v53 = vpop.permute.xlu2 %2294 }
 0x3d2   : > { %2821 = vmatmul.f32.gmra.mxu3 %v2167_v25  ;;  %v2665_v46 = vadd.f32 %v2664_v58, %v2552_v48  ;;  %v2175_v25 = vld [vmem:[%s5524_s3 + $0x298] sm:$0xff]  ;;  %v2285_v48 = vpop.permute.xlu0 %2284 }
 0x3d3   : > { %v2448_v54 = vadd.f32 %v4695_v63, %v2285_v48 }
 0x3d5   : > { %v2774_v57 = vpop.f32.mrf.mxu3  ;;  %v2561_v31 = vadd.f32 %v4713_v51, %v2448_v54  ;;  %v2198_v54 = vld [vmem:[%s5524_s3 + $0x350] sm:$0xff] }
 0x3d6   : > { %v5168_v39 = vadd.f32 %v2774_v57, %v2662_v28  ;;  %2714 = vmatmul.f32.gmra.mxu2 %v2174_v60  ;;  %v2182_v60 = vld [vmem:[%s5524_s3 + $0x2d0] sm:$0xff] }
 0x3d9   : > { %v2667_v22 = vpop.f32.mrf.mxu2 }
 0x3da   : > { %2824 = vmatmul.f32.gmra.mxu3 %v2171_v29  ;;  %v2668_v58 = vadd.f32 %v2667_v22, %v2555_v42  ;;  %v2190_v42 = vld [vmem:[%s5524_s3 + $0x310] sm:$0xff] }
 0x3dd   : > { %v2777_v35 = vpop.f32.mrf.mxu3 }
 0x3de   : > { %v5178_v23 = vadd.f32 %v2777_v35, %v2665_v46  ;;  %2717 = vmatmul.f32.gmra.mxu2 %v2178_v6  ;;  %v2183_v35 = vld [vmem:[%s5524_s3 + $0x2d8] sm:$0xff] }
 0x3e1   : > { %v2670_v52 = vpop.f32.mrf.mxu2 }
 0x3e2   : > { %2827 = vmatmul.f32.gmra.mxu3 %v2175_v25  ;;  %v2671_v22 = vadd.f32 %v2670_v52, %v2558_v2  ;;  %v2290_v25 = vpop.permute.xlu1 %2289 }
 0x3e3   : > { %v2451_v63 = vadd.f32 %v4715_v61, %v2290_v25  ;;  %v2454_v61 = vadd.f32 %v4736_v12, %v2295_v53  ;;  %v2195_v25 = vld [vmem:[%s5524_s3 + $0x338] sm:$0xff] }
 0x3e5   : > { %v2780_v28 = vpop.f32.mrf.mxu3  ;;  %v2564_v51 = vadd.f32 %v4734_v20, %v2451_v63  ;;  %v2567_v20 = vadd.f32 %v4755_v49, %v2454_v61 }
 0x3e6   : > { %v5188_v57 = vadd.f32 %v2780_v28, %v2668_v58  ;;  %2720 = vmatmul.f32.gmra.mxu2 %v2182_v60  ;;  %v2187_v58 = vld [vmem:[%s5524_s3 + $0x2f8] sm:$0xff] }
 0x3e9   : > { %v2673_v29 = vpop.f32.mrf.mxu2 }
 0x3ea   : > { %2830 = vmatmul.f32.gmra.mxu3 %v2179_v36  ;;  %v2674_v52 = vadd.f32 %v2673_v29, %v2561_v31  ;;  %v2194_v36 = vld [vmem:[%s5524_s3 + $0x330] sm:$0xff] }
 0x3ed   : > { %v2783_v6 = vpop.f32.mrf.mxu3 }
 0x3ee   : > { %v5198_v46 = vadd.f32 %v2783_v6, %v2671_v22  ;;  %2723 = vmatmul.f32.gmra.mxu2 %v2186_v0  ;;  %v2191_v0 = vld [vmem:[%s5524_s3 + $0x318] sm:$0xff]  ;;  %v2300_v6 = vpop.permute.xlu0 %2299 }
 0x3ef   : > { %v2457_v12 = vadd.f32 %v4759_v4, %v2300_v6 }
 0x3f1   : > { %v2676_v5 = vpop.f32.mrf.mxu2  ;;  %v2570_v49 = vadd.f32 %v4776_v56, %v2457_v12 }
 0x3f2   : > { %2833 = vmatmul.f32.gmra.mxu3 %v2183_v35  ;;  %v2677_v29 = vadd.f32 %v2676_v5, %v2564_v51  ;;  %v2199_v51 = vld [vmem:[%s5524_s3 + $0x358] sm:$0xff] }
 0x3f5   : > { %v2786_v18 = vpop.f32.mrf.mxu3 }
 0x3f6   : > { %v5208_v60 = vadd.f32 %v2786_v18, %v2674_v52  ;;  %2726 = vmatmul.f32.gmra.mxu2 %v2190_v42  ;;  %v2305_v52 = vpop.permute.xlu1 %2304  ;;  %v2202_v18 = vld [vmem:[%s5524_s3 + $0x370] sm:$0xff]  ;;  %v2315_v6 = vpop.permute.xlu0 %2314 }
 0x3f7   : > { %v2460_v4 = vadd.f32 %v4780_v32, %v2305_v52  ;;  %v2214_v52 = vld [vmem:[%s5524_s3 + $0x3d0] sm:$0xff] }
 0x3f9   : > { %v2679_v28 = vpop.f32.mrf.mxu2  ;;  %v2573_v56 = vadd.f32 %v4801_v30, %v2460_v4  ;;  %v2211_v4 = vld [vmem:[%s5524_s3 + $0x3b8] sm:$0xff] }
 0x3fa   : > { %2836 = vmatmul.f32.gmra.mxu3 %v2187_v58  ;;  %v2680_v35 = vadd.f32 %v2679_v28, %v2567_v20 }
 0x3fd   : > { %v2789_v2 = vpop.f32.mrf.mxu3 }
 0x3fe   : > { %v5218_v48 = vadd.f32 %v2789_v2, %v2677_v29  ;;  %2729 = vmatmul.f32.gmra.mxu2 %v2194_v36  ;;  %v2310_v36 = vpop.permute.xlu2 %2309  ;;  %v2206_v29 = vld [vmem:[%s5524_s3 + $0x390] sm:$0xff] }
 0x3ff   : > { %v2463_v32 = vadd.f32 %v4803_v11, %v2310_v36  ;;  %v2466_v11 = vadd.f32 %v4828_v47, %v2315_v6 }
 0x401   : > { %v2682_v22 = vpop.f32.mrf.mxu2  ;;  %v2576_v30 = vadd.f32 %v4824_v38, %v2463_v32  ;;  %v2579_v38 = vadd.f32 %v4856_v45, %v2466_v11 }
 0x402   : > { %2839 = vmatmul.f32.gmra.mxu3 %v2191_v0  ;;  %v2683_v63 = vadd.f32 %v2682_v22, %v2570_v49  ;;  %v2203_v22 = vld [vmem:[%s5524_s3 + $0x378] sm:$0xff]  ;;  %v2320_v49 = vpop.permute.xlu1 %2319 }
 0x403   : > { %v2469_v47 = vadd.f32 %v4863_v17, %v2320_v49 }
 0x405   : > { %v2792_v5 = vpop.f32.mrf.mxu3  ;;  %v2582_v45 = vadd.f32 %v4888_v62, %v2469_v47 }
 0x406   : > { %v5228_v31 = vadd.f32 %v2792_v5, %v2680_v35  ;;  %2732 = vmatmul.f32.gmra.mxu2 %v2198_v54  ;;  %v2210_v54 = vld [vmem:[%s5524_s3 + $0x3b0] sm:$0xff] }
 0x409   : > { %v2685_v42 = vpop.f32.mrf.mxu2 }
 0x40a   : > { %2842 = vmatmul.f32.gmra.mxu3 %v2195_v25  ;;  %v2686_v2 = vadd.f32 %v2685_v42, %v2573_v56  ;;  %v2207_v25 = vld [vmem:[%s5524_s3 + $0x398] sm:$0xff]  ;;  %v2218_v56 = vld [vmem:[%s5524_s3 + $0x3f0] sm:$0xff]  ;;  %v2335_v11 = vpop.permute.xlu1 %2334 }
 0x40d   : > { %v2795_v58 = vpop.f32.mrf.mxu3 }
 0x40e   : > { %v5238_v28 = vadd.f32 %v2795_v58, %v2683_v63  ;;  %2735 = vmatmul.f32.gmra.mxu2 %v2202_v18 }
 0x411   : > { %v2688_v53 = vpop.f32.mrf.mxu2 }
 0x412   : > { %2845 = vmatmul.f32.gmra.mxu3 %v2199_v51  ;;  %v2689_v35 = vadd.f32 %v2688_v53, %v2576_v30  ;;  %v2325_v53 = vpop.permute.xlu2 %2324 }
 0x413   : > { %v2472_v17 = vadd.f32 %v4893_v9, %v2325_v53  ;;  %v2219_v9 = vld [vmem:[%s5524_s3 + $0x3f8] sm:$0xff] }
 0x415   : > { %v2798_v61 = vpop.f32.mrf.mxu3  ;;  %v2585_v62 = vadd.f32 %v4914_v10, %v2472_v17  ;;  %v2478_v10 = vadd.f32 %v4942_v40, %v2335_v11  ;;  %v2350_v17 = vpop.permute.xlu1 %2349 }
 0x416   : > { %v5248_v0 = vadd.f32 %v2798_v61, %v2686_v2  ;;  %2738 = vmatmul.f32.gmra.mxu2 %v2206_v29  ;;  %v2215_v61 = vld [vmem:[%s5524_s3 + $0x3d8] sm:$0xff] }
 0x419   : > { %v2691_v20 = vpop.f32.mrf.mxu2 }
 0x41a   : > { %2848 = vmatmul.f32.gmra.mxu3 %v2203_v22  ;;  %v2692_v18 = vadd.f32 %v2691_v20, %v2579_v38  ;;  %v2330_v22 = vpop.permute.xlu0 %2329 }
 0x41b   : > { %v2475_v6 = vadd.f32 %v4918_v1, %v2330_v22  ;;  %v2591_v1 = vadd.f32 %v4959_v8, %v2478_v10 }
 0x41d   : > { %v2801_v5 = vpop.f32.mrf.mxu3 }
 0x41e   : > { %v5258_v12 = vadd.f32 %v2801_v5, %v2689_v35  ;;  %2741 = vmatmul.f32.gmra.mxu2 %v2210_v54  ;;  %v2588_v5 = vadd.f32 %v4940_v16, %v2475_v6 }
 0x421   : > { %v2694_v42 = vpop.f32.mrf.mxu2 }
 0x422   : > { %2851 = vmatmul.f32.gmra.mxu3 %v2207_v25  ;;  %v2695_v36 = vadd.f32 %v2694_v42, %v2582_v45  ;;  %v2345_v45 = vpop.permute.xlu0 %2344 }
 0x423   : > { %v2484_v40 = vadd.f32 %v4982_v21, %v2345_v45  ;;  %v2868_v45 = vmul.f32 %v5188_v57, %v5188_v57 }
 0x425   : > { %v2804_v63 = vpop.f32.mrf.mxu3  ;;  %v2597_v8 = vadd.f32 %v4989_v27, %v2484_v40  ;;  %v2869_v40 = vmul.f32 %v5198_v46, %v5198_v46 }
 0x426   : > { %v5268_v58 = vadd.f32 %v2804_v63, %v2692_v18  ;;  %2744 = vmatmul.f32.gmra.mxu2 %v2214_v52  ;;  %v2340_v52 = vpop.permute.xlu2 %2339 }
 0x427   : > { %v2481_v47 = vadd.f32 %v4965_v55, %v2340_v52  ;;  %v2487_v55 = vadd.f32 %v4993_v19, %v2350_v17  ;;  %v2864_v52 = vmul.f32 %v5148_v37, %v5148_v37 }
 0x429   : > { %v2697_v51 = vpop.f32.mrf.mxu2  ;;  %v2594_v16 = vadd.f32 %v4978_v15, %v2481_v47  ;;  %v2600_v15 = vadd.f32 %v5001_v24, %v2487_v55 }
 0x42a   : > { %2854 = vmatmul.f32.gmra.mxu3 %v2211_v4  ;;  %v2698_v20 = vadd.f32 %v2697_v51, %v2585_v62 }
 0x42d   : > { %v2807_v29 = vpop.f32.mrf.mxu3 }
 0x42e   : > { %v5278_v2 = vadd.f32 %v2807_v29, %v2695_v36  ;;  %2747 = vmatmul.f32.gmra.mxu2 %v2218_v56 }
 0x431   : > { %v2700_v32 = vpop.f32.mrf.mxu2 }
 0x432   : > { %2857 = vmatmul.f32.gmra.mxu3 %v2215_v61  ;;  %v2701_v25 = vadd.f32 %v2700_v32, %v2588_v5 }
 0x435   : > { %v2810_v30 = vpop.f32.mrf.mxu3 }
 0x436   : > { %v5285_v54 = vadd.f32 %v2810_v30, %v2698_v20  ;;  %v2355_v20 = vpop.permute.xlu2 %2354 }
 0x437   : > { %v2490_v21 = vadd.f32 %v5003_v14, %v2355_v20  ;;  %v2360_v20 = vpop.permute.xlu0 %2359 }
 0x439   : > { %v2703_v35 = vpop.f32.mrf.mxu2  ;;  %v2603_v27 = vadd.f32 %v5013_v50, %v2490_v21  ;;  %v2865_v50 = vmul.f32 %v5158_v43, %v5158_v43  ;;  %v2365_v21 = vpop.permute.xlu1 %2364 }
 0x43a   : > { %2860 = vmatmul.f32.gmra.mxu3 %v2219_v9  ;;  %v2704_v18 = vadd.f32 %v2703_v35, %v2591_v1 }
 0x43b   : > { %v2896_v47 = vadd.f32 %v2865_v50, %v2864_v52  ;;  %v2875_v52 = vmul.f32 %v5258_v12, %v5258_v12 }
 0x43d   : > { %v2813_v42 = vpop.f32.mrf.mxu3 }
 0x43e   : > { %v5292_v38 = vadd.f32 %v2813_v42, %v2701_v25 }
 0x441   : > { %v2706_v49 = vpop.f32.mrf.mxu2 }
 0x442   : > { %v2707_v53 = vadd.f32 %v2706_v49, %v2594_v16 }
 0x445   : > { %v2816_v63 = vpop.f32.mrf.mxu3 }
 0x446   : > { %v5296_v4 = vadd.f32 %v2816_v63, %v2704_v18  ;;  %v2866_v18 = vmul.f32 %v5168_v39, %v5168_v39 }
 0x448   : > { %v2897_v16 = vadd.f32 %v2896_v47, %v2866_v18  ;;  %v2370_v18 = vpop.permute.xlu2 %2369 }
 0x449   : > { %v2709_v51 = vpop.f32.mrf.mxu2 }
 0x44a   : > { %v2710_v61 = vadd.f32 %v2709_v51, %v2597_v8  ;;  %v2867_v51 = vmul.f32 %v5178_v23, %v5178_v23  ;;  %v2870_v8 = vmul.f32 %v5208_v60, %v5208_v60 }
 0x44d   : > { %v2819_v56 = vpop.f32.mrf.mxu3 }
 0x44e   : > { %v5300_v36 = vadd.f32 %v2819_v56, %v2707_v53  ;;  %v2898_v56 = vadd.f32 %v2897_v16, %v2867_v51  ;;  %v2876_v51 = vmul.f32 %v5268_v58, %v5268_v58 }
 0x451   : > { %v2712_v29 = vpop.f32.mrf.mxu2 }
 0x452   : > { %v2713_v30 = vadd.f32 %v2712_v29, %v2600_v15  ;;  %v2899_v29 = vadd.f32 %v2898_v56, %v2868_v45  ;;  %v2877_v45 = vmul.f32 %v5278_v2, %v5278_v2 }
 0x455   : > { %v2822_v32 = vpop.f32.mrf.mxu3 }
 0x456   : > { %v5304_v62 = vadd.f32 %v2822_v32, %v2710_v61  ;;  %v2900_v61 = vadd.f32 %v2899_v29, %v2869_v40  ;;  %v2871_v32 = vmul.f32 %v5218_v48, %v5218_v48  ;;  %v2375_v40 = vpop.permute.xlu0 %2374 }
 0x458   : > { %v2901_v55 = vadd.f32 %v2900_v61, %v2870_v8  ;;  %v2878_v8 = vmul.f32 %v5285_v54, %v5285_v54 }
 0x459   : > { %v2715_v22 = vpop.f32.mrf.mxu2 }
 0x45a   : > { %v2716_v5 = vadd.f32 %v2715_v22, %v2603_v27  ;;  %v2872_v22 = vmul.f32 %v5228_v31, %v5228_v31 }
 0x45d   : > { %v2825_v6 = vpop.f32.mrf.mxu3 }
 0x45e   : > { %v5308_v9 = vadd.f32 %v2825_v6, %v2713_v30  ;;  %v2902_v30 = vadd.f32 %v2901_v55, %v2871_v32  ;;  %v2873_v6 = vmul.f32 %v5238_v28, %v5238_v28  ;;  %v2493_v32 = vadd.f32 %v5011_v41, %v2360_v20  ;;  %v2380_v55 = vpop.permute.xlu1 %2379 }
 0x45f   : > { %v2502_v20 = vadd.f32 %v5044_v13, %v2375_v40 }
 0x460   : > { %v2903_v27 = vadd.f32 %v2902_v30, %v2872_v22  ;;  %v2879_v30 = vmul.f32 %v5292_v38, %v5292_v38  ;;  %v2606_v41 = vadd.f32 %v5026_v33, %v2493_v32  ;;  %v2883_v33 = vmul.f32 %v5308_v9, %v5308_v9  ;;  %v5549_v32 = vld [vmem:[#allocation7_spill] sm:$0xff] }
 0x461   : > { %v5310_v35 = vpop.f32.mrf.mxu2 }
 0x462   : > { %v2904_v50 = vadd.f32 %v2903_v27, %v2873_v6  ;;  %v2496_v6 = vadd.f32 %v5021_v59, %v2365_v21  ;;  %v2719_v59 = vadd.f32 %v5310_v35, %v2606_v41  ;;  %v5552_v41 = vld [vmem:[#allocation10_spill] sm:$0xff] }
 0x464   : > { %v2609_v21 = vadd.f32 %v5036_v3, %v2496_v6  ;;  %v2615_v3 = vadd.f32 %v5549_v32, %v2502_v20 }
 0x465   : > { %v2828_v11 = vpop.f32.mrf.mxu3 }
 0x466   : > { %v5313_v25 = vadd.f32 %v2828_v11, %v2716_v5  ;;  %v2874_v5 = vmul.f32 %v5248_v0, %v5248_v0  ;;  %v2395_v6 = vpop.permute.xlu1 %2394 }
 0x467   : > { %v2514_v20 = vadd.f32 %v5552_v41, %v2395_v6  ;;  %v5559_v41 = vld [vmem:[#allocation17_spill] sm:$0xff] }
 0x468   : > { %v2905_v47 = vadd.f32 %v2904_v50, %v2874_v5  ;;  %v2880_v5 = vmul.f32 %v5296_v4, %v5296_v4  ;;  %v2499_v50 = vadd.f32 %v5034_v7, %v2370_v18 }
 0x469   : > { %v5315_v19 = vpop.f32.mrf.mxu2 }
 0x46a   : > { %v2906_v16 = vadd.f32 %v2905_v47, %v2875_v52  ;;  %v2385_v52 = vpop.permute.xlu2 %2384  ;;  %v2612_v7 = vadd.f32 %v5049_v44, %v2499_v50  ;;  %v2722_v13 = vadd.f32 %v5315_v19, %v2609_v21  ;;  %v2884_v44 = vmul.f32 %v5313_v25, %v5313_v25 }
 0x46b   : > { %v2508_v35 = vadd.f32 %v5067_v26, %v2385_v52 }
 0x46c   : > { %v2907_v29 = vadd.f32 %v2906_v16, %v2876_v51  ;;  %v2881_v51 = vmul.f32 %v5300_v36, %v5300_v36 }
 0x46d   : > { %v5317_v42 = vpop.f32.mrf.mxu3 }
 0x46e   : > { %v2908_v22 = vadd.f32 %v2907_v29, %v2877_v45  ;;  %v2882_v45 = vmul.f32 %v5304_v62, %v5304_v62  ;;  %v2505_v29 = vadd.f32 %v5057_v34, %v2380_v55  ;;  %v5394_v40 = vadd.f32 %v5317_v42, %v2719_v59 }
 0x470   : > { %v2909_v27 = vadd.f32 %v2908_v22, %v2878_v8  ;;  %v2390_v22 = vpop.permute.xlu0 %2389  ;;  %v2885_v42 = vmul.f32 %v5394_v40, %v5394_v40 }
 0x471   : > { %v5319_v24 = vpop.f32.mrf.mxu2 }
 0x472   : > { %v2910_v47 = vadd.f32 %v2909_v27, %v2879_v30  ;;  %v2725_v55 = vadd.f32 %v5319_v24, %v2612_v7 }
 0x474   : > { %v2911_v16 = vadd.f32 %v2910_v47, %v2880_v5  ;;  %v5550_v5 = vld [vmem:[#allocation6_spill] sm:$0xff]  ;;  %v5551_v47 = vld [vmem:[#allocation8_spill] sm:$0xff] }
 0x475   : > { %v5321_v10 = vpop.f32.mrf.mxu3  ;;  %v2618_v50 = vadd.f32 %v5550_v5, %v2505_v29 }
 0x476   : > { %v2912_v30 = vadd.f32 %v2911_v16, %v2881_v51  ;;  %v5402_v27 = vadd.f32 %v5321_v10, %v2722_v13  ;;  %v2511_v51 = vadd.f32 %v5551_v47, %v2390_v22  ;;  %v5553_v16 = vld [vmem:[#allocation9_spill] sm:$0xff] }
 0x477   : > { %v2621_v24 = vadd.f32 %v5553_v16, %v2508_v35  ;;  %v5555_v35 = vld [vmem:[#allocation13_spill] sm:$0xff] }
 0x478   : > { %v2913_v34 = vadd.f32 %v2912_v30, %v2882_v45  ;;  %v2400_v45 = vpop.permute.xlu2 %2399  ;;  %v2886_v59 = vmul.f32 %v5402_v27, %v5402_v27  ;;  %v2627_v32 = vadd.f32 %v5555_v35, %v2514_v20 }
 0x479   : > { %v5323_v49 = vpop.f32.mrf.mxu2 }
 0x47a   : > { %v2914_v19 = vadd.f32 %v2913_v34, %v2883_v33  ;;  %v2728_v26 = vadd.f32 %v5323_v49, %v2615_v3  ;;  %v5554_v49 = vld [vmem:[#allocation11_spill] sm:$0xff]  ;;  %v5556_v3 = vld [vmem:[#allocation12_spill] sm:$0xff]  ;;  %v2405_v34 = vpop.permute.xlu0 %2404 }
 0x47b   : > { %v2624_v7 = vadd.f32 %v5554_v49, %v2511_v51  ;;  %v2517_v6 = vadd.f32 %v5556_v3, %v2400_v45 }
 0x47c   : > { %v2915_v10 = vadd.f32 %v2914_v19, %v2884_v44  ;;  %v5558_v19 = vld [vmem:[#allocation15_spill] sm:$0xff] }
 0x47d   : > { %v5325_v14 = vpop.f32.mrf.mxu3 }
 0x47e   : > { %v5409_v52 = vadd.f32 %v5325_v14, %v2725_v55  ;;  %v2916_v30 = vadd.f32 %v2915_v10, %v2885_v42 }
 0x480   : > { %v2887_v22 = vmul.f32 %v5409_v52, %v5409_v52 }
 0x481   : > { %v5327_v1 = vpop.f32.mrf.mxu2 }
 0x482   : > { %v2731_v21 = vadd.f32 %v5327_v1, %v2618_v50  ;;  %v5557_v50 = vld [vmem:[#allocation14_spill] sm:$0xff] }
 0x485   : > { %v5335_v63 = vpop.f32.mrf.mxu3 }
 0x486   : > { %v5418_v29 = vadd.f32 %v5335_v63, %v2728_v26  ;;  %v2917_v63 = vadd.f32 %v2916_v30, %v2886_v59 }
 0x488   : > { %v2888_v44 = vmul.f32 %v5418_v29, %v5418_v29  ;;  %v2918_v42 = vadd.f32 %v2917_v63, %v2887_v22 }
 0x489   : > { %v5341_v53 = vpop.f32.mrf.mxu2 }
 0x48a   : > { %v2734_v33 = vadd.f32 %v5341_v53, %v2621_v24  ;;  %v2520_v53 = vadd.f32 %v5557_v50, %v2405_v34  ;;  %v2919_v16 = vadd.f32 %v2918_v42, %v2888_v44 }
 0x48c   : > { %v2633_v20 = vadd.f32 %v5559_v41, %v2520_v53 }
 0x48d   : > { %v5347_v17 = vpop.f32.mrf.mxu3 }
 0x48e   : > { %v5425_v13 = vadd.f32 %v5347_v17, %v2731_v21  ;;  %v2630_v17 = vadd.f32 %v5558_v19, %v2517_v6 }
 0x490   : > { %v2889_v26 = vmul.f32 %v5425_v13, %v5425_v13 }
 0x491   : > { %v5353_v15 = vpop.f32.mrf.mxu2 }
 0x492   : > { %v2737_v55 = vadd.f32 %v5353_v15, %v2624_v7  ;;  %v2920_v10 = vadd.f32 %v2919_v16, %v2889_v26  ;;  %v5560_v7 = vld [vmem:[#allocation16_spill] sm:$0xff] }
 0x495   : > { %v5359_v11 = vpop.f32.mrf.mxu3 }
 0x496   : > { %v5433_v5 = vadd.f32 %v5359_v11, %v2734_v33 }
 0x498   : > { %v2890_v15 = vmul.f32 %v5433_v5, %v5433_v5 }
 0x499   : > { %v5367_v56 = vpop.f32.mrf.mxu2 }
 0x49a   : > { %v2740_v47 = vadd.f32 %v5367_v56, %v2627_v32  ;;  %v2410_v56 = vpop.permute.xlu1 %2409  ;;  %v2921_v30 = vadd.f32 %v2920_v10, %v2890_v15  ;;  %v5561_v32 = vld [vmem:[#allocation18_spill] sm:$0xff] }
 0x49d   : > { %v5371_v61 = vpop.f32.mrf.mxu3 }
 0x49e   : > { %v5441_v51 = vadd.f32 %v5371_v61, %v2737_v55  ;;  %v2523_v61 = vadd.f32 %v5560_v7, %v2410_v56 }
 0x4a0   : > { %v2891_v59 = vmul.f32 %v5441_v51, %v5441_v51 }
 0x4a1   : > { %v2742_v18 = vpop.f32.mrf.mxu2 }
 0x4a2   : > { %v2743_v11 = vadd.f32 %v2742_v18, %v2630_v17  ;;  %v2636_v18 = vadd.f32 %v5561_v32, %v2523_v61 }
 0x4a5   : > { %v2852_v8 = vpop.f32.mrf.mxu3 }
 0x4a6   : > { %v5446_v24 = vadd.f32 %v2852_v8, %v2740_v47  ;;  %v2922_v8 = vadd.f32 %v2921_v30, %v2891_v59 }
 0x4a8   : > { %v2892_v22 = vmul.f32 %v5446_v24, %v5446_v24 }
 0x4a9   : > { %v2745_v1 = vpop.f32.mrf.mxu2 }
 0x4aa   : > { %v2746_v21 = vadd.f32 %v2745_v1, %v2633_v20  ;;  %v2923_v6 = vadd.f32 %v2922_v8, %v2892_v22 }
 0x4ad   : > { %v2855_v14 = vpop.f32.mrf.mxu3 }
 0x4ae   : > { %v2856_v49 = vadd.f32 %v2855_v14, %v2743_v11 }
 0x4b0   : > { %v2893_v3 = vmul.f32 %v2856_v49, %v2856_v49 }
 0x4b1   : > { %v2748_v35 = vpop.f32.mrf.mxu2 }
 0x4b2   : > { %v2749_v34 = vadd.f32 %v2748_v35, %v2636_v18  ;;  %v2924_v55 = vadd.f32 %v2923_v6, %v2893_v3 }
 0x4b5   : > { %v2858_v45 = vpop.f32.mrf.mxu3 }
 0x4b6   : > { %v2859_v33 = vadd.f32 %v2858_v45, %v2746_v21 }
 0x4b8   : > { %v2894_v63 = vmul.f32 %v2859_v33, %v2859_v33 }
 0x4ba   : > { %v2925_v14 = vadd.f32 %v2924_v55, %v2894_v63 }
 0x4bd   : > { %v2861_v44 = vpop.f32.mrf.mxu3 }
 0x4be   : > { %v2862_v1 = vadd.f32 %v2861_v44, %v2749_v34 }
 0x4c0   : > { %v2895_v50 = vmul.f32 %v2862_v1, %v2862_v1 }
 0x4c2   : > { %v2926_v53 = vadd.f32 %v2925_v14, %v2895_v50 }
 0x4c4   : > { %v2927_v19 = vrot.slane %v2926_v53, 4 }
 0x4c6   : > { %v2928_v17 = vadd.f32 %v2927_v19, %v2926_v53 }
 0x4c8   : > { %v2929_v42 = vrot.slane %v2928_v17, 2 }
 0x4ca   : > { %v2930_v26 = vadd.f32 %v2929_v42, %v2928_v17 }
 0x4cc   : > { %v2931_v47 = vrot.slane %v2930_v26, 1 }
 0x4ce   : > { %v2932_v41 = vadd.f32 %v2931_v47, %v2930_v26 }
 0x4d0   : > { %v2933_v20 = vmax.f32 %v2932_v41, 1e-24 }
 0x4d2   : > { %3372 = vrsqrt.f32 %v2933_v20  ;;  %vm2940_vm3 = vweird.f32 %v2933_v20 }
 0x4d8   : > { %v3373_v16 = vpop.eup %3372 }
 0x4d9   : > { %v2935_v15 = vmul.f32 %v3373_v16, %v2933_v20  ;;  %vm2941_vm2 = vweird.f32 %v3373_v16 }
 0x4da   : > { %vm2942_vm4 = vmor %vm2940_vm3, %vm2941_vm2 }
 0x4db   : > { %v2936_v11 = vmul.f32 %v3373_v16, %v2935_v15 }
 0x4dd   : > { %v2937_v45 = vmul.f32 0.5, %v2936_v11 }
 0x4df   : > { %v2938_v10 = vsub.f32 1.5, %v2937_v45 }
 0x4e1   : > { %v2939_v59 = vmul.f32 %v3373_v16, %v2938_v10 }
 0x4e3   : > { %v2943_v21 = vsel %vm2942_vm4, %v3373_v16, %v2939_v59 }
 0x4e4   : > { %v2975_v56 = vmul.f32 %v2943_v21, %v2862_v1  ;;  %v2944_v7 = vmul.f32 %v2943_v21, %v5148_v37  ;;  %v2960_v61 = vmul.f32 %v2943_v21, %v5296_v4  ;;  %v2973_v30 = vmul.f32 %v2943_v21, %v2856_v49 }
 0x4e5   : > { %v2974_v22 = vmul.f32 %v2943_v21, %v2859_v33  ;;  %v2945_v35 = vmul.f32 %v2943_v21, %v5158_v43  ;;  %v2961_v32 = vmul.f32 %v2943_v21, %v5300_v36  ;;  %v2946_v18 = vmul.f32 %v2943_v21, %v5168_v39 }
 0x4e6   : > { %2976 = vxpose.xlu2.b32.start [1/16] (narrow) %v2944_v7, 8  ;;  %3008 = vxpose.xlu0.b32.start [1/16] (narrow) %v2960_v61, 8  ;;  %v2962_v8 = vmul.f32 %v2943_v21, %v5304_v62  ;;  %v2947_v37 = vmul.f32 %v2943_v21, %v5178_v23  ;;  %v2963_v4 = vmul.f32 %v2943_v21, %v5308_v9 }
 0x4e7   : > { %v2948_v49 = vmul.f32 %v2943_v21, %v5188_v57  ;;  %v2964_v43 = vmul.f32 %v2943_v21, %v5313_v25  ;;  %v2949_v36 = vmul.f32 %v2943_v21, %v5198_v46  ;;  %v2965_v39 = vmul.f32 %v2943_v21, %v5394_v40 }
 0x4e8   : > { %v2950_v62 = vmul.f32 %v2943_v21, %v5208_v60  ;;  %v2966_v23 = vmul.f32 %v2943_v21, %v5402_v27  ;;  %v2951_v9 = vmul.f32 %v2943_v21, %v5218_v48  ;;  %v2967_v57 = vmul.f32 %v2943_v21, %v5409_v52 }
 0x4e9   : > { %v2952_v25 = vmul.f32 %v2943_v21, %v5228_v31  ;;  %v2968_v46 = vmul.f32 %v2943_v21, %v5418_v29  ;;  %v2953_v40 = vmul.f32 %v2943_v21, %v5238_v28  ;;  %v2969_v60 = vmul.f32 %v2943_v21, %v5425_v13 }
 0x4ea   : > { %v2954_v27 = vmul.f32 %v2943_v21, %v5248_v0  ;;  %v2970_v48 = vmul.f32 %v2943_v21, %v5433_v5  ;;  %v2955_v52 = vmul.f32 %v2943_v21, %v5258_v12  ;;  %v2971_v31 = vmul.f32 %v2943_v21, %v5441_v51 }
 0x4eb   : > { %v2956_v28 = vmul.f32 %v2943_v21, %v5268_v58  ;;  %v2972_v29 = vmul.f32 %v2943_v21, %v5446_v24  ;;  %v2957_v0 = vmul.f32 %v2943_v21, %v5278_v2  ;;  %v2958_v13 = vmul.f32 %v2943_v21, %v5285_v54 }
 0x4ec   : > { %v2959_v12 = vmul.f32 %v2943_v21, %v5292_v38  ;;  %v5562_v5 = vlaneseq }
 0x4ee   : > { %2977 = vxpose.xlu2.b32.cont [2/16] (narrow) %v2945_v35, 8  ;;  %3009 = vxpose.xlu0.b32.cont [2/16] (narrow) %v2961_v32, 8  ;;  %vm3048_vm6 = vcmp.lt.s32.totalorder %v5562_v5, 256 }
 0x4f6   : > { %2978 = vxpose.xlu2.b32.cont [3/16] (narrow) %v2946_v18, 8  ;;  %3010 = vxpose.xlu0.b32.cont [3/16] (narrow) %v2962_v8, 8 }
 0x4fe   : > { %2979 = vxpose.xlu2.b32.cont [4/16] (narrow) %v2947_v37, 8  ;;  %3011 = vxpose.xlu0.b32.cont [4/16] (narrow) %v2963_v4, 8 }
 0x506   : > { %2980 = vxpose.xlu2.b32.cont [5/16] (narrow) %v2948_v49, 8  ;;  %3012 = vxpose.xlu0.b32.cont [5/16] (narrow) %v2964_v43, 8 }
 0x50e   : > { %2981 = vxpose.xlu2.b32.cont [6/16] (narrow) %v2949_v36, 8  ;;  %3013 = vxpose.xlu0.b32.cont [6/16] (narrow) %v2965_v39, 8 }
 0x516   : > { %2982 = vxpose.xlu2.b32.cont [7/16] (narrow) %v2950_v62, 8  ;;  %3014 = vxpose.xlu0.b32.cont [7/16] (narrow) %v2966_v23, 8 }
 0x51e   : > { %2983 = vxpose.xlu2.b32.cont [8/16] (narrow) %v2951_v9, 8  ;;  %3015 = vxpose.xlu0.b32.cont [8/16] (narrow) %v2967_v57, 8 }
 0x526   : > { %2984 = vxpose.xlu2.b32.cont [9/16] (narrow) %v2952_v25, 8  ;;  %3016 = vxpose.xlu0.b32.cont [9/16] (narrow) %v2968_v46, 8 }
 0x52e   : > { %2985 = vxpose.xlu2.b32.cont [10/16] (narrow) %v2953_v40, 8  ;;  %3017 = vxpose.xlu0.b32.cont [10/16] (narrow) %v2969_v60, 8 }
 0x536   : > { %2986 = vxpose.xlu2.b32.cont [11/16] (narrow) %v2954_v27, 8  ;;  %3018 = vxpose.xlu0.b32.cont [11/16] (narrow) %v2970_v48, 8 }
 0x53e   : > { %2987 = vxpose.xlu2.b32.cont [12/16] (narrow) %v2955_v52, 8  ;;  %3019 = vxpose.xlu0.b32.cont [12/16] (narrow) %v2971_v31, 8 }
 0x546   : > { %2988 = vxpose.xlu2.b32.cont [13/16] (narrow) %v2956_v28, 8  ;;  %3020 = vxpose.xlu0.b32.cont [13/16] (narrow) %v2972_v29, 8 }
 0x54e   : > { %2989 = vxpose.xlu2.b32.cont [14/16] (narrow) %v2957_v0, 8  ;;  %3021 = vxpose.xlu0.b32.cont [14/16] (narrow) %v2973_v30, 8 }
 0x556   : > { %2990 = vxpose.xlu2.b32.cont [15/16] (narrow) %v2958_v13, 8  ;;  %3022 = vxpose.xlu0.b32.cont [15/16] (narrow) %v2974_v22, 8 }
 0x55e   : > { %2991 = vxpose.xlu2.b32.end [16/16] (narrow) %v2959_v12, 8  ;;  %3023 = vxpose.xlu0.b32.end [16/16] (narrow) %v2975_v56, 8 }
 0x57f   : > { %v2992_v2 = vpop.trf.xlu2 }
 0x58a   : > { %v3024_v58 = vpop.trf.xlu0 }
 0x58b   : > { %v3042_v54 = vrot.slane %v3024_v58, 7 }
 0x58d   : > { %v3044_v38 = vsel %vm3043_vm5, %v2992_v2, %v3042_v54 }
 0x58e   : > { %3050 = vst.msk [vmem:[%s240_s9] sm:$0x3] %vm3048_vm6, %v3044_v38 }
 0x58f   : > { %3401 = shalt.err (!%p3398_p5)
}
 0x590   : > { %3313 = dma.vmem_to_hbm [thread:$0]  (%p3525_p4), %s3065_s10, 32, %s3067_s11, %s3052_s12  }
 0x591 PF: > { %p3319_p6 = scmp.ge.s32.totalorder %s3452_s23, 2  ;;  %s3078_s24 = sand.u32 1, %s3432_s18  }
 0x592   : > { %s3079_s27 = scalar_lea.sflag [#allocation4], %s3078_s24 }
 0x593   : > { %p3316_p7 = pnand %p3319_p6, %p3532_p8 }
 0x595   : > { %p3317_p9 = pneg %p3316_p7 }
 0x597   : > { %3427 = dma.done.wait (%p3317_p9), %s3079_s27, 32  }
 0x598   : > { %3429 = vsyncadd (%p3317_p9), %s3079_s27, 4294967264  ;;  %s18_s23 = sadd.s32 1, %s3452_s23   ;;  %s5563_s18 = smov %s3436_s19 }
 0x599   : > { %p15_p10 = scmp.ge.s32.totalorder %s18_s23, 4   ;;  %s5564_s19 = smov %s3440_s20 }
 0x59a   : > { %s5565_s20 = smov %s3538_s6  ;;  %s5566_s21 = smov %s3448_s22 }
 0x59b   : > { %s5567_s22 = smov %s5569_s26  ;;  %17 = sbr.rel (!%p15_p10) target bundleno = 4 (0x4), region = 83 }
 0x5a0   :  { %3085 = vsyncpa [#allocation4], 1 }
 0x5a1   :  { %3087 = vsyncpa [#allocation4 + $0x1], 1 }

</bundles_post_ra>
